<compile_context>
chip_gen: v6e
topology: v6e:2x2x1
jax: 0.10.0
libtpu: 0.0.40
codegen_flags: <defaults>
</compile_context>

<pallas_src>
import functools

import numpy as np
import jax
import jax.numpy as jnp
from jax import lax
from jax.experimental import pallas as pl
from jax.experimental.pallas import tpu as pltpu


def _round_up(x, m):
    return (x + m - 1) // m * m


# ----------------------------------------------------------------------------
# sincos position embedding (MAE reference implementation, numpy, init-time)
# ----------------------------------------------------------------------------
def _get_1d_sincos(embed_dim, pos):
    omega = np.arange(embed_dim // 2, dtype=np.float32)
    omega /= embed_dim / 2.0
    omega = 1.0 / 10000 ** omega
    pos = pos.reshape(-1)
    out = np.einsum("m,d->md", pos, omega)
    return np.concatenate([np.sin(out), np.cos(out)], axis=1)


def get_2d_sincos_pos_embed(embed_dim, grid_size, cls_token=False):
    grid_h = np.arange(grid_size, dtype=np.float32)
    grid_w = np.arange(grid_size, dtype=np.float32)
    grid = np.meshgrid(grid_w, grid_h)  # w first
    grid = np.stack(grid, axis=0).reshape([2, 1, grid_size, grid_size])
    emb_h = _get_1d_sincos(embed_dim // 2, grid[0])
    emb_w = _get_1d_sincos(embed_dim // 2, grid[1])
    pos = np.concatenate([emb_h, emb_w], axis=1)
    if cls_token:
        pos = np.concatenate([np.zeros([1, embed_dim], np.float32), pos], axis=0)
    return pos


# ----------------------------------------------------------------------------
# Pallas kernel: row-tiled linear (decoder_embed)
# ----------------------------------------------------------------------------
def _linear_kernel(x_ref, w_ref, b_ref, o_ref):
    acc = jnp.dot(x_ref[...].astype(jnp.bfloat16), w_ref[...],
                  preferred_element_type=jnp.float32)
    o_ref[...] = (acc + b_ref[...]).astype(o_ref.dtype)


def linear(x2d, w, b, target_rows=1024):
    M, H = x2d.shape
    N = w.shape[1]
    tm = M if M <= target_rows else target_rows
    return pl.pallas_call(
        _linear_kernel,
        grid=(pl.cdiv(M, tm),),
        in_specs=[pl.BlockSpec((tm, H), lambda i: (i, 0)),
                  pl.BlockSpec((H, N), lambda i: (0, 0)),
                  pl.BlockSpec((1, N), lambda i: (0, 0))],
        out_specs=pl.BlockSpec((tm, N), lambda i: (i, 0)),
        out_shape=jax.ShapeDtypeStruct((M, N), jnp.float32),
        compiler_params=pltpu.CompilerParams(dimension_semantics=("parallel",)),
    )(x2d, w, b)


# ----------------------------------------------------------------------------
# Pallas kernel: fused pos-add + decoder layers + final LayerNorm + decoder_pred
# ----------------------------------------------------------------------------
def _decoder_kernel(x_ref, pos_ref,
                    wqkv_ref, wo_ref, wfc_ref, wpj_ref,
                    g1_ref, b1_ref, bqkv_ref, bo_ref,
                    g2_ref, b2_ref, bfc_ref, bpj_ref,
                    ng_ref, nb_ref, pw_ref, pb_ref,
                    out_ref,
                    res_sc, qkv_sc, attn_sc,
                    *, num_heads, batch_tile, s_pad, s_valid, nl):
    layer = pl.program_id(1)
    D = res_sc.shape[-1]
    hd = D // num_heads

    # layer-0 prologue: load x and fold in the position embedding (saves one
    # full HBM pass in the wrapper); residual stream lives in VMEM scratch.
    @pl.when(layer == 0)
    def _():
        res_sc[...] = x_ref[0] + pos_ref[...]

    def layernorm(v, g, b):
        mu = jnp.mean(v, axis=-1, keepdims=True)
        var = jnp.mean(jnp.square(v - mu), axis=-1, keepdims=True)
        return (v - mu) * lax.rsqrt(var + 1e-5) * g + b

    x = res_sc[...]                      # (m2, D) f32, m2 = batch_tile * s_pad

    # --- multi-head self-attention (pre-LN), batch flattened into matmul M ---
    h = layernorm(x, g1_ref[layer], b1_ref[layer])
    qkv = jnp.dot(h.astype(jnp.bfloat16), wqkv_ref[0],
                  preferred_element_type=jnp.float32) + bqkv_ref[layer]
    qkv_sc[...] = qkv.astype(jnp.bfloat16)   # drop the f32 (m2, 3D) early

    key_mask = None
    if s_pad != s_valid:                 # mask padded key positions
        key_mask = lax.broadcasted_iota(jnp.int32, (s_pad, s_pad), 1) < s_valid

    # group heads so each attention-scratch store is >=128 lanes when possible
    hpg = min(num_heads, max(1, 128 // hd))
    while num_heads % hpg:
        hpg -= 1
    n_groups = num_heads // hpg
    row_align = s_pad & (-s_pad)         # largest power-of-2 divisor of s_pad

    def attn_batch(b, carry):
        r0 = pl.multiple_of(b * s_pad, row_align)
        for g in range(n_groups):
            outs = []
            for j in range(hpg):
                c0 = (g * hpg + j) * hd
                qs = qkv_sc[pl.ds(r0, s_pad), pl.ds(c0, hd)]
                ks = qkv_sc[pl.ds(r0, s_pad), pl.ds(D + c0, hd)]
                vs = qkv_sc[pl.ds(r0, s_pad), pl.ds(2 * D + c0, hd)]
                s = lax.dot_general(qs, ks, (((1,), (1,)), ((), ())),
                                    preferred_element_type=jnp.float32)
                if key_mask is not None:
                    s = jnp.where(key_mask, s, jnp.float32(-1e30))
                s = s - jnp.max(s, axis=-1, keepdims=True)
                p = jnp.exp(s)
                p = p * pl.reciprocal(jnp.sum(p, axis=-1, keepdims=True),
                                      approx=True)
                outs.append(jnp.dot(p.astype(jnp.bfloat16), vs,
                                    preferred_element_type=jnp.float32))
            grp = outs[0] if hpg == 1 else jnp.concatenate(outs, axis=-1)
            attn_sc[pl.ds(r0, s_pad), pl.ds(g * hpg * hd, hpg * hd)] = grp
        return carry

    lax.fori_loop(0, batch_tile, attn_batch, 0)

    attn = jnp.dot(attn_sc[...].astype(jnp.bfloat16), wo_ref[0],
                   preferred_element_type=jnp.float32) + bo_ref[layer]
    x = x + attn

    # --- MLP with QuickGELU (pre-LN), elementwise math in f32 ---
    h2 = layernorm(x, g2_ref[layer], b2_ref[layer])
    ff = jnp.dot(h2.astype(jnp.bfloat16), wfc_ref[0],
                 preferred_element_type=jnp.float32) + bfc_ref[layer]
    ff = (ff * jax.nn.sigmoid(1.702 * ff)).astype(jnp.bfloat16)
    ff = jnp.dot(ff, wpj_ref[0], preferred_element_type=jnp.float32) + bpj_ref[layer]
    x = x + ff
    res_sc[...] = x

    # --- last-layer epilogue: decoder_norm + decoder_pred (fused, no HBM
    #     round-trip of the residual stream) ---
    @pl.when(layer == nl - 1)
    def _():
        hf = layernorm(x, ng_ref[...], nb_ref[...])
        out_ref[0] = (jnp.dot(hf.astype(jnp.bfloat16), pw_ref[...],
                              preferred_element_type=jnp.float32)
                      + pb_ref[...]).astype(out_ref.dtype)


def _vmem_capacity_bytes():
    try:
        info = pltpu.get_tpu_info()
        cap = getattr(info, "vmem_capacity_bytes", None)
        if cap:
            return int(cap)
    except Exception:
        pass
    return 64 * 2 ** 20          # conservative (v7x-sized) fallback


def _decoder_vmem_estimate(m2, D, c_pad, nl):
    f32, bf16 = 4, 2
    est = 0
    est += 2 * m2 * D * f32                 # res_sc + attn_sc
    est += m2 * 3 * D * bf16                # qkv_sc (bf16)
    est += 2 * m2 * D * f32                 # x input (double-buffered)
    est += m2 * D * f32                     # pos (resident)
    est += 2 * m2 * c_pad * f32             # pred output (double-buffered)
    est += 2 * 12 * D * D * bf16            # streamed big weights, double-buffered
    est += nl * 12 * D * f32                # resident small per-layer params
    est += D * c_pad * bf16 + 2 * c_pad * f32 + 2 * D * f32   # pred/norm params
    est += m2 * 8 * D * f32                 # in-kernel f32 temporaries (qkv/ff/h)
    return est


def _pick_batch_tile(B, s_pad, D, c_pad, nl, vmem_cap, max_rows=2048):
    budget = int(0.55 * vmem_cap)
    best = 1
    for d in range(1, B + 1):
        if B % d:
            continue
        m2 = d * s_pad
        if m2 > max_rows:
            break
        if _decoder_vmem_estimate(m2, D, c_pad, nl) <= budget:
            best = d
    return best


def decoder_pred(x, kp, num_heads):
    """pos-add + decoder transformer + decoder_norm + decoder_pred, one pallas_call."""
    B, S, D = x.shape
    assert D % num_heads == 0
    s_pad = _round_up(S, 16)            # bf16 sublane packing (16 rows / vreg)
    if s_pad != S:
        x = jnp.pad(x, ((0, 0), (0, s_pad - S), (0, 0)))

    nl = kp["wqkv"].shape[0]
    c_pad = kp["pred_w"].shape[1]
    cap = _vmem_capacity_bytes()
    bt = _pick_batch_tile(B, s_pad, D, c_pad, nl, cap)
    nbt = B // bt
    m2 = bt * s_pad
    xb = x.reshape(nbt, m2, D)

    pos = kp["pos_embed"][0]                                 # (S, D)
    pos = jnp.pad(pos, ((0, s_pad - S), (0, 0)))             # (s_pad, D)
    pos = jnp.tile(pos, (bt, 1))                             # (m2, D)

    big = [kp["wqkv"], kp["wo"], kp["wfc"], kp["wpj"]]        # streamed per layer
    small = [kp["ln1_g"], kp["ln1_b"], kp["bqkv"], kp["bo"],  # resident, tiny
             kp["ln2_g"], kp["ln2_b"], kp["bfc"], kp["bpj"]]
    fin = [kp["norm_g"], kp["norm_b"], kp["pred_w"], kp["pred_b"]]

    def big_spec(a):      # stream per-layer weight slabs along the layer axis
        return pl.BlockSpec((1,) + a.shape[1:], lambda b, l: (l, 0, 0))

    def res_spec(a):      # fully resident (constant block index)
        nd = a.ndim
        return pl.BlockSpec(a.shape, lambda b, l: (0,) * nd)

    in_specs = ([pl.BlockSpec((1, m2, D), lambda b, l: (b, 0, 0)),
                 res_spec(pos)]
                + [big_spec(a) for a in big]
                + [res_spec(a) for a in small]
                + [res_spec(a) for a in fin])

    est = _decoder_vmem_estimate(m2, D, c_pad, nl)
    vmem_limit = int(min(0.9 * cap, max(32 * 2 ** 20, 1.5 * est)))

    kernel = functools.partial(_decoder_kernel, num_heads=num_heads,
                               batch_tile=bt, s_pad=s_pad, s_valid=S, nl=nl)
    y = pl.pallas_call(
        kernel,
        grid=(nbt, nl),
        in_specs=in_specs,
        out_specs=pl.BlockSpec((1, m2, c_pad), lambda b, l: (b, 0, 0)),
        out_shape=jax.ShapeDtypeStruct((nbt, m2, c_pad), jnp.float32),
        scratch_shapes=[pltpu.VMEM((m2, D), jnp.float32),      # residual stream
                        pltpu.VMEM((m2, 3 * D), jnp.bfloat16), # qkv
                        pltpu.VMEM((m2, D), jnp.float32)],     # attention out
        compiler_params=pltpu.CompilerParams(
            dimension_semantics=("parallel", "arbitrary"),
            vmem_limit_bytes=vmem_limit),
    )(xb, pos, *big, *small, *fin)
    return y.reshape(B, s_pad, c_pad)


# ----------------------------------------------------------------------------
# Parameters (raw f32, shapes follow MIMHead.__init__) + kernel-ready prep
# ----------------------------------------------------------------------------
def init_params(key, cfg):
    H = cfg["hidden_size"]
    D = cfg["mim_decoder_hidden_size"]
    P = cfg["patch_size"]
    num_layers = cfg["mim_decoder_num_layers"] + 1
    num_patches = (cfg["image_size"] // P) ** 2
    C = 3 * P * P
    std = 0.02
    keys = jax.random.split(key, 3 + num_layers)

    params = {
        "embed_w": jax.random.normal(keys[0], (H, D), jnp.float32) * std,
        "embed_b": jnp.zeros((1, D), jnp.float32),
        "mask_token": jax.random.normal(keys[1], (1, 1, D), jnp.float32) * std,
        "pos_embed": jnp.asarray(
            get_2d_sincos_pos_embed(D, int(num_patches ** 0.5), cls_token=True),
            jnp.float32)[None],                                # (1, S, D)
        "norm_g": jnp.ones((1, D), jnp.float32),
        "norm_b": jnp.zeros((1, D), jnp.float32),
        "pred_w": jax.random.normal(keys[2], (D, C), jnp.float32) * std,
        "pred_b": jnp.zeros((1, C), jnp.float32),
    }
    layers = []
    for li in range(num_layers):
        k = jax.random.split(keys[3 + li], 4)
        layers.append(dict(
            ln1_g=jnp.ones((1, D), jnp.float32), ln1_b=jnp.zeros((1, D), jnp.float32),
            wqkv=jax.random.normal(k[0], (D, 3 * D), jnp.float32) * std,
            bqkv=jnp.zeros((1, 3 * D), jnp.float32),
            wo=jax.random.normal(k[1], (D, D), jnp.float32) * std,
            bo=jnp.zeros((1, D), jnp.float32),
            ln2_g=jnp.ones((1, D), jnp.float32), ln2_b=jnp.zeros((1, D), jnp.float32),
            wfc=jax.random.normal(k[2], (D, 4 * D), jnp.float32) * std,
            bfc=jnp.zeros((1, 4 * D), jnp.float32),
            wpj=jax.random.normal(k[3], (4 * D, D), jnp.float32) * std,
            bpj=jnp.zeros((1, D), jnp.float32),
        ))
    params["layers"] = layers
    return params


def prepare_params(params, num_heads):
    """Stack per-layer weights, fold 1/sqrt(hd) into q, bf16 matmul weights,
    pad decoder_pred to a 128-lane-multiple output."""
    D = params["embed_w"].shape[1]
    scale = 1.0 / float(np.sqrt(D // num_heads))
    layers = params["layers"]

    def stack(name):
        return jnp.stack([p[name] for p in layers])

    wqkv = stack("wqkv").at[:, :, :D].multiply(scale).astype(jnp.bfloat16)
    bqkv = stack("bqkv").at[:, :, :D].multiply(scale)

    C = params["pred_w"].shape[1]
    c_pad = _round_up(C, 128)
    pred_w = jnp.pad(params["pred_w"], ((0, 0), (0, c_pad - C))).astype(jnp.bfloat16)
    pred_b = jnp.pad(params["pred_b"], ((0, 0), (0, c_pad - C)))

    return dict(
        embed_w=params["embed_w"].astype(jnp.bfloat16),
        embed_b=params["embed_b"],
        mask_token=params["mask_token"],
        pos_embed=params["pos_embed"],
        norm_g=params["norm_g"], norm_b=params["norm_b"],
        pred_w=pred_w, pred_b=pred_b,
        ln1_g=stack("ln1_g"), ln1_b=stack("ln1_b"),
        wqkv=wqkv, bqkv=bqkv,
        wo=stack("wo").astype(jnp.bfloat16), bo=stack("bo"),
        ln2_g=stack("ln2_g"), ln2_b=stack("ln2_b"),
        wfc=stack("wfc").astype(jnp.bfloat16), bfc=stack("bfc"),
        wpj=stack("wpj").astype(jnp.bfloat16), bpj=stack("bpj"),
    )


# ----------------------------------------------------------------------------
# MIMHead forward (glue in JAX, hot path in Pallas)
# ----------------------------------------------------------------------------
def mim_head_forward(kp, x, ids_restore, *, num_heads, num_channels):
    B, L, H = x.shape
    D = kp["embed_w"].shape[1]

    # decoder_embed (row-tiled Pallas matmul, bf16 weights, f32 accumulate)
    x = linear(x.reshape(B * L, H), kp["embed_w"], kp["embed_b"]).reshape(B, L, D)

    # un-shuffle: append mask tokens and gather by ids_restore
    # TODO(synk): data-dependent per-token gather kept in plain JAX (take_along_axis);
    # a Pallas version would need scalar-prefetch Element indexing for little gain.
    num_mask = ids_restore.shape[1] + 1 - L
    mask_tokens = jnp.broadcast_to(kp["mask_token"], (B, num_mask, D))
    x_ = jnp.concatenate([x[:, 1:, :], mask_tokens], axis=1)
    x_ = jnp.take_along_axis(x_, ids_restore[:, :, None], axis=1)
    x = jnp.concatenate([x[:, :1, :], x_], axis=1)

    # pos-add + decoder transformer + decoder_norm + decoder_pred: one pallas_call
    S = x.shape[1]
    out = decoder_pred(x, kp, num_heads)          # (B, s_pad, C_pad)
    return out[:, 1:S, :num_channels]


# pure-JAX f32 reference for correctness checking (raw, unfolded params)
def mim_head_reference(params, x, ids_restore, num_heads):
    B, L, H = x.shape
    D = params["embed_w"].shape[1]
    x = x @ params["embed_w"] + params["embed_b"]
    num_mask = ids_restore.shape[1] + 1 - L
    mask_tokens = jnp.broadcast_to(params["mask_token"], (B, num_mask, D))
    x_ = jnp.concatenate([x[:, 1:, :], mask_tokens], axis=1)
    x_ = jnp.take_along_axis(x_, ids_restore[:, :, None], axis=1)
    x = jnp.concatenate([x[:, :1, :], x_], axis=1)
    x = x + params["pos_embed"]

    def ln(v, g, b):
        mu = v.mean(-1, keepdims=True)
        var = ((v - mu) ** 2).mean(-1, keepdims=True)
        return (v - mu) * lax.rsqrt(var + 1e-5) * g + b

    hd = D // num_heads
    for p in params["layers"]:
        h = ln(x, p["ln1_g"], p["ln1_b"])
        qkv = h @ p["wqkv"] + p["bqkv"]
        q, k, v = jnp.split(qkv, 3, axis=-1)
        q = q.reshape(B, -1, num_heads, hd).transpose(0, 2, 1, 3) / jnp.sqrt(hd)
        k = k.reshape(B, -1, num_heads, hd).transpose(0, 2, 1, 3)
        v = v.reshape(B, -1, num_heads, hd).transpose(0, 2, 1, 3)
        a = jax.nn.softmax(jnp.einsum("bhqd,bhkd->bhqk", q, k), axis=-1)
        o = jnp.einsum("bhqk,bhkd->bhqd", a, v).transpose(0, 2, 1, 3).reshape(B, -1, D)
        x = x + (o @ p["wo"] + p["bo"])
        h2 = ln(x, p["ln2_g"], p["ln2_b"])
        ff = h2 @ p["wfc"] + p["bfc"]
        ff = ff * jax.nn.sigmoid(1.702 * ff)
        x = x + (ff @ p["wpj"] + p["bpj"])
    x = ln(x, params["norm_g"], params["norm_b"])
    x = x @ params["pred_w"] + params["pred_b"]
    return x[:, 1:, :]


# ----------------------------------------------------------------------------
if __name__ == "__main__":
    cfg = dict(
        hidden_size=32,
        patch_size=4,
        image_size=16,                 # -> num_patches = 16
        mim_decoder_hidden_size=64,
        mim_decoder_num_layers=1,      # -> 2 decoder blocks
        mim_decoder_num_heads=4,
    )
    num_patches = (cfg["image_size"] // cfg["patch_size"]) ** 2
    num_channels = 3 * cfg["patch_size"] ** 2

    key = jax.random.PRNGKey(0)
    k_par, k_x, k_ids = jax.random.split(key, 3)
    params = init_params(k_par, cfg)
    kparams = prepare_params(params, cfg["mim_decoder_num_heads"])

    B = 2
    n_visible = 8                       # kept patches after masking
    x = jax.random.normal(k_x, (B, n_visible + 1, cfg["hidden_size"]), jnp.float32)
    ids_restore = jnp.stack(
        [jax.random.permutation(k, num_patches)
         for k in jax.random.split(k_ids, B)]).astype(jnp.int32)

    fwd = jax.jit(functools.partial(mim_head_forward,
                                    num_heads=cfg["mim_decoder_num_heads"],
                                    num_channels=num_channels))
    out = jax.block_until_ready(fwd(kparams, x, ids_restore))

    ref = mim_head_reference(params, x, ids_restore, cfg["mim_decoder_num_heads"])
    assert out.shape == (B, num_patches, num_channels), out.shape
    max_err = float(jnp.max(jnp.abs(out - ref)))
    # bf16 matmul operands + approx softmax reciprocal vs. f32 reference
    assert jnp.allclose(out, ref, atol=3e-2, rtol=5e-2), f"max_err={max_err}"

    print("KERNEL_OK")
</pallas_src>

<mosaic_0001>
module attributes {stable_mosaic.version = 11 : i64} {
  func.func @_linear_kernel(%arg0: i32, %arg1: memref<18x32xf32, #tpu.memory_space<vmem>>, %arg2: memref<32x64xbf16, #tpu.memory_space<vmem>>, %arg3: memref<1x64xf32, #tpu.memory_space<vmem>>, %arg4: memref<18x64xf32, #tpu.memory_space<vmem>>) attributes {dimension_semantics = [#tpu.dimension_semantics<parallel>], iteration_bounds = array<i64: 1>, scalar_prefetch = 0 : i64, scratch_operands = 0 : i64, tpu.core_type = #tpu.core_type<tc>, window_params = [{transform_indices = @transform_0, window_bounds = array<i64: 18, 32>}, {pipeline_mode = #tpu.pipeline_mode<synchronous>, transform_indices = @transform_1, window_bounds = array<i64: 32, 64>}, {pipeline_mode = #tpu.pipeline_mode<synchronous>, transform_indices = @transform_2, window_bounds = array<i64: 1, 64>}, {transform_indices = @transform_3, window_bounds = array<i64: 18, 64>}]} {
    %c0 = arith.constant 0 : index
    %c0_0 = arith.constant 0 : index
    %0 = vector.load %arg1[%c0, %c0_0] : memref<18x32xf32, #tpu.memory_space<vmem>>, vector<18x32xf32>
    %1 = arith.truncf %0 : vector<18x32xf32> to vector<18x32xbf16>
    %c0_1 = arith.constant 0 : index
    %c0_2 = arith.constant 0 : index
    %2 = vector.load %arg2[%c0_1, %c0_2] : memref<32x64xbf16, #tpu.memory_space<vmem>>, vector<32x64xbf16>
    %cst = arith.constant dense<0.000000e+00> : vector<18x64xf32>
    %3 = tpu.matmul %1, %2, %cst {dimension_numbers = #tpu.dot_dimension_numbers<[1], [0], [0], [1], [0, 0, 1, 1], [], []>} : vector<18x32xbf16>, vector<32x64xbf16>, vector<18x64xf32> -> vector<18x64xf32>
    %c0_3 = arith.constant 0 : index
    %c0_4 = arith.constant 0 : index
    %4 = vector.load %arg3[%c0_3, %c0_4] : memref<1x64xf32, #tpu.memory_space<vmem>>, vector<1x64xf32>
    %5 = vector.broadcast %4 : vector<1x64xf32> to vector<18x64xf32>
    %6 = arith.addf %3, %5 : vector<18x64xf32>
    %c0_5 = arith.constant 0 : index
    %c0_6 = arith.constant 0 : index
    %7 = vector.load %arg4[%c0_5, %c0_6] : memref<18x64xf32, #tpu.memory_space<vmem>>, vector<18x64xf32>
    tpu.vector_store %arg4[%c0_5, %c0_6], %6 {strides = array<i32>} : memref<18x64xf32, #tpu.memory_space<vmem>>, vector<18x64xf32>,
    return
  }
  func.func @transform_0(%arg0: i32) -> (i32, i32) {
    %c0_i32 = arith.constant 0 : i32
    %c0_i32_0 = arith.constant 0 : i32
    return %arg0, %c0_i32 : i32, i32
  }
  func.func @transform_1(%arg0: i32) -> (i32, i32) {
    %c0_i32 = arith.constant 0 : i32
    %c0_i32_0 = arith.constant 0 : i32
    %c0_i32_1 = arith.constant 0 : i32
    return %c0_i32, %c0_i32_0 : i32, i32
  }
  func.func @transform_2(%arg0: i32) -> (i32, i32) {
    %c0_i32 = arith.constant 0 : i32
    %c0_i32_0 = arith.constant 0 : i32
    %c0_i32_1 = arith.constant 0 : i32
    return %c0_i32, %c0_i32_0 : i32, i32
  }
  func.func @transform_3(%arg0: i32) -> (i32, i32) {
    %c0_i32 = arith.constant 0 : i32
    %c0_i32_0 = arith.constant 0 : i32
    return %arg0, %c0_i32 : i32, i32
  }
}

module attributes {stable_mosaic.version = 11 : i64} {
  func.func @_decoder_kernel(%arg0: i32, %arg1: i32, %arg2: memref<1x64x64xf32, #tpu.memory_space<vmem>>, %arg3: memref<64x64xf32, #tpu.memory_space<vmem>>, %arg4: memref<1x64x192xbf16, #tpu.memory_space<vmem>>, %arg5: memref<1x64x64xbf16, #tpu.memory_space<vmem>>, %arg6: memref<1x64x256xbf16, #tpu.memory_space<vmem>>, %arg7: memref<1x256x64xbf16, #tpu.memory_space<vmem>>, %arg8: memref<2x1x64xf32, #tpu.memory_space<vmem>>, %arg9: memref<2x1x64xf32, #tpu.memory_space<vmem>>, %arg10: memref<2x1x192xf32, #tpu.memory_space<vmem>>, %arg11: memref<2x1x64xf32, #tpu.memory_space<vmem>>, %arg12: memref<2x1x64xf32, #tpu.memory_space<vmem>>, %arg13: memref<2x1x64xf32, #tpu.memory_space<vmem>>, %arg14: memref<2x1x256xf32, #tpu.memory_space<vmem>>, %arg15: memref<2x1x64xf32, #tpu.memory_space<vmem>>, %arg16: memref<1x64xf32, #tpu.memory_space<vmem>>, %arg17: memref<1x64xf32, #tpu.memory_space<vmem>>, %arg18: memref<64x128xbf16, #tpu.memory_space<vmem>>, %arg19: memref<1x128xf32, #tpu.memory_space<vmem>>, %arg20: memref<1x64x128xf32, #tpu.memory_space<vmem>>, %arg21: memref<64x64xf32, #tpu.memory_space<vmem>>, %arg22: memref<64x192xbf16, #tpu.memory_space<vmem>>, %arg23: memref<64x64xf32, #tpu.memory_space<vmem>>) attributes {dimension_semantics = [#tpu.dimension_semantics<parallel>, #tpu.dimension_semantics<arbitrary>], iteration_bounds = array<i64: 1, 2>, scalar_prefetch = 0 : i64, scratch_operands = 3 : i64, tpu.core_type = #tpu.core_type<tc>, window_params = [{transform_indices = @transform_0, window_bounds = array<i64: 1, 64, 64>}, {pipeline_mode = #tpu.pipeline_mode<synchronous>, transform_indices = @transform_1, window_bounds = array<i64: 64, 64>}, {transform_indices = @transform_2, window_bounds = array<i64: 1, 64, 192>}, {transform_indices = @transform_3, window_bounds = array<i64: 1, 64, 64>}, {transform_indices = @transform_4, window_bounds = array<i64: 1, 64, 256>}, {transform_indices = @transform_5, window_bounds = array<i64: 1, 256, 64>}, {pipeline_mode = #tpu.pipeline_mode<synchronous>, transform_indices = @transform_6, window_bounds = array<i64: 2, 1, 64>}, {pipeline_mode = #tpu.pipeline_mode<synchronous>, transform_indices = @transform_7, window_bounds = array<i64: 2, 1, 64>}, {pipeline_mode = #tpu.pipeline_mode<synchronous>, transform_indices = @transform_8, window_bounds = array<i64: 2, 1, 192>}, {pipeline_mode = #tpu.pipeline_mode<synchronous>, transform_indices = @transform_9, window_bounds = array<i64: 2, 1, 64>}, {pipeline_mode = #tpu.pipeline_mode<synchronous>, transform_indices = @transform_10, window_bounds = array<i64: 2, 1, 64>}, {pipeline_mode = #tpu.pipeline_mode<synchronous>, transform_indices = @transform_11, window_bounds = array<i64: 2, 1, 64>}, {pipeline_mode = #tpu.pipeline_mode<synchronous>, transform_indices = @transform_12, window_bounds = array<i64: 2, 1, 256>}, {pipeline_mode = #tpu.pipeline_mode<synchronous>, transform_indices = @transform_13, window_bounds = array<i64: 2, 1, 64>}, {pipeline_mode = #tpu.pipeline_mode<synchronous>, transform_indices = @transform_14, window_bounds = array<i64: 1, 64>}, {pipeline_mode = #tpu.pipeline_mode<synchronous>, transform_indices = @transform_15, window_bounds = array<i64: 1, 64>}, {pipeline_mode = #tpu.pipeline_mode<synchronous>, transform_indices = @transform_16, window_bounds = array<i64: 64, 128>}, {pipeline_mode = #tpu.pipeline_mode<synchronous>, transform_indices = @transform_17, window_bounds = array<i64: 1, 128>}, {transform_indices = @transform_18, window_bounds = array<i64: 1, 64, 128>}]} {
    %c0_i32 = arith.constant 0 : i32
    %0 = arith.cmpi eq, %arg1, %c0_i32 : i32
    %1 = arith.extui %0 : i1 to i32
    %c0_i32_0 = arith.constant 0 : i32
    %2 = arith.cmpi ne, %1, %c0_i32_0 : i32
    scf.if %2 {
      %c0_55 = arith.constant 0 : index
      %c0_56 = arith.constant 0 : index
      %c0_57 = arith.constant 0 : index
      %117 = vector.load %arg2[%c0_55, %c0_56, %c0_57] : memref<1x64x64xf32, #tpu.memory_space<vmem>>, vector<1x64x64xf32>
      %118 = vector.shape_cast %117 : vector<1x64x64xf32> to vector<64x64xf32>
      %c0_58 = arith.constant 0 : index
      %c0_59 = arith.constant 0 : index
      %119 = vector.load %arg3[%c0_58, %c0_59] : memref<64x64xf32, #tpu.memory_space<vmem>>, vector<64x64xf32>
      %120 = arith.addf %118, %119 : vector<64x64xf32>
      %c0_60 = arith.constant 0 : index
      %c0_61 = arith.constant 0 : index
      %121 = vector.load %arg21[%c0_60, %c0_61] : memref<64x64xf32, #tpu.memory_space<vmem>>, vector<64x64xf32>
      tpu.vector_store %arg21[%c0_60, %c0_61], %120 {strides = array<i32>} : memref<64x64xf32, #tpu.memory_space<vmem>>, vector<64x64xf32>,
    } else {
    }
    %c0 = arith.constant 0 : index
    %c0_1 = arith.constant 0 : index
    %3 = vector.load %arg21[%c0, %c0_1] : memref<64x64xf32, #tpu.memory_space<vmem>>, vector<64x64xf32>
    %4 = arith.index_cast %arg1 : i32 to index
    %c0_2 = arith.constant 0 : index
    %c0_3 = arith.constant 0 : index
    %5 = vector.load %arg8[%4, %c0_2, %c0_3] : memref<2x1x64xf32, #tpu.memory_space<vmem>>, vector<1x1x64xf32>
    %6 = vector.shape_cast %5 : vector<1x1x64xf32> to vector<1x64xf32>
    %7 = arith.index_cast %arg1 : i32 to index
    %c0_4 = arith.constant 0 : index
    %c0_5 = arith.constant 0 : index
    %8 = vector.load %arg9[%7, %c0_4, %c0_5] : memref<2x1x64xf32, #tpu.memory_space<vmem>>, vector<1x1x64xf32>
    %9 = vector.shape_cast %8 : vector<1x1x64xf32> to vector<1x64xf32>
    %cst = arith.constant dense<0.000000e+00> : vector<64xf32>
    %10 = vector.multi_reduction <add>, %3, %cst [1] : vector<64x64xf32> to vector<64xf32>
    %11 = vector.shape_cast %10 : vector<64xf32> to vector<64x1xf32>
    %cst_6 = arith.constant 6.400000e+01 : f32
    %12 = vector.broadcast %cst_6 : f32 to vector<64x1xf32>
    %13 = arith.divf %11, %12 : vector<64x1xf32>
    %14 = vector.broadcast %13 : vector<64x1xf32> to vector<64x64xf32>
    %15 = arith.subf %3, %14 : vector<64x64xf32>
    %16 = arith.mulf %15, %15 : vector<64x64xf32>
    %cst_7 = arith.constant dense<0.000000e+00> : vector<64xf32>
    %17 = vector.multi_reduction <add>, %16, %cst_7 [1] : vector<64x64xf32> to vector<64xf32>
    %18 = vector.shape_cast %17 : vector<64xf32> to vector<64x1xf32>
    %cst_8 = arith.constant 6.400000e+01 : f32
    %19 = vector.broadcast %cst_8 : f32 to vector<64x1xf32>
    %20 = arith.divf %18, %19 : vector<64x1xf32>
    %21 = vector.broadcast %13 : vector<64x1xf32> to vector<64x64xf32>
    %22 = arith.subf %3, %21 : vector<64x64xf32>
    %cst_9 = arith.constant 9.99999974E-6 : f32
    %23 = vector.broadcast %cst_9 : f32 to vector<64x1xf32>
    %24 = arith.addf %20, %23 : vector<64x1xf32>
    %25 = math.rsqrt %24 : vector<64x1xf32>
    %26 = vector.broadcast %25 : vector<64x1xf32> to vector<64x64xf32>
    %27 = arith.mulf %22, %26 : vector<64x64xf32>
    %28 = vector.broadcast %6 : vector<1x64xf32> to vector<64x64xf32>
    %29 = arith.mulf %27, %28 : vector<64x64xf32>
    %30 = vector.broadcast %9 : vector<1x64xf32> to vector<64x64xf32>
    %31 = arith.addf %29, %30 : vector<64x64xf32>
    %32 = arith.truncf %31 : vector<64x64xf32> to vector<64x64xbf16>
    %c0_10 = arith.constant 0 : index
    %c0_11 = arith.constant 0 : index
    %c0_12 = arith.constant 0 : index
    %33 = vector.load %arg4[%c0_10, %c0_11, %c0_12] : memref<1x64x192xbf16, #tpu.memory_space<vmem>>, vector<1x64x192xbf16>
    %34 = vector.shape_cast %33 : vector<1x64x192xbf16> to vector<64x192xbf16>
    %cst_13 = arith.constant dense<0.000000e+00> : vector<64x192xf32>
    %35 = tpu.matmul %32, %34, %cst_13 {dimension_numbers = #tpu.dot_dimension_numbers<[1], [0], [0], [1], [0, 0, 1, 1], [], []>} : vector<64x64xbf16>, vector<64x192xbf16>, vector<64x192xf32> -> vector<64x192xf32>
    %36 = arith.index_cast %arg1 : i32 to index
    %c0_14 = arith.constant 0 : index
    %c0_15 = arith.constant 0 : index
    %37 = vector.load %arg10[%36, %c0_14, %c0_15] : memref<2x1x192xf32, #tpu.memory_space<vmem>>, vector<1x1x192xf32>
    %38 = vector.shape_cast %37 : vector<1x1x192xf32> to vector<1x192xf32>
    %39 = vector.broadcast %38 : vector<1x192xf32> to vector<64x192xf32>
    %40 = arith.addf %35, %39 : vector<64x192xf32>
    %41 = arith.truncf %40 : vector<64x192xf32> to vector<64x192xbf16>
    %c0_16 = arith.constant 0 : index
    %c0_17 = arith.constant 0 : index
    %42 = vector.load %arg22[%c0_16, %c0_17] : memref<64x192xbf16, #tpu.memory_space<vmem>>, vector<64x192xbf16>
    tpu.vector_store %arg22[%c0_16, %c0_17], %41 {strides = array<i32>} : memref<64x192xbf16, #tpu.memory_space<vmem>>, vector<64x192xbf16>,
    %43 = tpu.iota {dimensions = array<i32: 1>} : vector<32x32xi32>
    %c17_i32 = arith.constant 17 : i32
    %44 = vector.broadcast %c17_i32 : i32 to vector<32x32xi32>
    %45 = arith.cmpi slt, %43, %44 : vector<32x32xi32>
    %c0_i32_18 = arith.constant 0 : i32
    %c2_i32 = arith.constant 2 : i32
    %46 = arith.addi %c0_i32_18, %c2_i32 : i32
    %c1_i32 = arith.constant 1 : i32
    scf.for %arg24 = %c0_i32_18 to %46 step %c1_i32  : i32 {
      %c32_i32 = arith.constant 32 : i32
      %117 = arith.muli %arg24, %c32_i32 : i32
      %118 = tpu.assume_multiple %117, 32 : i32
      %119 = arith.index_cast %118 : i32 to index
      %c0_55 = arith.constant 0 : index
      %120 = vector.load %arg22[%119, %c0_55] : memref<64x192xbf16, #tpu.memory_space<vmem>>, vector<32x16xbf16>
      %121 = arith.index_cast %118 : i32 to index
      %c64 = arith.constant 64 : index
      %122 = vector.load %arg22[%121, %c64] : memref<64x192xbf16, #tpu.memory_space<vmem>>, vector<32x16xbf16>
      %123 = arith.index_cast %118 : i32 to index
      %c128 = arith.constant 128 : index
      %124 = vector.load %arg22[%123, %c128] : memref<64x192xbf16, #tpu.memory_space<vmem>>, vector<32x16xbf16>
      %cst_56 = arith.constant dense<0.000000e+00> : vector<32x32xf32>
      %125 = tpu.matmul %120, %122, %cst_56 {dimension_numbers = #tpu.dot_dimension_numbers<[1], [1], [0], [0], [0, 0, 1, 0], [], []>} : vector<32x16xbf16>, vector<32x16xbf16>, vector<32x32xf32> -> vector<32x32xf32>
      %cst_57 = arith.constant -1.000000e+30 : f32
      %126 = vector.broadcast %cst_57 : f32 to vector<32x32xf32>
      %127 = arith.select %45, %125, %126 : vector<32x32xi1>, vector<32x32xf32>
      %cst_58 = arith.constant dense<0xFF800000> : vector<32xf32>
      %128 = vector.multi_reduction <maximumf>, %127, %cst_58 [1] : vector<32x32xf32> to vector<32xf32>
      %129 = vector.shape_cast %128 : vector<32xf32> to vector<32x1xf32>
      %130 = vector.broadcast %129 : vector<32x1xf32> to vector<32x32xf32>
      %131 = arith.subf %127, %130 : vector<32x32xf32>
      %132 = math.exp %131 : vector<32x32xf32>
      %cst_59 = arith.constant dense<0.000000e+00> : vector<32xf32>
      %133 = vector.multi_reduction <add>, %132, %cst_59 [1] : vector<32x32xf32> to vector<32xf32>
      %134 = vector.shape_cast %133 : vector<32xf32> to vector<32x1xf32>
      %135 = tpu.reciprocal %134 {approx = true} : vector<32x1xf32> -> vector<32x1xf32>
      %136 = vector.broadcast %135 : vector<32x1xf32> to vector<32x32xf32>
      %137 = arith.mulf %132, %136 : vector<32x32xf32>
      %138 = arith.truncf %137 : vector<32x32xf32> to vector<32x32xbf16>
      %cst_60 = arith.constant dense<0.000000e+00> : vector<32x16xf32>
      %139 = tpu.matmul %138, %124, %cst_60 {dimension_numbers = #tpu.dot_dimension_numbers<[1], [0], [0], [1], [0, 0, 1, 1], [], []>} : vector<32x32xbf16>, vector<32x16xbf16>, vector<32x16xf32> -> vector<32x16xf32>
      %140 = arith.index_cast %118 : i32 to index
      %c16 = arith.constant 16 : index
      %141 = vector.load %arg22[%140, %c16] : memref<64x192xbf16, #tpu.memory_space<vmem>>, vector<32x16xbf16>
      %142 = arith.index_cast %118 : i32 to index
      %c80 = arith.constant 80 : index
      %143 = vector.load %arg22[%142, %c80] : memref<64x192xbf16, #tpu.memory_space<vmem>>, vector<32x16xbf16>
      %144 = arith.index_cast %118 : i32 to index
      %c144 = arith.constant 144 : index
      %145 = vector.load %arg22[%144, %c144] : memref<64x192xbf16, #tpu.memory_space<vmem>>, vector<32x16xbf16>
      %cst_61 = arith.constant dense<0.000000e+00> : vector<32x32xf32>
      %146 = tpu.matmul %141, %143, %cst_61 {dimension_numbers = #tpu.dot_dimension_numbers<[1], [1], [0], [0], [0, 0, 1, 0], [], []>} : vector<32x16xbf16>, vector<32x16xbf16>, vector<32x32xf32> -> vector<32x32xf32>
      %cst_62 = arith.constant -1.000000e+30 : f32
      %147 = vector.broadcast %cst_62 : f32 to vector<32x32xf32>
      %148 = arith.select %45, %146, %147 : vector<32x32xi1>, vector<32x32xf32>
      %cst_63 = arith.constant dense<0xFF800000> : vector<32xf32>
      %149 = vector.multi_reduction <maximumf>, %148, %cst_63 [1] : vector<32x32xf32> to vector<32xf32>
      %150 = vector.shape_cast %149 : vector<32xf32> to vector<32x1xf32>
      %151 = vector.broadcast %150 : vector<32x1xf32> to vector<32x32xf32>
      %152 = arith.subf %148, %151 : vector<32x32xf32>
      %153 = math.exp %152 : vector<32x32xf32>
      %cst_64 = arith.constant dense<0.000000e+00> : vector<32xf32>
      %154 = vector.multi_reduction <add>, %153, %cst_64 [1] : vector<32x32xf32> to vector<32xf32>
      %155 = vector.shape_cast %154 : vector<32xf32> to vector<32x1xf32>
      %156 = tpu.reciprocal %155 {approx = true} : vector<32x1xf32> -> vector<32x1xf32>
      %157 = vector.broadcast %156 : vector<32x1xf32> to vector<32x32xf32>
      %158 = arith.mulf %153, %157 : vector<32x32xf32>
      %159 = arith.truncf %158 : vector<32x32xf32> to vector<32x32xbf16>
      %cst_65 = arith.constant dense<0.000000e+00> : vector<32x16xf32>
      %160 = tpu.matmul %159, %145, %cst_65 {dimension_numbers = #tpu.dot_dimension_numbers<[1], [0], [0], [1], [0, 0, 1, 1], [], []>} : vector<32x32xbf16>, vector<32x16xbf16>, vector<32x16xf32> -> vector<32x16xf32>
      %161 = arith.index_cast %118 : i32 to index
      %c32 = arith.constant 32 : index
      %162 = vector.load %arg22[%161, %c32] : memref<64x192xbf16, #tpu.memory_space<vmem>>, vector<32x16xbf16>
      %163 = arith.index_cast %118 : i32 to index
      %c96 = arith.constant 96 : index
      %164 = vector.load %arg22[%163, %c96] : memref<64x192xbf16, #tpu.memory_space<vmem>>, vector<32x16xbf16>
      %165 = arith.index_cast %118 : i32 to index
      %c160 = arith.constant 160 : index
      %166 = vector.load %arg22[%165, %c160] : memref<64x192xbf16, #tpu.memory_space<vmem>>, vector<32x16xbf16>
      %cst_66 = arith.constant dense<0.000000e+00> : vector<32x32xf32>
      %167 = tpu.matmul %162, %164, %cst_66 {dimension_numbers = #tpu.dot_dimension_numbers<[1], [1], [0], [0], [0, 0, 1, 0], [], []>} : vector<32x16xbf16>, vector<32x16xbf16>, vector<32x32xf32> -> vector<32x32xf32>
      %cst_67 = arith.constant -1.000000e+30 : f32
      %168 = vector.broadcast %cst_67 : f32 to vector<32x32xf32>
      %169 = arith.select %45, %167, %168 : vector<32x32xi1>, vector<32x32xf32>
      %cst_68 = arith.constant dense<0xFF800000> : vector<32xf32>
      %170 = vector.multi_reduction <maximumf>, %169, %cst_68 [1] : vector<32x32xf32> to vector<32xf32>
      %171 = vector.shape_cast %170 : vector<32xf32> to vector<32x1xf32>
      %172 = vector.broadcast %171 : vector<32x1xf32> to vector<32x32xf32>
      %173 = arith.subf %169, %172 : vector<32x32xf32>
      %174 = math.exp %173 : vector<32x32xf32>
      %cst_69 = arith.constant dense<0.000000e+00> : vector<32xf32>
      %175 = vector.multi_reduction <add>, %174, %cst_69 [1] : vector<32x32xf32> to vector<32xf32>
      %176 = vector.shape_cast %175 : vector<32xf32> to vector<32x1xf32>
      %177 = tpu.reciprocal %176 {approx = true} : vector<32x1xf32> -> vector<32x1xf32>
      %178 = vector.broadcast %177 : vector<32x1xf32> to vector<32x32xf32>
      %179 = arith.mulf %174, %178 : vector<32x32xf32>
      %180 = arith.truncf %179 : vector<32x32xf32> to vector<32x32xbf16>
      %cst_70 = arith.constant dense<0.000000e+00> : vector<32x16xf32>
      %181 = tpu.matmul %180, %166, %cst_70 {dimension_numbers = #tpu.dot_dimension_numbers<[1], [0], [0], [1], [0, 0, 1, 1], [], []>} : vector<32x32xbf16>, vector<32x16xbf16>, vector<32x16xf32> -> vector<32x16xf32>
      %182 = arith.index_cast %118 : i32 to index
      %c48 = arith.constant 48 : index
      %183 = vector.load %arg22[%182, %c48] : memref<64x192xbf16, #tpu.memory_space<vmem>>, vector<32x16xbf16>
      %184 = arith.index_cast %118 : i32 to index
      %c112 = arith.constant 112 : index
      %185 = vector.load %arg22[%184, %c112] : memref<64x192xbf16, #tpu.memory_space<vmem>>, vector<32x16xbf16>
      %186 = arith.index_cast %118 : i32 to index
      %c176 = arith.constant 176 : index
      %187 = vector.load %arg22[%186, %c176] : memref<64x192xbf16, #tpu.memory_space<vmem>>, vector<32x16xbf16>
      %cst_71 = arith.constant dense<0.000000e+00> : vector<32x32xf32>
      %188 = tpu.matmul %183, %185, %cst_71 {dimension_numbers = #tpu.dot_dimension_numbers<[1], [1], [0], [0], [0, 0, 1, 0], [], []>} : vector<32x16xbf16>, vector<32x16xbf16>, vector<32x32xf32> -> vector<32x32xf32>
      %cst_72 = arith.constant -1.000000e+30 : f32
      %189 = vector.broadcast %cst_72 : f32 to vector<32x32xf32>
      %190 = arith.select %45, %188, %189 : vector<32x32xi1>, vector<32x32xf32>
      %cst_73 = arith.constant dense<0xFF800000> : vector<32xf32>
      %191 = vector.multi_reduction <maximumf>, %190, %cst_73 [1] : vector<32x32xf32> to vector<32xf32>
      %192 = vector.shape_cast %191 : vector<32xf32> to vector<32x1xf32>
      %193 = vector.broadcast %192 : vector<32x1xf32> to vector<32x32xf32>
      %194 = arith.subf %190, %193 : vector<32x32xf32>
      %195 = math.exp %194 : vector<32x32xf32>
      %cst_74 = arith.constant dense<0.000000e+00> : vector<32xf32>
      %196 = vector.multi_reduction <add>, %195, %cst_74 [1] : vector<32x32xf32> to vector<32xf32>
      %197 = vector.shape_cast %196 : vector<32xf32> to vector<32x1xf32>
      %198 = tpu.reciprocal %197 {approx = true} : vector<32x1xf32> -> vector<32x1xf32>
      %199 = vector.broadcast %198 : vector<32x1xf32> to vector<32x32xf32>
      %200 = arith.mulf %195, %199 : vector<32x32xf32>
      %201 = arith.truncf %200 : vector<32x32xf32> to vector<32x32xbf16>
      %cst_75 = arith.constant dense<0.000000e+00> : vector<32x16xf32>
      %202 = tpu.matmul %201, %187, %cst_75 {dimension_numbers = #tpu.dot_dimension_numbers<[1], [0], [0], [1], [0, 0, 1, 1], [], []>} : vector<32x32xbf16>, vector<32x16xbf16>, vector<32x16xf32> -> vector<32x16xf32>
      %203 = tpu.concatenate %139, %160, %181, %202 in 1 : vector<32x16xf32>, vector<32x16xf32>, vector<32x16xf32>, vector<32x16xf32> -> vector<32x64xf32>
      %204 = arith.index_cast %118 : i32 to index
      %c0_76 = arith.constant 0 : index
      %205 = vector.load %arg23[%204, %c0_76] : memref<64x64xf32, #tpu.memory_space<vmem>>, vector<32x64xf32>
      tpu.vector_store %arg23[%204, %c0_76], %203 {strides = array<i32>} : memref<64x64xf32, #tpu.memory_space<vmem>>, vector<32x64xf32>,
    }
    %c2_i32_19 = arith.constant 2 : i32
    %c0_20 = arith.constant 0 : index
    %c0_21 = arith.constant 0 : index
    %47 = vector.load %arg23[%c0_20, %c0_21] : memref<64x64xf32, #tpu.memory_space<vmem>>, vector<64x64xf32>
    %48 = arith.truncf %47 : vector<64x64xf32> to vector<64x64xbf16>
    %c0_22 = arith.constant 0 : index
    %c0_23 = arith.constant 0 : index
    %c0_24 = arith.constant 0 : index
    %49 = vector.load %arg5[%c0_22, %c0_23, %c0_24] : memref<1x64x64xbf16, #tpu.memory_space<vmem>>, vector<1x64x64xbf16>
    %50 = vector.shape_cast %49 : vector<1x64x64xbf16> to vector<64x64xbf16>
    %cst_25 = arith.constant dense<0.000000e+00> : vector<64x64xf32>
    %51 = tpu.matmul %48, %50, %cst_25 {dimension_numbers = #tpu.dot_dimension_numbers<[1], [0], [0], [1], [0, 0, 1, 1], [], []>} : vector<64x64xbf16>, vector<64x64xbf16>, vector<64x64xf32> -> vector<64x64xf32>
    %52 = arith.index_cast %arg1 : i32 to index
    %c0_26 = arith.constant 0 : index
    %c0_27 = arith.constant 0 : index
    %53 = vector.load %arg11[%52, %c0_26, %c0_27] : memref<2x1x64xf32, #tpu.memory_space<vmem>>, vector<1x1x64xf32>
    %54 = vector.shape_cast %53 : vector<1x1x64xf32> to vector<1x64xf32>
    %55 = vector.broadcast %54 : vector<1x64xf32> to vector<64x64xf32>
    %56 = arith.addf %51, %55 : vector<64x64xf32>
    %57 = arith.addf %3, %56 : vector<64x64xf32>
    %58 = arith.index_cast %arg1 : i32 to index
    %c0_28 = arith.constant 0 : index
    %c0_29 = arith.constant 0 : index
    %59 = vector.load %arg12[%58, %c0_28, %c0_29] : memref<2x1x64xf32, #tpu.memory_space<vmem>>, vector<1x1x64xf32>
    %60 = vector.shape_cast %59 : vector<1x1x64xf32> to vector<1x64xf32>
    %61 = arith.index_cast %arg1 : i32 to index
    %c0_30 = arith.constant 0 : index
    %c0_31 = arith.constant 0 : index
    %62 = vector.load %arg13[%61, %c0_30, %c0_31] : memref<2x1x64xf32, #tpu.memory_space<vmem>>, vector<1x1x64xf32>
    %63 = vector.shape_cast %62 : vector<1x1x64xf32> to vector<1x64xf32>
    %cst_32 = arith.constant dense<0.000000e+00> : vector<64xf32>
    %64 = vector.multi_reduction <add>, %57, %cst_32 [1] : vector<64x64xf32> to vector<64xf32>
    %65 = vector.shape_cast %64 : vector<64xf32> to vector<64x1xf32>
    %cst_33 = arith.constant 6.400000e+01 : f32
    %66 = vector.broadcast %cst_33 : f32 to vector<64x1xf32>
    %67 = arith.divf %65, %66 : vector<64x1xf32>
    %68 = vector.broadcast %67 : vector<64x1xf32> to vector<64x64xf32>
    %69 = arith.subf %57, %68 : vector<64x64xf32>
    %70 = arith.mulf %69, %69 : vector<64x64xf32>
    %cst_34 = arith.constant dense<0.000000e+00> : vector<64xf32>
    %71 = vector.multi_reduction <add>, %70, %cst_34 [1] : vector<64x64xf32> to vector<64xf32>
    %72 = vector.shape_cast %71 : vector<64xf32> to vector<64x1xf32>
    %cst_35 = arith.constant 6.400000e+01 : f32
    %73 = vector.broadcast %cst_35 : f32 to vector<64x1xf32>
    %74 = arith.divf %72, %73 : vector<64x1xf32>
    %75 = vector.broadcast %67 : vector<64x1xf32> to vector<64x64xf32>
    %76 = arith.subf %57, %75 : vector<64x64xf32>
    %cst_36 = arith.constant 9.99999974E-6 : f32
    %77 = vector.broadcast %cst_36 : f32 to vector<64x1xf32>
    %78 = arith.addf %74, %77 : vector<64x1xf32>
    %79 = math.rsqrt %78 : vector<64x1xf32>
    %80 = vector.broadcast %79 : vector<64x1xf32> to vector<64x64xf32>
    %81 = arith.mulf %76, %80 : vector<64x64xf32>
    %82 = vector.broadcast %60 : vector<1x64xf32> to vector<64x64xf32>
    %83 = arith.mulf %81, %82 : vector<64x64xf32>
    %84 = vector.broadcast %63 : vector<1x64xf32> to vector<64x64xf32>
    %85 = arith.addf %83, %84 : vector<64x64xf32>
    %86 = arith.truncf %85 : vector<64x64xf32> to vector<64x64xbf16>
    %c0_37 = arith.constant 0 : index
    %c0_38 = arith.constant 0 : index
    %c0_39 = arith.constant 0 : index
    %87 = vector.load %arg6[%c0_37, %c0_38, %c0_39] : memref<1x64x256xbf16, #tpu.memory_space<vmem>>, vector<1x64x256xbf16>
    %88 = vector.shape_cast %87 : vector<1x64x256xbf16> to vector<64x256xbf16>
    %cst_40 = arith.constant dense<0.000000e+00> : vector<64x256xf32>
    %89 = tpu.matmul %86, %88, %cst_40 {dimension_numbers = #tpu.dot_dimension_numbers<[1], [0], [0], [1], [0, 0, 1, 1], [], []>} : vector<64x64xbf16>, vector<64x256xbf16>, vector<64x256xf32> -> vector<64x256xf32>
    %90 = arith.index_cast %arg1 : i32 to index
    %c0_41 = arith.constant 0 : index
    %c0_42 = arith.constant 0 : index
    %91 = vector.load %arg14[%90, %c0_41, %c0_42] : memref<2x1x256xf32, #tpu.memory_space<vmem>>, vector<1x1x256xf32>
    %92 = vector.shape_cast %91 : vector<1x1x256xf32> to vector<1x256xf32>
    %93 = vector.broadcast %92 : vector<1x256xf32> to vector<64x256xf32>
    %94 = arith.addf %89, %93 : vector<64x256xf32>
    %cst_43 = arith.constant 1.702000e+00 : f32
    %95 = vector.broadcast %cst_43 : f32 to vector<64x256xf32>
    %96 = arith.mulf %95, %94 : vector<64x256xf32>
    %97 = arith.negf %96 : vector<64x256xf32>
    %98 = math.exp %97 : vector<64x256xf32>
    %cst_44 = arith.constant 1.000000e+00 : f32
    %99 = vector.broadcast %cst_44 : f32 to vector<64x256xf32>
    %100 = arith.addf %99, %98 : vector<64x256xf32>
    %101 = arith.divf %99, %100 : vector<64x256xf32>
    %102 = arith.mulf %94, %101 : vector<64x256xf32>
    %103 = arith.truncf %102 : vector<64x256xf32> to vector<64x256xbf16>
    %c0_45 = arith.constant 0 : index
    %c0_46 = arith.constant 0 : index
    %c0_47 = arith.constant 0 : index
    %104 = vector.load %arg7[%c0_45, %c0_46, %c0_47] : memref<1x256x64xbf16, #tpu.memory_space<vmem>>, vector<1x256x64xbf16>
    %105 = vector.shape_cast %104 : vector<1x256x64xbf16> to vector<256x64xbf16>
    %cst_48 = arith.constant dense<0.000000e+00> : vector<64x64xf32>
    %106 = tpu.matmul %103, %105, %cst_48 {dimension_numbers = #tpu.dot_dimension_numbers<[1], [0], [0], [1], [0, 0, 1, 1], [], []>} : vector<64x256xbf16>, vector<256x64xbf16>, vector<64x64xf32> -> vector<64x64xf32>
    %107 = arith.index_cast %arg1 : i32 to index
    %c0_49 = arith.constant 0 : index
    %c0_50 = arith.constant 0 : index
    %108 = vector.load %arg15[%107, %c0_49, %c0_50] : memref<2x1x64xf32, #tpu.memory_space<vmem>>, vector<1x1x64xf32>
    %109 = vector.shape_cast %108 : vector<1x1x64xf32> to vector<1x64xf32>
    %110 = vector.broadcast %109 : vector<1x64xf32> to vector<64x64xf32>
    %111 = arith.addf %106, %110 : vector<64x64xf32>
    %112 = arith.addf %57, %111 : vector<64x64xf32>
    %c0_51 = arith.constant 0 : index
    %c0_52 = arith.constant 0 : index
    %113 = vector.load %arg21[%c0_51, %c0_52] : memref<64x64xf32, #tpu.memory_space<vmem>>, vector<64x64xf32>
    tpu.vector_store %arg21[%c0_51, %c0_52], %112 {strides = array<i32>} : memref<64x64xf32, #tpu.memory_space<vmem>>, vector<64x64xf32>,
    %c1_i32_53 = arith.constant 1 : i32
    %114 = arith.cmpi eq, %arg1, %c1_i32_53 : i32
    %115 = arith.extui %114 : i1 to i32
    %c0_i32_54 = arith.constant 0 : i32
    %116 = arith.cmpi ne, %115, %c0_i32_54 : i32
    scf.if %116 {
      %c0_55 = arith.constant 0 : index
      %c0_56 = arith.constant 0 : index
      %117 = vector.load %arg16[%c0_55, %c0_56] : memref<1x64xf32, #tpu.memory_space<vmem>>, vector<1x64xf32>
      %c0_57 = arith.constant 0 : index
      %c0_58 = arith.constant 0 : index
      %118 = vector.load %arg17[%c0_57, %c0_58] : memref<1x64xf32, #tpu.memory_space<vmem>>, vector<1x64xf32>
      %cst_59 = arith.constant dense<0.000000e+00> : vector<64xf32>
      %119 = vector.multi_reduction <add>, %112, %cst_59 [1] : vector<64x64xf32> to vector<64xf32>
      %120 = vector.shape_cast %119 : vector<64xf32> to vector<64x1xf32>
      %cst_60 = arith.constant 6.400000e+01 : f32
      %121 = vector.broadcast %cst_60 : f32 to vector<64x1xf32>
      %122 = arith.divf %120, %121 : vector<64x1xf32>
      %123 = vector.broadcast %122 : vector<64x1xf32> to vector<64x64xf32>
      %124 = arith.subf %112, %123 : vector<64x64xf32>
      %125 = arith.mulf %124, %124 : vector<64x64xf32>
      %cst_61 = arith.constant dense<0.000000e+00> : vector<64xf32>
      %126 = vector.multi_reduction <add>, %125, %cst_61 [1] : vector<64x64xf32> to vector<64xf32>
      %127 = vector.shape_cast %126 : vector<64xf32> to vector<64x1xf32>
      %cst_62 = arith.constant 6.400000e+01 : f32
      %128 = vector.broadcast %cst_62 : f32 to vector<64x1xf32>
      %129 = arith.divf %127, %128 : vector<64x1xf32>
      %130 = vector.broadcast %122 : vector<64x1xf32> to vector<64x64xf32>
      %131 = arith.subf %112, %130 : vector<64x64xf32>
      %cst_63 = arith.constant 9.99999974E-6 : f32
      %132 = vector.broadcast %cst_63 : f32 to vector<64x1xf32>
      %133 = arith.addf %129, %132 : vector<64x1xf32>
      %134 = math.rsqrt %133 : vector<64x1xf32>
      %135 = vector.broadcast %134 : vector<64x1xf32> to vector<64x64xf32>
      %136 = arith.mulf %131, %135 : vector<64x64xf32>
      %137 = vector.broadcast %117 : vector<1x64xf32> to vector<64x64xf32>
      %138 = arith.mulf %136, %137 : vector<64x64xf32>
      %139 = vector.broadcast %118 : vector<1x64xf32> to vector<64x64xf32>
      %140 = arith.addf %138, %139 : vector<64x64xf32>
      %141 = arith.truncf %140 : vector<64x64xf32> to vector<64x64xbf16>
      %c0_64 = arith.constant 0 : index
      %c0_65 = arith.constant 0 : index
      %142 = vector.load %arg18[%c0_64, %c0_65] : memref<64x128xbf16, #tpu.memory_space<vmem>>, vector<64x128xbf16>
      %cst_66 = arith.constant dense<0.000000e+00> : vector<64x128xf32>
      %143 = tpu.matmul %141, %142, %cst_66 {dimension_numbers = #tpu.dot_dimension_numbers<[1], [0], [0], [1], [0, 0, 1, 1], [], []>} : vector<64x64xbf16>, vector<64x128xbf16>, vector<64x128xf32> -> vector<64x128xf32>
      %c0_67 = arith.constant 0 : index
      %c0_68 = arith.constant 0 : index
      %144 = vector.load %arg19[%c0_67, %c0_68] : memref<1x128xf32, #tpu.memory_space<vmem>>, vector<1x128xf32>
      %145 = vector.broadcast %144 : vector<1x128xf32> to vector<64x128xf32>
      %146 = arith.addf %143, %145 : vector<64x128xf32>
      %c0_69 = arith.constant 0 : index
      %c0_70 = arith.constant 0 : index
      %c0_71 = arith.constant 0 : index
      %147 = vector.load %arg20[%c0_69, %c0_70, %c0_71] : memref<1x64x128xf32, #tpu.memory_space<vmem>>, vector<1x64x128xf32>
      %148 = vector.shape_cast %147 : vector<1x64x128xf32> to vector<64x128xf32>
      %149 = vector.shape_cast %146 : vector<64x128xf32> to vector<1x64x128xf32>
      tpu.vector_store %arg20[%c0_69, %c0_70, %c0_71], %149 {strides = array<i32>} : memref<1x64x128xf32, #tpu.memory_space<vmem>>, vector<1x64x128xf32>,
    } else {
    }
    return
  }
  func.func @transform_0(%arg0: i32, %arg1: i32) -> (i32, i32, i32) {
    %c0_i32 = arith.constant 0 : i32
    %c0_i32_0 = arith.constant 0 : i32
    %c0_i32_1 = arith.constant 0 : i32
    return %arg0, %c0_i32, %c0_i32_0 : i32, i32, i32
  }
  func.func @transform_1(%arg0: i32, %arg1: i32) -> (i32, i32) {
    %c0_i32 = arith.constant 0 : i32
    %c0_i32_0 = arith.constant 0 : i32
    %c0_i32_1 = arith.constant 0 : i32
    return %c0_i32, %c0_i32_0 : i32, i32
  }
  func.func @transform_2(%arg0: i32, %arg1: i32) -> (i32, i32, i32) {
    %c0_i32 = arith.constant 0 : i32
    %c0_i32_0 = arith.constant 0 : i32
    %c0_i32_1 = arith.constant 0 : i32
    return %arg1, %c0_i32, %c0_i32_0 : i32, i32, i32
  }
  func.func @transform_3(%arg0: i32, %arg1: i32) -> (i32, i32, i32) {
    %c0_i32 = arith.constant 0 : i32
    %c0_i32_0 = arith.constant 0 : i32
    %c0_i32_1 = arith.constant 0 : i32
    return %arg1, %c0_i32, %c0_i32_0 : i32, i32, i32
  }
  func.func @transform_4(%arg0: i32, %arg1: i32) -> (i32, i32, i32) {
    %c0_i32 = arith.constant 0 : i32
    %c0_i32_0 = arith.constant 0 : i32
    %c0_i32_1 = arith.constant 0 : i32
    return %arg1, %c0_i32, %c0_i32_0 : i32, i32, i32
  }
  func.func @transform_5(%arg0: i32, %arg1: i32) -> (i32, i32, i32) {
    %c0_i32 = arith.constant 0 : i32
    %c0_i32_0 = arith.constant 0 : i32
    %c0_i32_1 = arith.constant 0 : i32
    return %arg1, %c0_i32, %c0_i32_0 : i32, i32, i32
  }
  func.func @transform_6(%arg0: i32, %arg1: i32) -> (i32, i32, i32) {
    %c0_i32 = arith.constant 0 : i32
    %c0_i32_0 = arith.constant 0 : i32
    %c0_i32_1 = arith.constant 0 : i32
    %c0_i32_2 = arith.constant 0 : i32
    return %c0_i32, %c0_i32_0, %c0_i32_1 : i32, i32, i32
  }
  func.func @transform_7(%arg0: i32, %arg1: i32) -> (i32, i32, i32) {
    %c0_i32 = arith.constant 0 : i32
    %c0_i32_0 = arith.constant 0 : i32
    %c0_i32_1 = arith.constant 0 : i32
    %c0_i32_2 = arith.constant 0 : i32
    return %c0_i32, %c0_i32_0, %c0_i32_1 : i32, i32, i32
  }
  func.func @transform_8(%arg0: i32, %arg1: i32) -> (i32, i32, i32) {
    %c0_i32 = arith.constant 0 : i32
    %c0_i32_0 = arith.constant 0 : i32
    %c0_i32_1 = arith.constant 0 : i32
    %c0_i32_2 = arith.constant 0 : i32
    return %c0_i32, %c0_i32_0, %c0_i32_1 : i32, i32, i32
  }
  func.func @transform_9(%arg0: i32, %arg1: i32) -> (i32, i32, i32) {
    %c0_i32 = arith.constant 0 : i32
    %c0_i32_0 = arith.constant 0 : i32
    %c0_i32_1 = arith.constant 0 : i32
    %c0_i32_2 = arith.constant 0 : i32
    return %c0_i32, %c0_i32_0, %c0_i32_1 : i32, i32, i32
  }
  func.func @transform_10(%arg0: i32, %arg1: i32) -> (i32, i32, i32) {
    %c0_i32 = arith.constant 0 : i32
    %c0_i32_0 = arith.constant 0 : i32
    %c0_i32_1 = arith.constant 0 : i32
    %c0_i32_2 = arith.constant 0 : i32
    return %c0_i32, %c0_i32_0, %c0_i32_1 : i32, i32, i32
  }
  func.func @transform_11(%arg0: i32, %arg1: i32) -> (i32, i32, i32) {
    %c0_i32 = arith.constant 0 : i32
    %c0_i32_0 = arith.constant 0 : i32
    %c0_i32_1 = arith.constant 0 : i32
    %c0_i32_2 = arith.constant 0 : i32
    return %c0_i32, %c0_i32_0, %c0_i32_1 : i32, i32, i32
  }
  func.func @transform_12(%arg0: i32, %arg1: i32) -> (i32, i32, i32) {
    %c0_i32 = arith.constant 0 : i32
    %c0_i32_0 = arith.constant 0 : i32
    %c0_i32_1 = arith.constant 0 : i32
    %c0_i32_2 = arith.constant 0 : i32
    return %c0_i32, %c0_i32_0, %c0_i32_1 : i32, i32, i32
  }
  func.func @transform_13(%arg0: i32, %arg1: i32) -> (i32, i32, i32) {
    %c0_i32 = arith.constant 0 : i32
    %c0_i32_0 = arith.constant 0 : i32
    %c0_i32_1 = arith.constant 0 : i32
    %c0_i32_2 = arith.constant 0 : i32
    return %c0_i32, %c0_i32_0, %c0_i32_1 : i32, i32, i32
  }
  func.func @transform_14(%arg0: i32, %arg1: i32) -> (i32, i32) {
    %c0_i32 = arith.constant 0 : i32
    %c0_i32_0 = arith.constant 0 : i32
    %c0_i32_1 = arith.constant 0 : i32
    return %c0_i32, %c0_i32_0 : i32, i32
  }
  func.func @transform_15(%arg0: i32, %arg1: i32) -> (i32, i32) {
    %c0_i32 = arith.constant 0 : i32
    %c0_i32_0 = arith.constant 0 : i32
    %c0_i32_1 = arith.constant 0 : i32
    return %c0_i32, %c0_i32_0 : i32, i32
  }
  func.func @transform_16(%arg0: i32, %arg1: i32) -> (i32, i32) {
    %c0_i32 = arith.constant 0 : i32
    %c0_i32_0 = arith.constant 0 : i32
    %c0_i32_1 = arith.constant 0 : i32
    return %c0_i32, %c0_i32_0 : i32, i32
  }
  func.func @transform_17(%arg0: i32, %arg1: i32) -> (i32, i32) {
    %c0_i32 = arith.constant 0 : i32
    %c0_i32_0 = arith.constant 0 : i32
    %c0_i32_1 = arith.constant 0 : i32
    return %c0_i32, %c0_i32_0 : i32, i32
  }
  func.func @transform_18(%arg0: i32, %arg1: i32) -> (i32, i32, i32) {
    %c0_i32 = arith.constant 0 : i32
    %c0_i32_0 = arith.constant 0 : i32
    %c0_i32_1 = arith.constant 0 : i32
    return %arg0, %c0_i32, %c0_i32_0 : i32, i32, i32
  }
}

</mosaic_0001>

<bundles_post_ra>
// kernel: mim_head_forward.2
= control target key start
LH: loop header
LB: loop body
LE: loop exit
PB: predicated region body
PF: predicated region fallthrough
CT: control target
= control target key end

     0   :  { %vm43_vm0 = vcmask 261120   ;;  %vm101_vm1 = vcmask 517120   ;;  %vm98_vm2 = vcmask 523264   ;;  %s173_s1 = inlined_call_operand.vmem [shape: bf16[32,64], index: 1, kind: input, shape index: {}]   ;;  %s174_s0 = inlined_call_operand.vmem [shape: f32[18,32], index: 0, kind: input, shape index: {}]   ;;  %s175_s2 = inlined_call_operand.vmem [shape: f32[1,64], index: 2, kind: input, shape index: {}]   ;;  %s176_s3 = inlined_call_operand.vmem [shape: f32[18,64], index: 3, kind: output, shape index: {}]  }
   0x1   :  { %v124_v0 = vld [vmem:[%s173_s1 + $0x8] sm:$0xff]   ;;  %v125_v1 = vld [vmem:[%s173_s1] sm:$0xff]   ;;  %v17_v4 = vld [vmem:[%s174_s0 + $0x10] sm:$0x3] }
   0x2   :  { %116 = vmatprep.subr.bf16.mxu0 %v124_v0  ;;  %v15_v2 = vld [vmem:[%s174_s0] sm:$0xff]  ;;  %v16_v3 = vld [vmem:[%s174_s0 + $0x8] sm:$0xff]  ;;  %v19_v6 = vpack.c.bf16 %v17_v4, %v17_v4 }
   0x3   :  { %117 = vmatpush3.bf16.msra.mxu0 %v124_v0  ;;  %v18_v5 = vpack.c.bf16 %v16_v3, %v15_v2  ;;  %v107_v7 = vld [vmem:[%s175_s2] ss:$0 sm:$0xff] }
   0x4   :  { %118 = vmatprep.subr.bf16.mxu0 %v125_v1 }
   0x5   :  { %120 = vmatprep.mubr.msk.bf16.mxu0 %vm43_vm0, %v18_v5 }
   0x7   :  { %119 = vmatpush3.bf16.msra.mxu0 %v125_v1 }
   0xa   :  { %121 = vmatmul.mubr.msk.bf16.vlgmr.msra.gmra.mxu0 %vm43_vm0, %v19_v6 }
  0xca   :  { %v122_v8 = vpop.f32.mrf.mxu0 }
  0xcb   :  { %v93_v9 = vadd.f32 %v122_v8, %v107_v7 }
  0xcc   :  { %v84_v10 = vpop.f32.mrf.mxu0 }
  0xcd   :  { %102 = vst.msk [vmem:[%s176_s3 + $0x10] sm:$0x3] %vm101_vm1, %v93_v9  ;;  %v85_v11 = vadd.f32 %v107_v7, %v84_v10 }
  0xce   :  { %v123_v12 = vpop.f32.mrf.mxu0 }
  0xcf   :  { %99 = vst.msk [vmem:[%s176_s3] sm:$0xff] %vm98_vm2, %v85_v11 }
  0xd0   :  { %v87_v13 = vpop.f32.mrf.mxu0 }
  0xd1   :  { %v88_v14 = vadd.f32 %v107_v7, %v87_v13 }
  0xd3   :  { %100 = vst.msk [vmem:[%s176_s3 + $0x8] sm:$0xff] %vm98_vm2, %v88_v14 }

// kernel: mim_head_forward.3
= control target key start
LH: loop header
LB: loop body
LE: loop exit
PB: predicated region body
PF: predicated region fallthrough
CT: control target
= control target key end

     0   :  { %s3813_s27 = smov 0   ;;  %s3815_s28 = smov 0   ;;  %s4676_s0 = inlined_call_operand.vmem [shape: f32[1,64,64], index: 0, kind: input, shape index: {}]   ;;  %s4677_s1 = inlined_call_operand.vmem [shape: f32[64,64], index: 1, kind: input, shape index: {}]   ;;  %s4678_s2 = inlined_call_operand.vmem [shape: bf16[2,64,192], index: 2, kind: input, shape index: {}]   ;;  %s4679_s3 = inlined_call_operand.vmem [shape: bf16[2,64,64], index: 3, kind: input, shape index: {}]   ;;  %s4680_s4 = inlined_call_operand.vmem [shape: bf16[2,64,256], index: 4, kind: input, shape index: {}]   ;;  %s4681_s5 = inlined_call_operand.vmem [shape: bf16[2,256,64], index: 5, kind: input, shape index: {}]   ;;  %s4682_s6 = inlined_call_operand.vmem [shape: f32[2,1,64], index: 6, kind: input, shape index: {}]   ;;  %s4683_s7 = inlined_call_operand.vmem [shape: f32[2,1,64], index: 7, kind: input, shape index: {}]   ;;  %s4684_s8 = inlined_call_operand.vmem [shape: f32[2,1,192], index: 8, kind: input, shape index: {}]   ;;  %s4685_s9 = inlined_call_operand.vmem [shape: f32[2,1,64], index: 9, kind: input, shape index: {}]   ;;  %s4686_s10 = inlined_call_operand.vmem [shape: f32[2,1,64], index: 10, kind: input, shape index: {}]   ;;  %s4687_s11 = inlined_call_operand.vmem [shape: f32[2,1,64], index: 11, kind: input, shape index: {}]   ;;  %s4688_s12 = inlined_call_operand.vmem [shape: f32[2,1,256], index: 12, kind: input, shape index: {}]   ;;  %s4689_s13 = inlined_call_operand.vmem [shape: f32[2,1,64], index: 13, kind: input, shape index: {}]   ;;  %s4690_s14 = inlined_call_operand.vmem [shape: f32[1,64], index: 14, kind: input, shape index: {}]   ;;  %s4691_s15 = inlined_call_operand.vmem [shape: f32[1,64], index: 15, kind: input, shape index: {}]   ;;  %s4692_s16 = inlined_call_operand.vmem [shape: bf16[64,128], index: 16, kind: input, shape index: {}]   ;;  %s4693_s17 = inlined_call_operand.vmem [shape: f32[1,128], index: 17, kind: input, shape index: {}]   ;;  %s4694_s18 = inlined_call_operand.vmem [shape: f32[1,64,128], index: 18, kind: output, shape index: {}]  }
   0x1   :  { %4700 = sst [smem:[#allocation8_spill]] %s4676_s0  ;;  %s3817_s29 = smov 0  }
   0x2   :  { %4701 = sst [smem:[#allocation9_spill]] %s4677_s1 }
   0x3   :  { %4702 = sst [smem:[#allocation10_spill]] %s4678_s2 }
   0x4   :  { %4703 = sst [smem:[#allocation11_spill]] %s4691_s15 }
   0x5   :  { %4704 = sst [smem:[#allocation12_spill]] %s4693_s17 }
   0x6   :  { %4705 = sst [smem:[#allocation13_spill]] %s4694_s18 }
   0x7 LB: > { %4706 = sst [smem:[#allocation5_spill]] %s3700_s28  ;;  %s37_s30 = sadd.s32 1, %s3700_s28  ;;  %s3704_s29 = sphi %s3817_s29, %s28_s29   ;;  %s3700_s28 = sphi %s3815_s28, %s4720_s28   ;;  %s3696_s27 = sphi %s3813_s27, %s4719_s27  }
   0x8   : > { %4707 = sst [smem:[#allocation6_spill]] %s3704_s29  ;;  %p3062_p0 = scmp.ge.s32.totalorder %s3704_s29, 1 }
   0x9   : > { %p38_p1 = scmp.ge.s32.totalorder %s37_s30, 2  ;;  %p564_p2 = scmp.lt.s32.totalorder %s3704_s29, 3 }
   0xb   : > { %s4722_s30 = smov (%p38_p1, %s37_s30), 0  ;;  %p565_p3 = pnand %p3062_p0, %p564_p2 }
   0xc   : > { %4708 = sst [smem:[#allocation7_spill]] %s4722_s30  ;;  %p643_p4 = scmp.lt.s32.totalorder (!%p565_p3), %s3696_s27, 1 }
   0xd   : > { %568 = sbr.rel (%p565_p3) target bundleno = 4690 (0x1252), region = 92  ;;  %s4709_s22 = sld [smem:[#allocation10_spill]] (!%p565_p3) }
   0xe   : > { %p3071_p5 = scmp.ne.s32.totalorder (!%p565_p3), %s3696_s27, 0 }
  0x12   : > { %s644_s0 = scalar_select %p643_p4, %s3696_s27, 1 }
  0x13   : > { %672 = sbr.rel (%p3071_p5) target bundleno = 36 (0x24), region = 96  ;;  %s4711_s24 = sld [smem:[#allocation9_spill]] (!%p3071_p5) }
  0x14   : > { %s3189_s19 = sshll.u32 %s644_s0, 6  ;;  %s3190_s1 = sshll.u32 %s644_s0, 5 }
  0x15   : > { %s3838_s2 = scalar_lea.vmem %s4709_s22, %s3189_s19  ;;  %s3843_s25 = scalar_lea.vmem %s4679_s3, %s3190_s1 }
  0x16   : > { %s3848_s28 = scalar_lea.vmem %s4680_s4, %s3189_s19  ;;  %s3192_s29 = sshll.u32 %s644_s0, 7 }
  0x17   : > { %s3853_s15 = scalar_lea.vmem %s4681_s5, %s3192_s29  ;;  %s4710_s22 = sld [smem:[#allocation8_spill]] (!%p3071_p5) }
  0x18   : > { %vm697_vm0 = vcmask 523264  }
  0x19   : > { %v681_v1 = vld [vmem:[%s4711_s24] sm:$0xff]  ;;  %v682_v4 = vld [vmem:[%s4711_s24 + $0x8] sm:$0xff]  ;;  %v683_v6 = vld [vmem:[%s4711_s24 + $0x10] sm:$0xff] }
  0x1a   : > { %v684_v10 = vld [vmem:[%s4711_s24 + $0x18] sm:$0xff]  ;;  %v685_v13 = vld [vmem:[%s4711_s24 + $0x20] sm:$0xff]  ;;  %v686_v15 = vld [vmem:[%s4711_s24 + $0x28] sm:$0xff] }
  0x1b   : > { %v687_v19 = vld [vmem:[%s4711_s24 + $0x30] sm:$0xff]  ;;  %v688_v22 = vld [vmem:[%s4711_s24 + $0x38] sm:$0xff] }
  0x1d   : > { %v673_v0 = vld [vmem:[%s4710_s22] sm:$0xff]  ;;  %v674_v2 = vld [vmem:[%s4710_s22 + $0x8] sm:$0xff]  ;;  %v675_v5 = vld [vmem:[%s4710_s22 + $0x10] sm:$0xff] }
  0x1e   : > { %v689_v3 = vadd.f32 %v681_v1, %v673_v0  ;;  %v690_v7 = vadd.f32 %v682_v4, %v674_v2  ;;  %v691_v8 = vadd.f32 %v683_v6, %v675_v5  ;;  %v676_v9 = vld [vmem:[%s4710_s22 + $0x18] sm:$0xff]  ;;  %v677_v11 = vld [vmem:[%s4710_s22 + $0x20] sm:$0xff]  ;;  %v678_v14 = vld [vmem:[%s4710_s22 + $0x28] sm:$0xff] }
  0x1f   : > { %v692_v12 = vadd.f32 %v684_v10, %v676_v9  ;;  %v693_v16 = vadd.f32 %v685_v13, %v677_v11  ;;  %v694_v17 = vadd.f32 %v686_v15, %v678_v14  ;;  %v679_v18 = vld [vmem:[%s4710_s22 + $0x30] sm:$0xff]  ;;  %v680_v20 = vld [vmem:[%s4710_s22 + $0x38] sm:$0xff] }
  0x20   : > { %698 = vst.msk [vmem:[#allocation2] sm:$0xff] %vm697_vm0, %v689_v3  ;;  %699 = vst.msk [vmem:[#allocation2 + $0x8] sm:$0xff] %vm697_vm0, %v690_v7  ;;  %v695_v21 = vadd.f32 %v687_v19, %v679_v18  ;;  %v696_v23 = vadd.f32 %v688_v22, %v680_v20 }
  0x21   : > { %700 = vst.msk [vmem:[#allocation2 + $0x10] sm:$0xff] %vm697_vm0, %v691_v8  ;;  %701 = vst.msk [vmem:[#allocation2 + $0x18] sm:$0xff] %vm697_vm0, %v692_v12 }
  0x22   : > { %702 = vst.msk [vmem:[#allocation2 + $0x20] sm:$0xff] %vm697_vm0, %v693_v16  ;;  %703 = vst.msk [vmem:[#allocation2 + $0x28] sm:$0xff] %vm697_vm0, %v694_v17 }
  0x23   : > { %704 = vst.msk [vmem:[#allocation2 + $0x30] sm:$0xff] %vm697_vm0, %v695_v21  ;;  %705 = vst.msk [vmem:[#allocation2 + $0x38] sm:$0xff] %vm697_vm0, %v696_v23 }
  0x24 PF: > { %vm718_vm1 = vcmask 523264   ;;  %v3450_v16 = vld [vmem:[%s3838_s2 + $0x34] ss:$8 sps:$4 sm:$0xff]   ;;  %v3452_v17 = vld [vmem:[%s3838_s2 + $0x30] ss:$8 sps:$4 sm:$0xff]   ;;  %v3710_v23 = vmov 0   ;;  %s714_s20 = scalar_lea.vmem %s4682_s6, %s3696_s27  ;;  %s716_s23 = scalar_lea.vmem %s4683_s7, %s3696_s27 }
  0x25   : > { %938 = vmatprep.subr.bf16.mxu0 %v3450_v16  ;;  %3386 = vmatprep.subr.bf16.mxu1 %v3450_v16  ;;  %v3453_v18 = vld [vmem:[%s3838_s2 + $0x24] ss:$8 sps:$4 sm:$0xff]   ;;  %v3455_v19 = vld [vmem:[%s3838_s2 + $0x20] ss:$8 sps:$4 sm:$0xff]   ;;  %v3456_v20 = vld [vmem:[%s3838_s2 + $0x14] ss:$8 sps:$4 sm:$0xff]  }
  0x26   : > { %939 = vmatpush1.bf16.msra.mxu0 %v3452_v17  ;;  %3390 = vmatpush1.bf16.msra.mxu1 %v3452_v17  ;;  %v3458_v21 = vld [vmem:[%s3838_s2 + $0x10] ss:$8 sps:$4 sm:$0xff]   ;;  %v3459_v22 = vld [vmem:[%s3838_s2 + $0x4] ss:$8 sps:$4 sm:$0xff]   ;;  %s3074_s30 = sshll.u32 %s3696_s27, 1  ;;  %vm1051_vm3 = vcmask 1043456  }
  0x27   : > { %v3912_v24 = vld [vmem:[#allocation2] sm:$0xff]  ;;  %v3916_v26 = vld [vmem:[#allocation2 + $0x8] sm:$0xff]  ;;  %940 = vmatprep.subr.bf16.mxu0 %v3453_v18  ;;  %3387 = vmatprep.subr.bf16.mxu1 %v3453_v18  ;;  %s865_s18 = scalar_lea.vmem %s4684_s8, %s3074_s30  ;;  %vm1052_vm4 = vcmask 523268   ;;  %s4061_s29 = smov 0  }
  0x28   : > { %v719_v27 = vsel %vm718_vm1, %v3912_v24, 0.0  ;;  %v3924_v30 = vld [vmem:[#allocation2 + $0x10] sm:$0xff]  ;;  %v3926_v31 = vld [vmem:[#allocation2 + $0x18] sm:$0xff]  ;;  %v722_v32 = vsel %vm718_vm1, %v3916_v26, 0.0  ;;  %962 = vmatprep.mubr.bf16.mxu0 %v3710_v23  ;;  %982 = vmatprep.mubr.bf16.mxu1 %v3710_v23  ;;  %vm4041_vm5 = vmor %vm1052_vm4, %vm1051_vm3 }
  0x29   : > { %v3914_v25 = vld [vmem:[#allocation2 + $0x20] sm:$0xff]  ;;  %v3922_v29 = vld [vmem:[#allocation2 + $0x28] sm:$0xff]  ;;  %720 = vadd.xlane.f32.xlu0 %v719_v27  ;;  %v725_v34 = vsel %vm718_vm1, %v3924_v30, 0.0  ;;  %v728_v35 = vsel %vm718_vm1, %v3926_v31, 0.0 }
  0x2a   : > { %v731_v28 = vsel %vm718_vm1, %v3914_v25, 0.0  ;;  %v734_v33 = vsel %vm718_vm1, %v3922_v29, 0.0  ;;  %v3936_v36 = vld [vmem:[#allocation2 + $0x30] sm:$0xff]  ;;  %v3938_v37 = vld [vmem:[#allocation2 + $0x38] sm:$0xff]  ;;  %941 = vmatpush1.bf16.msra.mxu0 %v3455_v19  ;;  %3391 = vmatpush1.bf16.msra.mxu1 %v3455_v19  ;;  %v3461_v27 = vld [vmem:[%s3838_s2] ss:$8 sps:$4 sm:$0xff]  }
  0x2b   : > { %732 = vadd.xlane.f32.xlu1 %v731_v28  ;;  %v737_v38 = vsel %vm718_vm1, %v3936_v36, 0.0  ;;  %v740_v39 = vsel %vm718_vm1, %v3938_v37, 0.0  ;;  %942 = vmatprep.subr.bf16.mxu0 %v3456_v20 }
  0x2c   : > { %3388 = vmatprep.subr.bf16.mxu1 %v3456_v20 }
  0x2d   : > { %723 = vadd.xlane.f32.xlu0 %v722_v32 }
  0x2e   : > { %943 = vmatpush1.bf16.msra.mxu0 %v3458_v21  ;;  %3392 = vmatpush1.bf16.msra.mxu1 %v3458_v21 }
  0x2f   : > { %735 = vadd.xlane.f32.xlu1 %v734_v33  ;;  %944 = vmatprep.subr.bf16.mxu0 %v3459_v22 }
  0x30   : > { %3389 = vmatprep.subr.bf16.mxu1 %v3459_v22 }
  0x31   : > { %726 = vadd.xlane.f32.xlu0 %v725_v34 }
  0x32   : > { %945 = vmatpush1.bf16.msra.mxu0 %v3461_v27  ;;  %3393 = vmatpush1.bf16.msra.mxu1 %v3461_v27 }
  0x33   : > { %729 = vadd.xlane.f32.xlu1 %v728_v35 }
  0x35   : > { %738 = vadd.xlane.f32.xlu0 %v737_v38 }
  0x37   : > { %741 = vadd.xlane.f32.xlu1 %v740_v39 }
  0xb2   : > { %v721_v40 = vpop.xlane.xlu0 %720 }
  0xb3   : > { %v744_v42 = vmul.f32 0.015625, %v721_v40 }
  0xb4   : > { %v733_v41 = vpop.xlane.xlu1 %732 }
  0xb5   : > { %v748_v43 = vmul.f32 0.015625, %v733_v41  ;;  %v3945_v44 = vsub.f32 %v3912_v24, %v744_v42 }
  0xb6   : > { %v724_v46 = vpop.xlane.xlu0 %723 }
  0xb7   : > { %v3948_v45 = vsub.f32 %v3914_v25, %v748_v43  ;;  %v745_v48 = vmul.f32 0.015625, %v724_v46  ;;  %v760_v50 = vmul.f32 %v3945_v44, %v3945_v44 }
  0xb8   : > { %v736_v47 = vpop.xlane.xlu1 %735 }
  0xb9   : > { %v749_v49 = vmul.f32 0.015625, %v736_v47  ;;  %v764_v51 = vmul.f32 %v3948_v45, %v3948_v45  ;;  %v3955_v52 = vsub.f32 %v3916_v26, %v745_v48  ;;  %v768_v54 = vsel %vm718_vm1, %v760_v50, 0.0 }
  0xba   : > { %769 = vadd.xlane.f32.xlu0 %v768_v54  ;;  %v727_v55 = vpop.xlane.xlu0 %726 }
  0xbb   : > { %v3958_v53 = vsub.f32 %v3922_v29, %v749_v49  ;;  %v780_v57 = vsel %vm718_vm1, %v764_v51, 0.0  ;;  %v746_v58 = vmul.f32 0.015625, %v727_v55  ;;  %v761_v60 = vmul.f32 %v3955_v52, %v3955_v52 }
  0xbc   : > { %v730_v56 = vpop.xlane.xlu1 %729 }
  0xbd   : > { %v747_v59 = vmul.f32 0.015625, %v730_v56  ;;  %v765_v61 = vmul.f32 %v3958_v53, %v3958_v53  ;;  %v3967_v62 = vsub.f32 %v3924_v30, %v746_v58  ;;  %v771_v0 = vsel %vm718_vm1, %v761_v60, 0.0 }
  0xbe   : > { %781 = vadd.xlane.f32.xlu0 %v780_v57  ;;  %772 = vadd.xlane.f32.xlu1 %v771_v0  ;;  %v739_v1 = vpop.xlane.xlu0 %738 }
  0xbf   : > { %v3970_v63 = vsub.f32 %v3926_v31, %v747_v59  ;;  %v783_v3 = vsel %vm718_vm1, %v765_v61, 0.0  ;;  %v750_v4 = vmul.f32 0.015625, %v739_v1  ;;  %v762_v6 = vmul.f32 %v3967_v62, %v3967_v62  ;;  %v3072_v1 = vld [vmem:[%s714_s20] ss:$0 sm:$0xff] }
  0xc0   : > { %v742_v2 = vpop.xlane.xlu1 %741 }
  0xc1   : > { %v751_v5 = vmul.f32 0.015625, %v742_v2  ;;  %v763_v7 = vmul.f32 %v3970_v63, %v3970_v63  ;;  %v3979_v8 = vsub.f32 %v3936_v36, %v750_v4  ;;  %v774_v10 = vsel %vm718_vm1, %v762_v6, 0.0  ;;  %v3073_v6 = vld [vmem:[%s716_s23] ss:$0 sm:$0xff] }
  0xc2   : > { %784 = vadd.xlane.f32.xlu1 %v783_v3  ;;  %775 = vadd.xlane.f32.xlu0 %v774_v10 }
  0xc3   : > { %v3982_v9 = vsub.f32 %v3938_v37, %v751_v5  ;;  %v777_v11 = vsel %vm718_vm1, %v763_v7, 0.0  ;;  %v766_v12 = vmul.f32 %v3979_v8, %v3979_v8 }
  0xc5   : > { %v767_v13 = vmul.f32 %v3982_v9, %v3982_v9  ;;  %v786_v14 = vsel %vm718_vm1, %v766_v12, 0.0 }
  0xc6   : > { %778 = vadd.xlane.f32.xlu1 %v777_v11  ;;  %787 = vadd.xlane.f32.xlu0 %v786_v14 }
  0xc7   : > { %v789_v15 = vsel %vm718_vm1, %v767_v13, 0.0 }
  0xca   : > { %790 = vadd.xlane.f32.xlu1 %v789_v15 }
 0x143   : > { %v770_v28 = vpop.xlane.xlu0 %769 }
 0x144   : > { %v792_v32 = vmul.f32 0.015625, %v770_v28 }
 0x146   : > { %v800_v33 = vadd.f32 1e-05, %v792_v32 }
 0x147   : > { %v773_v34 = vpop.xlane.xlu1 %772  ;;  %v782_v35 = vpop.xlane.xlu0 %781 }
 0x148   : > { %3462 = vrsqrt.f32 %v800_v33  ;;  %v793_v38 = vmul.f32 0.015625, %v773_v34  ;;  %v796_v39 = vmul.f32 0.015625, %v782_v35 }
 0x14a   : > { %v801_v40 = vadd.f32 1e-05, %v793_v38  ;;  %v804_v41 = vadd.f32 1e-05, %v796_v39 }
 0x14b   : > { %v785_v42 = vpop.xlane.xlu1 %784  ;;  %v776_v43 = vpop.xlane.xlu0 %775 }
 0x14c   : > { %3464 = vrsqrt.f32 %v801_v40  ;;  %v797_v46 = vmul.f32 0.015625, %v785_v42  ;;  %v794_v47 = vmul.f32 0.015625, %v776_v43 }
 0x14d   : > { %3466 = vrsqrt.f32 %v804_v41  ;;  %v868_v41 = vlaneseq }
 0x14e   : > { %v805_v48 = vadd.f32 1e-05, %v797_v46  ;;  %v802_v49 = vadd.f32 1e-05, %v794_v47  ;;  %v866_v47 = vld [vmem:[%s865_s18] sm:$0x3] }
 0x14f   : > { %v779_v50 = vpop.xlane.xlu1 %778  ;;  %v788_v51 = vpop.xlane.xlu0 %787  ;;  %v4024_v42 = vand.u32 127, %v868_v41  ;;  %v4028_v43 = vshrl.u32 %v868_v41, 7 }
 0x150   : > { %3468 = vrsqrt.f32 %v805_v48  ;;  %v795_v54 = vmul.f32 0.015625, %v779_v50  ;;  %v798_v55 = vmul.f32 0.015625, %v788_v51 }
 0x151   : > { %3470 = vrsqrt.f32 %v802_v49  ;;  %vm1064_vm2 = vcmp.lt.s32.totalorder %v4024_v42, 17  ;;  %v874_v46 = vsub.s32 1, %v4028_v43 }
 0x152   : > { %v803_v56 = vadd.f32 1e-05, %v795_v54  ;;  %v806_v57 = vadd.f32 1e-05, %v798_v55 }
 0x153   : > { %v791_v58 = vpop.xlane.xlu1 %790  ;;  %v875_v49 = vrot.slane %v866_v47, %v874_v46 }
 0x154   : > { %3472 = vrsqrt.f32 %v803_v56  ;;  %v799_v59 = vmul.f32 0.015625, %v791_v58 }
 0x155   : > { %v3463_v60 = vpop.eup %3462  ;;  %3474 = vrsqrt.f32 %v806_v57 }
 0x156   : > { %v807_v61 = vadd.f32 1e-05, %v799_v59  ;;  %v816_v0 = vmul.f32 %v3463_v60, %v3945_v44 }
 0x158   : > { %3476 = vrsqrt.f32 %v807_v61  ;;  %v830_v5 = vmul.f32 %v3072_v1, %v816_v0 }
 0x159   : > { %v3465_v2 = vpop.eup %3464 }
 0x15a   : > { %v3467_v3 = vpop.eup %3466  ;;  %v817_v4 = vmul.f32 %v3465_v2, %v3955_v52  ;;  %v844_v13 = vadd.f32 %v3073_v6, %v830_v5 }
 0x15b   : > { %v820_v7 = vmul.f32 %v3467_v3, %v3948_v45 }
 0x15c   : > { %v831_v10 = vmul.f32 %v3072_v1, %v817_v4 }
 0x15d   : > { %v3469_v11 = vpop.eup %3468  ;;  %v834_v15 = vmul.f32 %v3072_v1, %v820_v7 }
 0x15e   : > { %v3471_v12 = vpop.eup %3470  ;;  %v845_v14 = vadd.f32 %v3073_v6, %v831_v10  ;;  %v821_v44 = vmul.f32 %v3469_v11, %v3958_v53 }
 0x15f   : > { %v818_v16 = vmul.f32 %v3471_v12, %v3967_v62  ;;  %v848_v52 = vadd.f32 %v3073_v6, %v834_v15 }
 0x160   : > { %v852_v17 = vpack.c.bf16 %v845_v14, %v844_v13  ;;  %v835_v18 = vmul.f32 %v3072_v1, %v821_v44 }
 0x161   : > { %v3473_v19 = vpop.eup %3472  ;;  %v832_v22 = vmul.f32 %v3072_v1, %v818_v16 }
 0x162   : > { %v3475_v20 = vpop.eup %3474  ;;  %3083 = vmatmul.mubr.msk.bf16.vlgmr.msra.gmra.mxu0 %vm718_vm1, %v852_v17  ;;  %v849_v21 = vadd.f32 %v3073_v6, %v835_v18  ;;  %v819_v45 = vmul.f32 %v3473_v19, %v3970_v63 }
 0x163   : > { %972 = vmatprep.mubr.bf16.mxu0 %v3710_v23  ;;  %v822_v27 = vmul.f32 %v3475_v20, %v3979_v8  ;;  %v846_v62 = vadd.f32 %v3073_v6, %v832_v22 }
 0x164   : > { %v854_v28 = vpack.c.bf16 %v849_v21, %v848_v52  ;;  %v833_v53 = vmul.f32 %v3072_v1, %v819_v45 }
 0x165   : > { %v3477_v32 = vpop.eup %3476  ;;  %v836_v35 = vmul.f32 %v3072_v1, %v822_v27 }
 0x166   : > { %3085 = vmatmul.mubr.msk.bf16.vlgmr.msra.gmra.mxu1 %vm718_vm1, %v854_v28  ;;  %v847_v33 = vadd.f32 %v3073_v6, %v833_v53  ;;  %v823_v34 = vmul.f32 %v3477_v32, %v3982_v9  ;;  %v870_v9 = vsub.s32 0, %v4028_v43 }
 0x167   : > { %992 = vmatprep.mubr.bf16.mxu1 %v3710_v23  ;;  %v850_v39 = vadd.f32 %v3073_v6, %v836_v35 }
 0x168   : > { %v853_v63 = vpack.c.bf16 %v847_v33, %v846_v62  ;;  %v837_v38 = vmul.f32 %v3072_v1, %v823_v34  ;;  %v871_v48 = vrot.slane %v866_v47, %v870_v9 }
 0x16a   : > { %3084 = vmatmul.mubr.msk.bf16.gmra.mxu0 %vm718_vm1, %v853_v63  ;;  %v851_v8 = vadd.f32 %v3073_v6, %v837_v38 }
 0x16c   : > { %v855_v40 = vpack.c.bf16 %v851_v8, %v850_v39 }
 0x16e   : > { %3086 = vmatmul.mubr.msk.bf16.gmra.mxu1 %vm718_vm1, %v855_v40 }
 0x222   : > { %v964_v50 = vpop.f32.mrf.mxu0 }
 0x223   : > { %v965_v54 = vadd.f32 %v964_v50, %v871_v48 }
 0x224   : > { %v966_v51 = vpop.f32.mrf.mxu0 }
 0x225   : > { %v967_v55 = vadd.f32 %v966_v51, %v875_v49 }
 0x226   : > { %v968_v57 = vpop.f32.mrf.mxu0  ;;  %v984_v58 = vpop.f32.mrf.mxu1 }
 0x227   : > { %v3193_v59 = vpack.c.bf16 %v967_v55, %v965_v54  ;;  %v969_v0 = vadd.f32 %v968_v57, %v871_v48  ;;  %v985_v1 = vadd.f32 %v984_v58, %v871_v48 }
 0x228   : > { %v970_v60 = vpop.f32.mrf.mxu0  ;;  %v986_v61 = vpop.f32.mrf.mxu1 }
 0x229   : > { %1054 = vst.msk [vmem:[#allocation3] sm:$0xff] %vm4041_vm5, %v3193_v59  ;;  %v971_v2 = vadd.f32 %v970_v60, %v875_v49  ;;  %v987_v3 = vadd.f32 %v986_v61, %v875_v49 }
 0x22a   : > { %v974_v4 = vpop.f32.mrf.mxu0  ;;  %v988_v5 = vpop.f32.mrf.mxu1 }
 0x22b   : > { %v3194_v6 = vpack.c.bf16 %v971_v2, %v969_v0  ;;  %v3197_v7 = vpack.c.bf16 %v987_v3, %v985_v1  ;;  %v975_v12 = vadd.f32 %v974_v4, %v871_v48  ;;  %v989_v13 = vadd.f32 %v988_v5, %v871_v48 }
 0x22c   : > { %v976_v10 = vpop.f32.mrf.mxu0  ;;  %v990_v11 = vpop.f32.mrf.mxu1 }
 0x22d   : > { %1055 = vst.msk [vmem:[#allocation3 + $0x8] sm:$0xff] %vm4041_vm5, %v3194_v6  ;;  %1058 = vst.msk [vmem:[#allocation3 + $0x20] sm:$0xff] %vm4041_vm5, %v3197_v7  ;;  %v977_v14 = vadd.f32 %v976_v10, %v875_v49  ;;  %v991_v44 = vadd.f32 %v990_v11, %v875_v49 }
 0x22e   : > { %v978_v15 = vpop.f32.mrf.mxu0  ;;  %v994_v16 = vpop.f32.mrf.mxu1 }
 0x22f   : > { %v3195_v17 = vpack.c.bf16 %v977_v14, %v975_v12  ;;  %v3198_v18 = vpack.c.bf16 %v991_v44, %v989_v13  ;;  %v979_v52 = vadd.f32 %v978_v15, %v871_v48  ;;  %v995_v21 = vadd.f32 %v994_v16, %v871_v48 }
 0x230   : > { %v980_v19 = vpop.f32.mrf.mxu0  ;;  %v996_v20 = vpop.f32.mrf.mxu1 }
 0x231   : > { %1056 = vst.msk [vmem:[#allocation3 + $0x10] sm:$0xff] %vm4041_vm5, %v3195_v17  ;;  %1059 = vst.msk [vmem:[#allocation3 + $0x28] sm:$0xff] %vm4041_vm5, %v3198_v18  ;;  %v981_v45 = vadd.f32 %v980_v19, %v875_v49  ;;  %v997_v22 = vadd.f32 %v996_v20, %v875_v49 }
 0x232   : > { %v998_v27 = vpop.f32.mrf.mxu1 }
 0x233   : > { %v3196_v28 = vpack.c.bf16 %v981_v45, %v979_v52  ;;  %v3199_v53 = vpack.c.bf16 %v997_v22, %v995_v21  ;;  %v999_v62 = vadd.f32 %v998_v27, %v871_v48 }
 0x234   : > { %v1000_v32 = vpop.f32.mrf.mxu1 }
 0x235   : > { %1057 = vst.msk [vmem:[#allocation3 + $0x18] sm:$0xff] %vm4041_vm5, %v3196_v28  ;;  %1060 = vst.msk [vmem:[#allocation3 + $0x30] sm:$0xff] %vm4041_vm5, %v3199_v53  ;;  %v1001_v33 = vadd.f32 %v1000_v32, %v875_v49 }
 0x237   : > { %v3200_v34 = vpack.c.bf16 %v1001_v33, %v999_v62 }
 0x239   : > { %1061 = vst.msk [vmem:[#allocation3 + $0x38] sm:$0xff] %vm4041_vm5, %v3200_v34 }
 0x23a LB: >> { %s3095_s0 = sshll.u32 %s3708_s29, 5  ;;  %vm1099_vm6 = vcmask 130048   ;;  %s3711_s26 = smov 64   ;;  %vm1165_vm7 = vcmask 261120   ;;  %vm1875_vm8 = vcmask 392192   ;;  %s3708_s29 = sphi %s4061_s29, %s1070_s29  }
 0x23b   : >> { %s4069_s2 = scalar_lea.vmem [#allocation3], %s3095_s0  ;;  %s3712_s20 = smov 48  }
 0x23c   : >> { %s3713_s21 = smov 112   ;;  %s3714_s1 = smov 32  }
 0x23d   : >> { %s3715_s23 = smov 96   ;;  %s3716_s19 = smov 16  }
 0x23e   : >> { %s3717_s17 = smov 80   ;;  %s1880_s18 = scalar_lea.vmem [#allocation4], %s3095_s0 }
 0x23f   : >> { %s1070_s29 = sadd.s32 1, %s3708_s29  }
 0x240   : >> { %v4072_v35 = vld [vmem:[%s4069_s2 + $0x10] ss:$8 sps:$4 sm:$0xff]   ;;  %v4075_v63 = vld [vmem:[%s4069_s2] ss:$8 sps:$4 sm:$0xff]   ;;  %v4106_v19 = vld [vmem:[%s4069_s2 + $0x14] ss:$8 sps:$4 sm:$0xff]  }
 0x241   : >> { %1097 = vrot.lane.b32.xlu0 %v4072_v35, %s3711_s26  ;;  %3294 = vmatprep.mubr.msk.bf16.mxu0 %vm1099_vm6, %v4075_v63  ;;  %v4109_v20 = vld [vmem:[%s4069_s2 + $0x4] ss:$8 sps:$4 sm:$0xff]   ;;  %p1067_p6 = scmp.ge.s32.totalorder %s1070_s29, 2  }
 0x242   : >> { %3298 = vmatprep.subr.bf16.mxu1 %v4106_v19  ;;  %s1905_s0 = scalar_lea.vmem (%p1067_p6), %s4685_s9, %s3696_s27  ;;  %p3174_p7 = scmp.ne.s32.totalorder (%p1067_p6), %s3696_s27, 1 }
 0x243   : >> { %3299 = vmatpush3.bf16.msra.mxu1 %v4106_v19 }
 0x244   : >> { %3300 = vmatprep.subr.bf16.mxu1 %v4109_v20 }
 0x245   : >> { %1095 = vrot.lane.b32.xlu0 %v4075_v63, %s3711_s26  ;;  %s2022_s26 = scalar_lea.vmem (%p1067_p6), %s4686_s10, %s3696_s27 }
 0x247   : >> { %3301 = vmatpush3.bf16.msra.mxu1 %v4109_v20 }
 0x2b3   : >> { %v1098_v38 = vpop.permute.xlu0 %1097 }
 0x2b4   : >> { %3402 = vmatprep.subr.msk.bf16.mxu0 %vm1099_vm6, %v1098_v38  ;;  %v1110_v39 = vsel %vm1099_vm6, %v1098_v38, 0 }
 0x2b5   : >> { %3291 = vmatpush3.bf16.xpose.msra.mxu0 %v1110_v39 }
 0x2b7   : >> { %v1096_v8 = vpop.permute.xlu0 %1095 }
 0x2b8   : >> { %3403 = vmatprep.subr.msk.bf16.mxu0 %vm1099_vm6, %v1096_v8  ;;  %v1107_v40 = vsel %vm1099_vm6, %v1096_v8, 0 }
 0x2bd   : >> { %3293 = vmatpush3.bf16.xpose.msra.mxu0 %v1107_v40 }
 0x2c4   : >> { %3295 = vmatmul.mubr.msk.bf16.vlgmr.msra.gmra.mxu0 %vm1099_vm6, %v4072_v35 }
 0x384   : >> { %v3296_v41 = vpop.f32.mrf.mxu0 }
 0x385   : >> { %v1163_v47 = vsel %vm1064_vm2, %v3296_v41, -1e+30 }
 0x386   : >> { %v1146_v48 = vpop.f32.mrf.mxu0  ;;  %v1172_v49 = vsel %vm1165_vm7, %v1163_v47, -inf }
 0x387   : >> { %v1161_v50 = vsel %vm1064_vm2, %v1146_v48, -1e+30  ;;  %1173 = vmax.xlane.f32.xlu0 %v1172_v49 }
 0x388   : >> { %v3297_v51 = vpop.f32.mrf.mxu0  ;;  %v1166_v54 = vsel %vm1165_vm7, %v1161_v50, -inf }
 0x389   : >> { %1167 = vmax.xlane.f32.xlu1 %v1166_v54  ;;  %v1164_v58 = vsel %vm1064_vm2, %v3297_v51, -1e+30 }
 0x38a   : >> { %v1149_v55 = vpop.f32.mrf.mxu0  ;;  %v1175_v59 = vsel %vm1165_vm7, %v1164_v58, -inf }
 0x38b   : >> { %v1162_v56 = vsel %vm1064_vm2, %v1149_v55, -1e+30 }
 0x38c   : >> { %v1169_v57 = vsel %vm1165_vm7, %v1162_v56, -inf }
 0x38d   : >> { %1170 = vmax.xlane.f32.xlu1 %v1169_v57 }
 0x391   : >> { %1176 = vmax.xlane.f32.xlu1 %v1175_v59 }
 0x39d   : >> { %1283 = vrot.lane.b32.xlu0 %v4075_v63, %s3712_s20 }
 0x410   : >> { %v1174_v60 = vpop.xlane.xlu0 %1173 }
 0x411   : >> { %v1180_v61 = vsub.f32 %v1163_v47, %v1174_v60 }
 0x412   : >> { %v1168_v0 = vpop.xlane.xlu1 %1167 }
 0x413   : >> { %v1186_v1 = vmul.f32 1.442695, %v1180_v61  ;;  %v1178_v2 = vsub.f32 %v1161_v50, %v1168_v0 }
 0x414   : >> { %v1284_v48 = vpop.permute.xlu0 %1283 }
 0x415   : >> { %3482 = vpow2.f32 %v1186_v1  ;;  %v1182_v3 = vmul.f32 1.442695, %v1178_v2  ;;  %v1294_v49 = vsel %vm1099_vm6, %v1284_v48, 0 }
 0x416   : >> { %v1171_v4 = vpop.xlane.xlu1 %1170 }
 0x417   : >> { %3484 = vpow2.f32 %v1182_v3  ;;  %v1179_v5 = vsub.f32 %v1162_v56, %v1171_v4 }
 0x419   : >> { %v1184_v10 = vmul.f32 1.442695, %v1179_v5 }
 0x41a   : >> { %v1177_v6 = vpop.xlane.xlu1 %1176 }
 0x41b   : >> { %v1181_v7 = vsub.f32 %v1164_v58, %v1177_v6 }
 0x41d   : >> { %v1188_v11 = vmul.f32 1.442695, %v1181_v7 }
 0x41f   : >> { %3486 = vpow2.f32 %v1188_v11 }
 0x420   : >> { %3488 = vpow2.f32 %v1184_v10 }
 0x422   : >> { %v3483_v12 = vpop.eup %3482 }
 0x423   : >> { %v1196_v13 = vsel %vm1165_vm7, %v3483_v12, 0.0 }
 0x424   : >> { %v3485_v14 = vpop.eup %3484  ;;  %1197 = vadd.xlane.f32.xlu1 %v1196_v13 }
 0x425   : >> { %v1190_v44 = vsel %vm1165_vm7, %v3485_v14, 0.0 }
 0x428   : >> { %1191 = vadd.xlane.f32.xlu1 %v1190_v44 }
 0x42c   : >> { %v3487_v15 = vpop.eup %3486 }
 0x42d   : >> { %v1199_v16 = vsel %vm1165_vm7, %v3487_v15, 0.0  ;;  %v3489_v17 = vpop.eup %3488 }
 0x42e   : >> { %1200 = vadd.xlane.f32.xlu1 %v1199_v16  ;;  %v1193_v18 = vsel %vm1165_vm7, %v3489_v17, 0.0 }
 0x432   : >> { %1194 = vadd.xlane.f32.xlu1 %v1193_v18 }
 0x443   : >> { %1285 = vrot.lane.b32.xlu1 %v4072_v35, %s3712_s20 }
 0x447   : >> { %1279 = vrot.lane.b32.xlu1 %v4075_v63, %s3713_s21 }
 0x44b   : >> { %1281 = vrot.lane.b32.xlu1 %v4072_v35, %s3713_s21 }
 0x4ad   : >> { %v1198_v52 = vpop.xlane.xlu1 %1197 }
 0x4b1   : >> { %v1192_v21 = vpop.xlane.xlu1 %1191 }
 0x4b7   : >> { %v1201_v45 = vpop.xlane.xlu1 %1200 }
 0x4b8   : >> { %3490 = vrcp.f32 %v1201_v45 }
 0x4b9   : >> { %3492 = vrcp.f32 %v1192_v21 }
 0x4ba   : >> { %3494 = vrcp.f32 %v1198_v52 }
 0x4bb   : >> { %v1195_v22 = vpop.xlane.xlu1 %1194 }
 0x4bc   : >> { %3496 = vrcp.f32 %v1195_v22 }
 0x4bf   : >> { %v1286_v27 = vpop.permute.xlu1 %1285 }
 0x4c0   : >> { %3404 = vmatprep.subr.msk.bf16.mxu1 %vm1099_vm6, %v1286_v27  ;;  %v1297_v40 = vsel %vm1099_vm6, %v1286_v27, 0 }
 0x4c3   : >> { %v1280_v47 = vpop.permute.xlu1 %1279 }
 0x4c5   : >> { %v3491_v28 = vpop.eup %3490 }
 0x4c6   : >> { %v3493_v53 = vpop.eup %3492  ;;  %v1209_v33 = vmul.f32 %v3491_v28, %v3487_v15 }
 0x4c7   : >> { %v3495_v32 = vpop.eup %3494  ;;  %v1206_v34 = vmul.f32 %v3493_v53, %v3485_v14  ;;  %v1282_v50 = vpop.permute.xlu1 %1281 }
 0x4c8   : >> { %v1208_v39 = vmul.f32 %v3495_v32, %v3483_v12 }
 0x4c9   : >> { %v3497_v62 = vpop.eup %3496 }
 0x4ca   : >> { %v1207_v38 = vmul.f32 %v3497_v62, %v3489_v17  ;;  %v1211_v41 = vpack.c.bf16 %v1209_v33, %v1208_v39 }
 0x4cc   : >> { %v1210_v8 = vpack.c.bf16 %v1207_v38, %v1206_v34 }
 0x4ce   : >> { %3302 = vmatprep.mubr.msk.bf16.mxu1 %vm1165_vm7, %v1210_v8 }
 0x4cf   : >> { %3303 = vmatmul.mubr.msk.bf16.vlgmr.msra.gmra.mxu1 %vm1165_vm7, %v1211_v41 }
 0x4d0   : >> { %3307 = vmatpush3.bf16.xpose.msra.mxu1 %v1297_v40  ;;  %3310 = vmatprep.mubr.msk.bf16.mxu1 %vm1099_vm6, %v1280_v47 }
 0x4d1   : >> { %3405 = vmatprep.subr.msk.bf16.mxu1 %vm1099_vm6, %v1284_v48 }
 0x4d8   : >> { %3309 = vmatpush3.bf16.xpose.msra.mxu1 %v1294_v49 }
 0x4df   : >> { %3311 = vmatmul.mubr.msk.bf16.vlgmr.msra.gmra.mxu1 %vm1099_vm6, %v1282_v50 }
 0x58f   : >> { %v4129_v51 = vpop.f32.mrf.mxu1 }
 0x591   : >> { %v4131_v54 = vpop.f32.mrf.mxu1 }
 0x593   : >> { %v4133_v55 = vpop.f32.mrf.mxu1 }
 0x595   : >> { %v4135_v56 = vpop.f32.mrf.mxu1 }
 0x59f   : >> { %v3312_v57 = vpop.f32.mrf.mxu1 }
 0x5a0   : >> { %v1350_v0 = vsel %vm1064_vm2, %v3312_v57, -1e+30 }
 0x5a1   : >> { %v1333_v58 = vpop.f32.mrf.mxu1  ;;  %v1358_v3 = vsel %vm1165_vm7, %v1350_v0, -inf }
 0x5a2   : >> { %v1348_v59 = vsel %vm1064_vm2, %v1333_v58, -1e+30 }
 0x5a3   : >> { %v3313_v60 = vpop.f32.mrf.mxu1  ;;  %v1352_v61 = vsel %vm1165_vm7, %v1348_v59, -inf }
 0x5a4   : >> { %1353 = vmax.xlane.f32.xlu1 %v1352_v61  ;;  %v1351_v5 = vsel %vm1064_vm2, %v3313_v60, -1e+30 }
 0x5a5   : >> { %v1336_v1 = vpop.f32.mrf.mxu1  ;;  %v1361_v6 = vsel %vm1165_vm7, %v1351_v5, -inf }
 0x5a6   : >> { %v1349_v2 = vsel %vm1064_vm2, %v1336_v1, -1e+30 }
 0x5a7   : >> { %v1355_v4 = vsel %vm1165_vm7, %v1349_v2, -inf }
 0x5a8   : >> { %1359 = vmax.xlane.f32.xlu1 %v1358_v3  ;;  %1356 = vmax.xlane.f32.xlu0 %v1355_v4 }
 0x5ac   : >> { %1362 = vmax.xlane.f32.xlu0 %v1361_v6 }
 0x5b9   : >> { %1400 = vrot.lane.b32.xlu1 %v4106_v19, %s3713_s21 }
 0x62d   : >> { %v1354_v7 = vpop.xlane.xlu1 %1353 }
 0x62e   : >> { %v1364_v10 = vsub.f32 %v1348_v59, %v1354_v7 }
 0x630   : >> { %v1368_v14 = vmul.f32 1.442695, %v1364_v10 }
 0x631   : >> { %v1360_v11 = vpop.xlane.xlu1 %1359  ;;  %v1357_v12 = vpop.xlane.xlu0 %1356 }
 0x632   : >> { %v1366_v13 = vsub.f32 %v1350_v0, %v1360_v11  ;;  %v1365_v15 = vsub.f32 %v1349_v2, %v1357_v12 }
 0x634   : >> { %v1372_v44 = vmul.f32 1.442695, %v1366_v13  ;;  %v1370_v52 = vmul.f32 1.442695, %v1365_v15 }
 0x635   : >> { %v1363_v16 = vpop.xlane.xlu0 %1362  ;;  %v1401_v17 = vpop.permute.xlu1 %1400 }
 0x636   : >> { %3498 = vpow2.f32 %v1372_v44  ;;  %v1367_v18 = vsub.f32 %v1351_v5, %v1363_v16  ;;  %3314 = vmatprep.subr.bf16.mxu0 %v1401_v17 }
 0x637   : >> { %3315 = vmatpush3.bf16.msra.mxu0 %v1401_v17  ;;  %3500 = vpow2.f32 %v1368_v14 }
 0x638   : >> { %v1374_v21 = vmul.f32 1.442695, %v1367_v18 }
 0x63a   : >> { %3502 = vpow2.f32 %v1374_v21 }
 0x63b   : >> { %3504 = vpow2.f32 %v1370_v52 }
 0x643   : >> { %v3499_v45 = vpop.eup %3498 }
 0x644   : >> { %v1382_v22 = vsel %vm1165_vm7, %v3499_v45, 0.0  ;;  %v3501_v27 = vpop.eup %3500 }
 0x645   : >> { %1383 = vadd.xlane.f32.xlu1 %v1382_v22  ;;  %v1376_v53 = vsel %vm1165_vm7, %v3501_v27, 0.0 }
 0x647   : >> { %v3503_v28 = vpop.eup %3502 }
 0x648   : >> { %v1385_v32 = vsel %vm1165_vm7, %v3503_v28, 0.0  ;;  %v3505_v62 = vpop.eup %3504 }
 0x649   : >> { %1377 = vadd.xlane.f32.xlu1 %v1376_v53  ;;  %1386 = vadd.xlane.f32.xlu0 %v1385_v32  ;;  %v1379_v33 = vsel %vm1165_vm7, %v3505_v62, 0.0 }
 0x64d   : >> { %1380 = vadd.xlane.f32.xlu0 %v1379_v33 }
 0x65a   : >> { %1465 = vrot.lane.b32.xlu1 %v4072_v35, %s3714_s1 }
 0x65e   : >> { %1463 = vrot.lane.b32.xlu1 %v4075_v63, %s3714_s1 }
 0x662   : >> { %1461 = vrot.lane.b32.xlu1 %v4072_v35, %s3715_s23 }
 0x663   : >> { %1398 = vrot.lane.b32.xlu0 %v4109_v20, %s3713_s21 }
 0x667   : >> { %1459 = vrot.lane.b32.xlu0 %v4075_v63, %s3715_s23 }
 0x6ce   : >> { %v1384_v34 = vpop.xlane.xlu1 %1383 }
 0x6d2   : >> { %v1378_v38 = vpop.xlane.xlu1 %1377  ;;  %v1387_v39 = vpop.xlane.xlu0 %1386 }
 0x6d3   : >> { %3506 = vrcp.f32 %v1387_v39 }
 0x6d4   : >> { %3508 = vrcp.f32 %v1378_v38 }
 0x6d5   : >> { %3510 = vrcp.f32 %v1384_v34 }
 0x6d6   : >> { %v1381_v8 = vpop.xlane.xlu0 %1380  ;;  %v1466_v41 = vpop.permute.xlu1 %1465 }
 0x6d7   : >> { %3512 = vrcp.f32 %v1381_v8  ;;  %v1477_v0 = vsel %vm1099_vm6, %v1466_v41, 0 }
 0x6da   : >> { %v1399_v40 = vpop.permute.xlu0 %1398  ;;  %v1464_v3 = vpop.permute.xlu1 %1463 }
 0x6db   : >> { %3316 = vmatprep.subr.bf16.mxu0 %v1399_v40  ;;  %v1474_v4 = vsel %vm1099_vm6, %v1464_v3, 0 }
 0x6dc   : >> { %3317 = vmatpush3.bf16.msra.mxu0 %v1399_v40 }
 0x6dd   : >> { %3406 = vmatprep.subr.msk.bf16.mxu0 %vm1099_vm6, %v1466_v41 }
 0x6de   : >> { %v1460_v2 = vpop.permute.xlu0 %1459  ;;  %v1462_v5 = vpop.permute.xlu1 %1461 }
 0x6e0   : >> { %v3507_v47 = vpop.eup %3506 }
 0x6e1   : >> { %v3509_v48 = vpop.eup %3508  ;;  %v1395_v57 = vmul.f32 %v3507_v47, %v3503_v28 }
 0x6e2   : >> { %v3511_v49 = vpop.eup %3510  ;;  %v1392_v58 = vmul.f32 %v3509_v48, %v3501_v27 }
 0x6e3   : >> { %v1394_v60 = vmul.f32 %v3511_v49, %v3499_v45 }
 0x6e4   : >> { %v3513_v50 = vpop.eup %3512 }
 0x6e5   : >> { %v1393_v59 = vmul.f32 %v3513_v50, %v3505_v62  ;;  %v1397_v1 = vpack.c.bf16 %v1395_v57, %v1394_v60 }
 0x6e7   : >> { %v1396_v61 = vpack.c.bf16 %v1393_v59, %v1392_v58 }
 0x6e9   : >> { %3318 = vmatprep.mubr.msk.bf16.mxu0 %vm1165_vm7, %v1396_v61 }
 0x6ea   : >> { %3319 = vmatmul.mubr.msk.bf16.vlgmr.msra.gmra.mxu0 %vm1165_vm7, %v1397_v1 }
 0x6eb   : >> { %3323 = vmatpush3.bf16.xpose.msra.mxu0 %v1477_v0  ;;  %3326 = vmatprep.mubr.msk.bf16.mxu0 %vm1099_vm6, %v1460_v2 }
 0x6ec   : >> { %3407 = vmatprep.subr.msk.bf16.mxu0 %vm1099_vm6, %v1464_v3 }
 0x6f3   : >> { %3325 = vmatpush3.bf16.xpose.msra.mxu0 %v1474_v4 }
 0x6fa   : >> { %3327 = vmatmul.mubr.msk.bf16.vlgmr.msra.gmra.mxu0 %vm1099_vm6, %v1462_v5 }
 0x7aa   : >> { %v4173_v6 = vpop.f32.mrf.mxu0 }
 0x7ac   : >> { %v4175_v7 = vpop.f32.mrf.mxu0 }
 0x7ae   : >> { %v4177_v10 = vpop.f32.mrf.mxu0 }
 0x7b0   : >> { %v4179_v11 = vpop.f32.mrf.mxu0 }
 0x7ba   : >> { %v3328_v12 = vpop.f32.mrf.mxu0 }
 0x7bb   : >> { %v1530_v16 = vsel %vm1064_vm2, %v3328_v12, -1e+30 }
 0x7bc   : >> { %v1513_v13 = vpop.f32.mrf.mxu0  ;;  %v1538_v52 = vsel %vm1165_vm7, %v1530_v16, -inf }
 0x7bd   : >> { %v1528_v14 = vsel %vm1064_vm2, %v1513_v13, -1e+30 }
 0x7be   : >> { %v3329_v44 = vpop.f32.mrf.mxu0  ;;  %v1532_v15 = vsel %vm1165_vm7, %v1528_v14, -inf }
 0x7bf   : >> { %1533 = vmax.xlane.f32.xlu0 %v1532_v15  ;;  %v1531_v45 = vsel %vm1064_vm2, %v3329_v44, -1e+30 }
 0x7c0   : >> { %v1516_v17 = vpop.f32.mrf.mxu0  ;;  %v1541_v22 = vsel %vm1165_vm7, %v1531_v45, -inf }
 0x7c1   : >> { %v1529_v18 = vsel %vm1064_vm2, %v1516_v17, -1e+30 }
 0x7c2   : >> { %v1535_v21 = vsel %vm1165_vm7, %v1529_v18, -inf }
 0x7c3   : >> { %1539 = vmax.xlane.f32.xlu0 %v1538_v52  ;;  %1536 = vmax.xlane.f32.xlu1 %v1535_v21 }
 0x7c7   : >> { %1542 = vmax.xlane.f32.xlu0 %v1541_v22 }
 0x7d4   : >> { %1580 = vrot.lane.b32.xlu1 %v4106_v19, %s3715_s23 }
 0x848   : >> { %v1534_v27 = vpop.xlane.xlu0 %1533 }
 0x849   : >> { %v1544_v28 = vsub.f32 %v1528_v14, %v1534_v27 }
 0x84b   : >> { %v1548_v33 = vmul.f32 1.442695, %v1544_v28 }
 0x84c   : >> { %v1540_v53 = vpop.xlane.xlu0 %1539  ;;  %v1537_v32 = vpop.xlane.xlu1 %1536 }
 0x84d   : >> { %v1546_v62 = vsub.f32 %v1530_v16, %v1540_v53  ;;  %v1545_v38 = vsub.f32 %v1529_v18, %v1537_v32 }
 0x84f   : >> { %v1552_v34 = vmul.f32 1.442695, %v1546_v62  ;;  %v1550_v41 = vmul.f32 1.442695, %v1545_v38 }
 0x850   : >> { %v1543_v39 = vpop.xlane.xlu0 %1542  ;;  %v1581_v8 = vpop.permute.xlu1 %1580 }
 0x851   : >> { %3514 = vpow2.f32 %v1552_v34  ;;  %v1547_v40 = vsub.f32 %v1531_v45, %v1543_v39  ;;  %3330 = vmatprep.subr.bf16.mxu1 %v1581_v8 }
 0x852   : >> { %3331 = vmatpush3.bf16.msra.mxu1 %v1581_v8  ;;  %3516 = vpow2.f32 %v1548_v33 }
 0x853   : >> { %v1554_v47 = vmul.f32 1.442695, %v1547_v40 }
 0x855   : >> { %3518 = vpow2.f32 %v1554_v47 }
 0x856   : >> { %3520 = vpow2.f32 %v1550_v41 }
 0x85e   : >> { %v3515_v48 = vpop.eup %3514 }
 0x85f   : >> { %v1562_v49 = vsel %vm1165_vm7, %v3515_v48, 0.0  ;;  %v3517_v50 = vpop.eup %3516 }
 0x860   : >> { %1563 = vadd.xlane.f32.xlu1 %v1562_v49  ;;  %v1556_v59 = vsel %vm1165_vm7, %v3517_v50, 0.0 }
 0x862   : >> { %v3519_v57 = vpop.eup %3518 }
 0x863   : >> { %v1565_v58 = vsel %vm1165_vm7, %v3519_v57, 0.0  ;;  %v3521_v60 = vpop.eup %3520 }
 0x864   : >> { %1566 = vadd.xlane.f32.xlu0 %v1565_v58  ;;  %1557 = vadd.xlane.f32.xlu1 %v1556_v59  ;;  %v1559_v61 = vsel %vm1165_vm7, %v3521_v60, 0.0 }
 0x868   : >> { %1560 = vadd.xlane.f32.xlu0 %v1559_v61 }
 0x875   : >> { %1645 = vrot.lane.b32.xlu1 %v4072_v35, %s3716_s19 }
 0x879   : >> { %1643 = vrot.lane.b32.xlu1 %v4075_v63, %s3716_s19 }
 0x87d   : >> { %1641 = vrot.lane.b32.xlu1 %v4072_v35, %s3717_s17 }
 0x87e   : >> { %1578 = vrot.lane.b32.xlu0 %v4109_v20, %s3715_s23 }
 0x882   : >> { %1639 = vrot.lane.b32.xlu0 %v4075_v63, %s3717_s17 }
 0x8e9   : >> { %v1564_v0 = vpop.xlane.xlu1 %1563 }
 0x8ed   : >> { %v1567_v1 = vpop.xlane.xlu0 %1566  ;;  %v1558_v2 = vpop.xlane.xlu1 %1557 }
 0x8ee   : >> { %3522 = vrcp.f32 %v1567_v1 }
 0x8ef   : >> { %3524 = vrcp.f32 %v1558_v2 }
 0x8f0   : >> { %3526 = vrcp.f32 %v1564_v0 }
 0x8f1   : >> { %v1561_v3 = vpop.xlane.xlu0 %1560  ;;  %v1646_v5 = vpop.permute.xlu1 %1645 }
 0x8f2   : >> { %3528 = vrcp.f32 %v1561_v3  ;;  %v1657_v18 = vsel %vm1099_vm6, %v1646_v5, 0 }
 0x8f5   : >> { %v1579_v4 = vpop.permute.xlu0 %1578  ;;  %v1644_v45 = vpop.permute.xlu1 %1643 }
 0x8f6   : >> { %3332 = vmatprep.subr.bf16.mxu1 %v1579_v4  ;;  %v1654_v22 = vsel %vm1099_vm6, %v1644_v45, 0 }
 0x8f7   : >> { %3333 = vmatpush3.bf16.msra.mxu1 %v1579_v4 }
 0x8f8   : >> { %3408 = vmatprep.subr.msk.bf16.mxu1 %vm1099_vm6, %v1646_v5 }
 0x8f9   : >> { %v1640_v21 = vpop.permute.xlu0 %1639  ;;  %v1642_v27 = vpop.permute.xlu1 %1641 }
 0x8fb   : >> { %v3523_v35 = vpop.eup %3522 }
 0x8fc   : >> { %v3525_v12 = vpop.eup %3524  ;;  %v1575_v44 = vmul.f32 %v3523_v35, %v3519_v57 }
 0x8fd   : >> { %v3527_v13 = vpop.eup %3526  ;;  %v1572_v63 = vmul.f32 %v3525_v12, %v3517_v50 }
 0x8fe   : >> { %v1574_v16 = vmul.f32 %v3527_v13, %v3515_v48 }
 0x8ff   : >> { %v3529_v14 = vpop.eup %3528 }
 0x900   : >> { %v1573_v15 = vmul.f32 %v3529_v14, %v3521_v60  ;;  %v1577_v52 = vpack.c.bf16 %v1575_v44, %v1574_v16 }
 0x902   : >> { %v1576_v17 = vpack.c.bf16 %v1573_v15, %v1572_v63 }
 0x904   : >> { %3334 = vmatprep.mubr.msk.bf16.mxu1 %vm1165_vm7, %v1576_v17 }
 0x905   : >> { %3335 = vmatmul.mubr.msk.bf16.vlgmr.msra.gmra.mxu1 %vm1165_vm7, %v1577_v52 }
 0x906   : >> { %3339 = vmatpush3.bf16.xpose.msra.mxu1 %v1657_v18  ;;  %3342 = vmatprep.mubr.msk.bf16.mxu1 %vm1099_vm6, %v1640_v21 }
 0x907   : >> { %3409 = vmatprep.subr.msk.bf16.mxu1 %vm1099_vm6, %v1644_v45 }
 0x90e   : >> { %3341 = vmatpush3.bf16.xpose.msra.mxu1 %v1654_v22 }
 0x915   : >> { %3343 = vmatmul.mubr.msk.bf16.vlgmr.msra.gmra.mxu1 %vm1099_vm6, %v1642_v27 }
 0x9c5   : >> { %v3336_v28 = vpop.f32.mrf.mxu1 }
 0x9c7   : >> { %v1624_v53 = vpop.f32.mrf.mxu1 }
 0x9c9   : >> { %v3337_v32 = vpop.f32.mrf.mxu1 }
 0x9cb   : >> { %v1627_v62 = vpop.f32.mrf.mxu1 }
 0x9d5   : >> { %v3344_v33 = vpop.f32.mrf.mxu1 }
 0x9d6   : >> { %v1710_v40 = vsel %vm1064_vm2, %v3344_v33, -1e+30 }
 0x9d7   : >> { %v1693_v34 = vpop.f32.mrf.mxu1  ;;  %v1718_v48 = vsel %vm1165_vm7, %v1710_v40, -inf }
 0x9d8   : >> { %v1708_v38 = vsel %vm1064_vm2, %v1693_v34, -1e+30 }
 0x9d9   : >> { %v3345_v39 = vpop.f32.mrf.mxu1  ;;  %v1712_v8 = vsel %vm1165_vm7, %v1708_v38, -inf }
 0x9da   : >> { %1713 = vmax.xlane.f32.xlu0 %v1712_v8  ;;  %v1711_v50 = vsel %vm1064_vm2, %v3345_v39, -1e+30 }
 0x9db   : >> { %v1696_v41 = vpop.f32.mrf.mxu1  ;;  %v1721_v57 = vsel %vm1165_vm7, %v1711_v50, -inf }
 0x9dc   : >> { %v1709_v47 = vsel %vm1064_vm2, %v1696_v41, -1e+30 }
 0x9dd   : >> { %v1715_v49 = vsel %vm1165_vm7, %v1709_v47, -inf }
 0x9de   : >> { %1719 = vmax.xlane.f32.xlu0 %v1718_v48  ;;  %1716 = vmax.xlane.f32.xlu1 %v1715_v49 }
 0x9e2   : >> { %1722 = vmax.xlane.f32.xlu0 %v1721_v57 }
 0xa63   : >> { %v1714_v58 = vpop.xlane.xlu0 %1713 }
 0xa64   : >> { %v1724_v59 = vsub.f32 %v1708_v38, %v1714_v58 }
 0xa66   : >> { %v1728_v1 = vmul.f32 1.442695, %v1724_v59 }
 0xa67   : >> { %v1720_v60 = vpop.xlane.xlu0 %1719  ;;  %v1717_v61 = vpop.xlane.xlu1 %1716 }
 0xa68   : >> { %v1726_v0 = vsub.f32 %v1710_v40, %v1720_v60  ;;  %v1725_v3 = vsub.f32 %v1709_v47, %v1717_v61 }
 0xa6a   : >> { %v1732_v2 = vmul.f32 1.442695, %v1726_v0  ;;  %v1730_v35 = vmul.f32 1.442695, %v1725_v3 }
 0xa6b   : >> { %v1723_v4 = vpop.xlane.xlu0 %1722 }
 0xa6c   : >> { %3530 = vpow2.f32 %v1732_v2  ;;  %v1727_v5 = vsub.f32 %v1711_v50, %v1723_v4 }
 0xa6d   : >> { %3532 = vpow2.f32 %v1728_v1 }
 0xa6e   : >> { %v1734_v12 = vmul.f32 1.442695, %v1727_v5 }
 0xa70   : >> { %3534 = vpow2.f32 %v1734_v12 }
 0xa71   : >> { %3536 = vpow2.f32 %v1730_v35 }
 0xa79   : >> { %v3531_v13 = vpop.eup %3530 }
 0xa7a   : >> { %v1742_v14 = vsel %vm1165_vm7, %v3531_v13, 0.0  ;;  %v3533_v44 = vpop.eup %3532 }
 0xa7b   : >> { %1743 = vadd.xlane.f32.xlu1 %v1742_v14  ;;  %v1736_v16 = vsel %vm1165_vm7, %v3533_v44, 0.0 }
 0xa7d   : >> { %v3535_v63 = vpop.eup %3534 }
 0xa7e   : >> { %v1745_v15 = vsel %vm1165_vm7, %v3535_v63, 0.0  ;;  %v3537_v17 = vpop.eup %3536 }
 0xa7f   : >> { %1746 = vadd.xlane.f32.xlu0 %v1745_v15  ;;  %1737 = vadd.xlane.f32.xlu1 %v1736_v16  ;;  %v1739_v18 = vsel %vm1165_vm7, %v3537_v17, 0.0 }
 0xa83   : >> { %1740 = vadd.xlane.f32.xlu0 %v1739_v18  ;;  %v3549_v18 = vld [vmem:[%s3843_s25] sm:$0xff] (%p1067_p6)  }
 0xa90   : >> { %1760 = vrot.lane.b32.xlu1 %v4106_v19, %s3717_s17 }
 0xa94   : >> { %1823 = vrot.lane.b32.xlu1 %v4175_v7, %s3716_s19 }
 0xa98   : >> { %1825 = vrot.lane.b32.xlu1 %v4179_v11, %s3716_s19 }
 0xa99   : >> { %1758 = vrot.lane.b32.xlu0 %v4109_v20, %s3717_s17  ;;  %s2170_s17 = scalar_lea.vmem (%p1067_p6), %s4688_s12, %s3074_s30 }
 0xa9c   : >> { %1829 = vrot.lane.b32.xlu1 %v4177_v10, %s3716_s19 }
 0xa9d   : >> { %1827 = vrot.lane.b32.xlu0 %v4173_v6, %s3716_s19 }
 0xaa0   : >> { %1841 = vrot.lane.b32.xlu1 %v1627_v62, %s3714_s1 }
 0xaa1   : >> { %1839 = vrot.lane.b32.xlu0 %v1624_v53, %s3714_s1 }
 0xaa4   : >> { %1845 = vrot.lane.b32.xlu1 %v3337_v32, %s3714_s1 }
 0xaa5   : >> { %1843 = vrot.lane.b32.xlu0 %v3336_v28, %s3714_s1  ;;  %s2024_s1 = scalar_lea.vmem (%p1067_p6), %s4687_s11, %s3696_s27 }
 0xb04   : >> { %v1744_v19 = vpop.xlane.xlu1 %1743 }
 0xb08   : >> { %v1747_v7 = vpop.xlane.xlu0 %1746  ;;  %v1738_v11 = vpop.xlane.xlu1 %1737 }
 0xb09   : >> { %3538 = vrcp.f32 %v1747_v7 }
 0xb0a   : >> { %3540 = vrcp.f32 %v1738_v11 }
 0xb0b   : >> { %3542 = vrcp.f32 %v1744_v19 }
 0xb0c   : >> { %v1741_v20 = vpop.xlane.xlu0 %1740  ;;  %v1761_v52 = vpop.permute.xlu1 %1760 }
 0xb0d   : >> { %3544 = vrcp.f32 %v1741_v20  ;;  %3346 = vmatprep.subr.bf16.mxu0 %v1761_v52 }
 0xb0e   : >> { %3347 = vmatpush3.bf16.msra.mxu0 %v1761_v52 }
 0xb10   : >> { %v1759_v6 = vpop.permute.xlu0 %1758  ;;  %v1824_v40 = vpop.permute.xlu1 %1823 }
 0xb11   : >> { %3348 = vmatprep.subr.bf16.mxu0 %v1759_v6  ;;  %v1867_v58 = vsel %vm1099_vm6, %v4131_v54, %v1824_v40 }
 0xb12   : >> { %3349 = vmatpush3.bf16.msra.mxu0 %v1759_v6 }
 0xb14   : >> { %v1826_v41 = vpop.permute.xlu1 %1825  ;;  %v1828_v47 = vpop.permute.xlu0 %1827 }
 0xb15   : >> { %v1869_v1 = vsel %vm1099_vm6, %v4129_v51, %v1828_v47  ;;  %v1868_v2 = vsel %vm1099_vm6, %v4135_v56, %v1826_v41 }
 0xb16   : >> { %v3539_v10 = vpop.eup %3538 }
 0xb17   : >> { %v3541_v21 = vpop.eup %3540  ;;  %v1755_v27 = vmul.f32 %v3539_v10, %v3535_v63  ;;  %v3547_v63 = vld [vmem:[%s3843_s25 + $0x10] sm:$0xff] (%p1067_p6)  }
 0xb18   : >> { %v3543_v45 = vpop.eup %3542  ;;  %v1752_v28 = vmul.f32 %v3541_v21, %v3533_v44  ;;  %v1830_v48 = vpop.permute.xlu1 %1829  ;;  %v3546_v44 = vld [vmem:[%s3843_s25 + $0x18] sm:$0xff] (%p1067_p6)  }
 0xb19   : >> { %v1754_v32 = vmul.f32 %v3543_v45, %v3531_v13  ;;  %v1840_v49 = vpop.permute.xlu0 %1839  ;;  %v1870_v51 = vsel %vm1099_vm6, %v4133_v55, %v1830_v48  ;;  %3354 = vmatprep.subr.bf16.mxu1 (%p1067_p6), %v3546_v44  ;;  %v3548_v55 = vld [vmem:[%s3843_s25 + $0x8] sm:$0xff] (%p1067_p6)   ;;  %v3118_v45 = vld [vmem:[%s1905_s0] ss:$0 sm:$0xff] (%p1067_p6) }
 0xb1a   : >> { %v3545_v22 = vpop.eup %3544  ;;  %v1871_v59 = vsel %vm1165_vm7, %v1867_v58, %v1840_v49  ;;  %3355 = vmatpush3.bf16.msra.mxu1 (%p1067_p6), %v3546_v44 }
 0xb1b   : >> { %v1753_v53 = vmul.f32 %v3545_v22, %v3537_v17  ;;  %v1757_v33 = vpack.c.bf16 %v1755_v27, %v1754_v32  ;;  %3356 = vmatprep.subr.bf16.mxu1 (%p1067_p6), %v3547_v63 }
 0xb1c   : >> { %v1842_v50 = vpop.permute.xlu1 %1841 }
 0xb1d   : >> { %v1756_v62 = vpack.c.bf16 %v1753_v53, %v1752_v28  ;;  %v1844_v57 = vpop.permute.xlu0 %1843  ;;  %v1872_v54 = vsel %vm1165_vm7, %v1868_v2, %v1842_v50 }
 0xb1e   : >> { %v1873_v3 = vsel %vm1165_vm7, %v1869_v1, %v1844_v57  ;;  %3357 = vmatpush3.bf16.msra.mxu1 (%p1067_p6), %v3547_v63 }
 0xb1f   : >> { %3350 = vmatprep.mubr.msk.bf16.mxu0 %vm1165_vm7, %v1756_v62  ;;  %3358 = vmatprep.subr.bf16.mxu1 (%p1067_p6), %v3548_v55 }
 0xb20   : >> { %3351 = vmatmul.mubr.msk.bf16.vlgmr.msra.gmra.mxu0 %vm1165_vm7, %v1757_v33  ;;  %v1846_v60 = vpop.permute.xlu1 %1845 }
 0xb21   : >> { %v1874_v13 = vsel %vm1165_vm7, %v1870_v51, %v1846_v60 }
 0xb22   : > { %3359 = vmatpush3.bf16.msra.mxu1 (%p1067_p6), %v3548_v55 }
 0xb23   : > { %3360 = vmatprep.subr.bf16.mxu1 (%p1067_p6), %v3549_v18 }
 0xb26   : > { %3361 = vmatpush3.bf16.msra.mxu1 (%p1067_p6), %v3549_v18 }
 0xbe0   : >> { %v3352_v34 = vpop.f32.mrf.mxu0 }
 0xbe2   : >> { %v1804_v38 = vpop.f32.mrf.mxu0 }
 0xbe3   : >> { %1855 = vrot.lane.b32.xlu0 %v1804_v38, %s3712_s20 }
 0xbe4   : >> { %v3353_v39 = vpop.f32.mrf.mxu0 }
 0xbe6   : >> { %v1807_v8 = vpop.f32.mrf.mxu0 }
 0xbe7   : >> { %1859 = vrot.lane.b32.xlu0 %v3352_v34, %s3712_s20  ;;  %1857 = vrot.lane.b32.xlu1 %v1807_v8, %s3712_s20 }
 0xbeb   : >> { %1861 = vrot.lane.b32.xlu1 %v3353_v39, %s3712_s20 }
 0xc55   : >> { %v1856_v61 = vpop.permute.xlu0 %1855 }
 0xc56   : >> { %v1876_v0 = vsel %vm1875_vm8, %v1871_v59, %v1856_v61 }
 0xc57   : >> { %1881 = vst.msk [vmem:[%s1880_s18] sm:$0xff] %vm718_vm1, %v1876_v0 }
 0xc59   : >> { %v1860_v4 = vpop.permute.xlu0 %1859  ;;  %v1858_v5 = vpop.permute.xlu1 %1857 }
 0xc5a   : >> { %v1878_v35 = vsel %vm1875_vm8, %v1873_v3, %v1860_v4  ;;  %v1877_v12 = vsel %vm1875_vm8, %v1872_v54, %v1858_v5 }
 0xc5b   : >> { %1883 = vst.msk [vmem:[%s1880_s18 + $0x10] sm:$0xff] %vm718_vm1, %v1878_v35  ;;  %1882 = vst.msk [vmem:[%s1880_s18 + $0x8] sm:$0xff] %vm718_vm1, %v1877_v12  ;;  %1069 = sbr.rel (!%p1067_p6) target bundleno = 570 (0x23a), region = 159 }
 0xc5d   : >> { %v1862_v56 = vpop.permute.xlu1 %1861 }
 0xc5e   : >> { %v1879_v14 = vsel %vm1875_vm8, %v1874_v13, %v1862_v56 }
 0xc5f   : >> { %1884 = vst.msk [vmem:[%s1880_s18 + $0x18] sm:$0xff] %vm718_vm1, %v1879_v14  ;;  %s2476_s18 = scalar_lea.vmem (%p1067_p6), %s4689_s13, %s3696_s27 }
 0xc60   : > { %s4716_s29 = sld [smem:[#allocation13_spill]] (!%p3174_p7) }
 0xc66   : > { %v1885_v15 = vld [vmem:[#allocation4] sm:$0xff]  ;;  %v1886_v16 = vld [vmem:[#allocation4 + $0x8] sm:$0xff]  ;;  %v1887_v19 = vld [vmem:[#allocation4 + $0x10] sm:$0xff]  ;;  %s4717_s0 = smov (!%p3174_p7), %s4716_s29 }
 0xc67   : > { %v1893_v17 = vpack.c.bf16 %v1886_v16, %v1885_v15  ;;  %v1888_v42 = vld [vmem:[#allocation4 + $0x18] sm:$0xff]  ;;  %v1889_v7 = vld [vmem:[#allocation4 + $0x20] sm:$0xff]  ;;  %v1890_v11 = vld [vmem:[#allocation4 + $0x28] sm:$0xff] }
 0xc68   : > { %v1894_v20 = vpack.c.bf16 %v1888_v42, %v1887_v19  ;;  %v1895_v52 = vpack.c.bf16 %v1890_v11, %v1889_v7  ;;  %v1891_v6 = vld [vmem:[#allocation4 + $0x30] sm:$0xff]  ;;  %v1892_v10 = vld [vmem:[#allocation4 + $0x38] sm:$0xff] }
 0xc69   : > { %3362 = vmatprep.mubr.msk.bf16.mxu1 %vm718_vm1, %v1893_v17  ;;  %v1896_v21 = vpack.c.bf16 %v1892_v10, %v1891_v6 }
 0xc6a   : > { %3363 = vmatmul.mubr.msk.bf16.vlgmr.msra.gmra.mxu1 %vm718_vm1, %v1894_v20 }
 0xc6b   : > { %3366 = vmatprep.mubr.msk.bf16.mxu1 %vm718_vm1, %v1895_v52 }
 0xc72   : > { %3367 = vmatmul.mubr.msk.bf16.gmra.mxu1 %vm718_vm1, %v1896_v21 }
 0xc73   : > { %2267 = vmatprep.mubr.bf16.mxu1 %v3710_v23 }
 0xd2a   : > { %v3364_v22 = vpop.f32.mrf.mxu1 }
 0xd2b   : > { %v1992_v27 = vadd.f32 %v3364_v22, %v3118_v45 }
 0xd2c   : > { %v1983_v28 = vpop.f32.mrf.mxu1 }
 0xd2d   : > { %v4294_v53 = vadd.f32 %v1992_v27, %v3924_v30  ;;  %v1984_v32 = vadd.f32 %v3118_v45, %v1983_v28 }
 0xd2e   : > { %v3365_v62 = vpop.f32.mrf.mxu1 }
 0xd2f   : > { %v4297_v33 = vadd.f32 %v1984_v32, %v3912_v24  ;;  %v1995_v34 = vadd.f32 %v3365_v62, %v3118_v45  ;;  %v2032_v38 = vsel %vm718_vm1, %v4294_v53, 0.0 }
 0xd30   : > { %2033 = vadd.xlane.f32.xlu1 %v2032_v38  ;;  %v1986_v39 = vpop.f32.mrf.mxu1 }
 0xd31   : > { %v4302_v8 = vadd.f32 %v1995_v34, %v3926_v31  ;;  %v1987_v40 = vadd.f32 %v3118_v45, %v1986_v39  ;;  %v2026_v41 = vsel %vm718_vm1, %v4297_v33, 0.0 }
 0xd32   : > { %v3368_v30 = vpop.f32.mrf.mxu1  ;;  %2027 = vadd.xlane.f32.xlu0 %v2026_v41 }
 0xd33   : > { %v4307_v47 = vadd.f32 %v1987_v40, %v3916_v26  ;;  %v2008_v24 = vadd.f32 %v3368_v30, %v3118_v45  ;;  %v2035_v48 = vsel %vm718_vm1, %v4302_v8, 0.0 }
 0xd34   : > { %2036 = vadd.xlane.f32.xlu1 %v2035_v48  ;;  %v1999_v49 = vpop.f32.mrf.mxu1  ;;  %v3552_v48 = vld [vmem:[%s3848_s28 + $0x34] ss:$8 sps:$4 sm:$0xff]  }
 0xd35   : > { %v2000_v50 = vadd.f32 %v3118_v45, %v1999_v49  ;;  %v2029_v31 = vsel %vm718_vm1, %v4307_v47, 0.0  ;;  %v4314_v58 = vadd.f32 %v2008_v24, %v3936_v36  ;;  %v3550_v49 = vld [vmem:[%s3848_s28 + $0x30] ss:$8 sps:$4 sm:$0xff]   ;;  %2243 = vmatprep.subr.bf16.mxu1 %v3552_v48 }
 0xd36   : > { %v3369_v57 = vpop.f32.mrf.mxu1  ;;  %2030 = vadd.xlane.f32.xlu0 %v2029_v31  ;;  %2244 = vmatpush1.bf16.msra.mxu1 %v3550_v49  ;;  %v3553_v31 = vld [vmem:[%s3848_s28 + $0x20] ss:$8 sps:$4 sm:$0xff]  }
 0xd37   : > { %v4317_v59 = vadd.f32 %v2000_v50, %v3914_v25  ;;  %v2011_v60 = vadd.f32 %v3369_v57, %v3118_v45  ;;  %v2044_v2 = vsel %vm718_vm1, %v4314_v58, 0.0  ;;  %v3555_v50 = vld [vmem:[%s3848_s28 + $0x24] ss:$8 sps:$4 sm:$0xff]   ;;  %v3558_v57 = vld [vmem:[%s3848_s28 + $0x14] ss:$8 sps:$4 sm:$0xff]  }
 0xd38   : > { %v2002_v26 = vpop.f32.mrf.mxu1  ;;  %2245 = vmatprep.subr.bf16.mxu1 %v3555_v50 }
 0xd39   : > { %v2003_v61 = vadd.f32 %v3118_v45, %v2002_v26  ;;  %v2038_v0 = vsel %vm718_vm1, %v4317_v59, 0.0  ;;  %v4327_v3 = vadd.f32 %v2011_v60, %v3938_v37  ;;  %v3556_v26 = vld [vmem:[%s3848_s28 + $0x10] ss:$8 sps:$4 sm:$0xff]   ;;  %v3561_v60 = vld [vmem:[%s3848_s28 + $0x4] ss:$8 sps:$4 sm:$0xff]  }
 0xd3a   : > { %2039 = vadd.xlane.f32.xlu0 %v2038_v0  ;;  %2246 = vmatpush1.bf16.msra.mxu1 %v3553_v31 }
 0xd3b   : > { %v4322_v1 = vadd.f32 %v2003_v61, %v3922_v29  ;;  %v2047_v36 = vsel %vm718_vm1, %v4327_v3, 0.0  ;;  %2247 = vmatprep.subr.bf16.mxu1 %v3558_v57  ;;  %v3559_v61 = vld [vmem:[%s3848_s28] ss:$8 sps:$4 sm:$0xff]  }
 0xd3d   : > { %v2041_v25 = vsel %vm718_vm1, %v4322_v1, 0.0 }
 0xd3e   : > { %2042 = vadd.xlane.f32.xlu1 %v2041_v25  ;;  %2045 = vadd.xlane.f32.xlu0 %v2044_v2 }
 0xd3f   : > { %2248 = vmatpush1.bf16.msra.mxu1 %v3556_v26 }
 0xd40   : > { %2249 = vmatprep.subr.bf16.mxu1 %v3561_v60 }
 0xd42   : > { %2048 = vadd.xlane.f32.xlu1 %v2047_v36 }
 0xd43   : > { %2250 = vmatpush1.bf16.msra.mxu1 %v3559_v61 }
 0xdb9   : > { %v2034_v54 = vpop.xlane.xlu1 %2033 }
 0xdba   : > { %v2052_v4 = vmul.f32 0.015625, %v2034_v54 }
 0xdbb   : > { %v2028_v5 = vpop.xlane.xlu0 %2027 }
 0xdbc   : > { %v2050_v29 = vmul.f32 0.015625, %v2028_v5  ;;  %v4334_v12 = vsub.f32 %v4294_v53, %v2052_v4 }
 0xdbd   : > { %v2037_v35 = vpop.xlane.xlu1 %2036 }
 0xdbe   : > { %v4337_v37 = vsub.f32 %v4297_v33, %v2050_v29  ;;  %v2053_v51 = vmul.f32 0.015625, %v2037_v35  ;;  %v2068_v15 = vmul.f32 %v4334_v12, %v4334_v12 }
 0xdbf   : > { %v2031_v13 = vpop.xlane.xlu0 %2030 }
 0xdc0   : > { %v2051_v56 = vmul.f32 0.015625, %v2031_v13  ;;  %v2066_v14 = vmul.f32 %v4337_v37, %v4337_v37  ;;  %v4342_v44 = vsub.f32 %v4302_v8, %v2053_v51  ;;  %v2080_v42 = vsel %vm718_vm1, %v2068_v15, 0.0 }
 0xdc2   : > { %v4345_v63 = vsub.f32 %v4307_v47, %v2051_v56  ;;  %v2074_v55 = vsel %vm718_vm1, %v2066_v14, 0.0  ;;  %v2069_v11 = vmul.f32 %v4342_v44, %v4342_v44 }
 0xdc3   : > { %2075 = vadd.xlane.f32.xlu0 %v2074_v55  ;;  %v2040_v16 = vpop.xlane.xlu0 %2039 }
 0xdc4   : > { %v2054_v17 = vmul.f32 0.015625, %v2040_v16  ;;  %v2067_v18 = vmul.f32 %v4345_v63, %v4345_v63  ;;  %v2083_v27 = vsel %vm718_vm1, %v2069_v11, 0.0 }
 0xdc6   : > { %v4353_v19 = vsub.f32 %v4317_v59, %v2054_v17  ;;  %v2077_v7 = vsel %vm718_vm1, %v2067_v18, 0.0 }
 0xdc7   : > { %v2043_v20 = vpop.xlane.xlu1 %2042  ;;  %2081 = vadd.xlane.f32.xlu0 %v2080_v42  ;;  %2078 = vadd.xlane.f32.xlu1 %v2077_v7  ;;  %v2046_v52 = vpop.xlane.xlu0 %2045 }
 0xdc8   : > { %v2055_v6 = vmul.f32 0.015625, %v2043_v20  ;;  %v2056_v10 = vmul.f32 0.015625, %v2046_v52  ;;  %v2070_v21 = vmul.f32 %v4353_v19, %v4353_v19 }
 0xdca   : > { %v4362_v45 = vsub.f32 %v4322_v1, %v2055_v6  ;;  %v4365_v22 = vsub.f32 %v4314_v58, %v2056_v10  ;;  %v2086_v28 = vsel %vm718_vm1, %v2070_v21, 0.0  ;;  %v3127_v10 = vld [vmem:[%s2022_s26] ss:$0 sm:$0xff] }
 0xdcb   : > { %v2049_v32 = vpop.xlane.xlu1 %2048  ;;  %2084 = vadd.xlane.f32.xlu1 %v2083_v27  ;;  %2087 = vadd.xlane.f32.xlu0 %v2086_v28 }
 0xdcc   : > { %v2057_v62 = vmul.f32 0.015625, %v2049_v32  ;;  %v2071_v34 = vmul.f32 %v4362_v45, %v4362_v45  ;;  %v2072_v38 = vmul.f32 %v4365_v22, %v4365_v22 }
 0xdce   : > { %v4374_v39 = vsub.f32 %v4327_v3, %v2057_v62  ;;  %v2089_v40 = vsel %vm718_vm1, %v2071_v34, 0.0  ;;  %v2092_v41 = vsel %vm718_vm1, %v2072_v38, 0.0  ;;  %v3128_v38 = vld [vmem:[%s2024_s1] ss:$0 sm:$0xff] }
 0xdcf   : > { %2090 = vadd.xlane.f32.xlu1 %v2089_v40  ;;  %2093 = vadd.xlane.f32.xlu0 %v2092_v41 }
 0xdd0   : > { %v2073_v30 = vmul.f32 %v4374_v39, %v4374_v39 }
 0xdd2   : > { %v2095_v24 = vsel %vm718_vm1, %v2073_v30, 0.0 }
 0xdd3   : > { %2096 = vadd.xlane.f32.xlu1 %v2095_v24 }
 0xe4c   : > { %v2076_v0 = vpop.xlane.xlu0 %2075 }
 0xe4d   : > { %v2098_v2 = vmul.f32 0.015625, %v2076_v0 }
 0xe4f   : > { %v2106_v25 = vadd.f32 1e-05, %v2098_v2 }
 0xe50   : > { %v2079_v36 = vpop.xlane.xlu1 %2078  ;;  %v2082_v54 = vpop.xlane.xlu0 %2081 }
 0xe51   : > { %3578 = vrsqrt.f32 %v2106_v25  ;;  %v2099_v4 = vmul.f32 0.015625, %v2079_v36  ;;  %v2100_v5 = vmul.f32 0.015625, %v2082_v54 }
 0xe53   : > { %v2107_v29 = vadd.f32 1e-05, %v2099_v4  ;;  %v2108_v35 = vadd.f32 1e-05, %v2100_v5 }
 0xe54   : > { %v2085_v51 = vpop.xlane.xlu1 %2084  ;;  %v2088_v13 = vpop.xlane.xlu0 %2087 }
 0xe55   : > { %3580 = vrsqrt.f32 %v2107_v29  ;;  %v2101_v56 = vmul.f32 0.015625, %v2085_v51  ;;  %v2102_v55 = vmul.f32 0.015625, %v2088_v13 }
 0xe56   : > { %3582 = vrsqrt.f32 %v2108_v35 }
 0xe57   : > { %v2109_v14 = vadd.f32 1e-05, %v2101_v56  ;;  %v2110_v17 = vadd.f32 1e-05, %v2102_v55  ;;  %v3565_v55 = vld [vmem:[%s3853_s15 + $0x30] sm:$0xff]  }
 0xe58   : > { %v2091_v15 = vpop.xlane.xlu1 %2090  ;;  %v2094_v42 = vpop.xlane.xlu0 %2093 }
 0xe59   : > { %3584 = vrsqrt.f32 %v2109_v14  ;;  %v2103_v16 = vmul.f32 0.015625, %v2091_v15  ;;  %v2104_v52 = vmul.f32 0.015625, %v2094_v42  ;;  %v3563_v14 = vld [vmem:[%s3853_s15 + $0x38] sm:$0xff]   ;;  %v3567_v15 = vld [vmem:[%s3853_s15 + $0x28] sm:$0xff]  }
 0xe5a   : > { %v3571_v42 = vld [vmem:[%s3853_s15 + $0x18] sm:$0xff]  }
 0xe5b   : > { %v2111_v18 = vadd.f32 1e-05, %v2103_v16  ;;  %v2112_v28 = vadd.f32 1e-05, %v2104_v52  ;;  %v3568_v16 = vld [vmem:[%s3853_s15 + $0x60] sm:$0xff]   ;;  %v3575_v52 = vld [vmem:[%s3853_s15 + $0x8] sm:$0xff]  }
 0xe5c   : > { %v2097_v7 = vpop.xlane.xlu1 %2096 }
 0xe5d   : > { %3586 = vrsqrt.f32 %v2111_v18  ;;  %v2105_v11 = vmul.f32 0.015625, %v2097_v7  ;;  %v3570_v18 = vld [vmem:[%s3853_s15 + $0x58] sm:$0xff]   ;;  %v3572_v7 = vld [vmem:[%s3853_s15 + $0x50] sm:$0xff]  }
 0xe5e   : > { %v3579_v20 = vpop.eup %3578  ;;  %3588 = vrsqrt.f32 %v2110_v17  ;;  %v3569_v17 = vld [vmem:[%s3853_s15 + $0x20] sm:$0xff]  }
 0xe5f   : > { %v2122_v6 = vmul.f32 %v3579_v20, %v4337_v37  ;;  %v2113_v21 = vadd.f32 1e-05, %v2105_v11  ;;  %v3573_v11 = vld [vmem:[%s3853_s15 + $0x10] sm:$0xff]   ;;  %v3574_v20 = vld [vmem:[%s3853_s15 + $0x48] sm:$0xff]  }
 0xe61   : > { %v2136_v62 = vmul.f32 %v3127_v10, %v2122_v6  ;;  %3590 = vrsqrt.f32 %v2113_v21  ;;  %v3576_v6 = vld [vmem:[%s3853_s15 + $0x40] sm:$0xff]  }
 0xe62   : > { %v3581_v27 = vpop.eup %3580  ;;  %3592 = vrsqrt.f32 %v2112_v28  ;;  %v2171_v21 = vld [vmem:[%s2170_s17] sm:$0x3]  ;;  %s4714_s17 = sld [smem:[#allocation11_spill]] (!%p3174_p7) }
 0xe63   : > { %v2123_v32 = vmul.f32 %v3581_v27, %v4345_v63  ;;  %v3583_v34 = vpop.eup %3582  ;;  %v2150_v30 = vadd.f32 %v3128_v38, %v2136_v62  ;;  %v4435_v27 = vrot.slane %v2171_v21, %v870_v9  ;;  %v4439_v28 = vrot.slane %v2171_v21, %v874_v46 }
 0xe64   : > { %v2124_v24 = vmul.f32 %v3583_v34, %v4334_v12 }
 0xe65   : > { %v2137_v40 = vmul.f32 %v3127_v10, %v2123_v32 }
 0xe66   : > { %v3585_v41 = vpop.eup %3584  ;;  %v2138_v57 = vmul.f32 %v3127_v10, %v2124_v24 }
 0xe67   : > { %v2151_v37 = vadd.f32 %v3128_v38, %v2137_v40  ;;  %v2125_v48 = vmul.f32 %v3585_v41, %v4342_v44 }
 0xe68   : > { %v2152_v61 = vadd.f32 %v3128_v38, %v2138_v57 }
 0xe69   : > { %v2158_v49 = vpack.c.bf16 %v2151_v37, %v2150_v30  ;;  %v2139_v50 = vmul.f32 %v3127_v10, %v2125_v48 }
 0xe6a   : > { %v3587_v31 = vpop.eup %3586 }
 0xe6b   : > { %3137 = vmatmul.mubr.msk.bf16.vlgmr.msra.gmra.mxu1 %vm718_vm1, %v2158_v49  ;;  %v3589_v63 = vpop.eup %3588  ;;  %v2153_v26 = vadd.f32 %v3128_v38, %v2139_v50  ;;  %v2127_v60 = vmul.f32 %v3587_v31, %v4362_v45 }
 0xe6c   : > { %2277 = vmatprep.mubr.bf16.mxu1 %v3710_v23  ;;  %v2126_v0 = vmul.f32 %v3589_v63, %v4353_v19 }
 0xe6d   : > { %v2159_v2 = vpack.c.bf16 %v2153_v26, %v2152_v61  ;;  %v2141_v25 = vmul.f32 %v3127_v10, %v2127_v60 }
 0xe6e   : > { %v3591_v12 = vpop.eup %3590  ;;  %v2140_v44 = vmul.f32 %v3127_v10, %v2126_v0 }
 0xe6f   : > { %v3593_v36 = vpop.eup %3592  ;;  %v2155_v54 = vadd.f32 %v3128_v38, %v2141_v25  ;;  %v2129_v4 = vmul.f32 %v3591_v12, %v4374_v39  ;;  %v3562_v39 = vld [vmem:[%s3853_s15 + $0x78] sm:$0xff]  }
 0xe70   : > { %v2154_v5 = vadd.f32 %v3128_v38, %v2140_v44  ;;  %v2128_v45 = vmul.f32 %v3593_v36, %v4365_v22  ;;  %3242 = vmatprep.subr.bf16.mxu0 %v3562_v39  ;;  %v3564_v22 = vld [vmem:[%s3853_s15 + $0x70] sm:$0xff]  }
 0xe71   : > { %v2143_v29 = vmul.f32 %v3127_v10, %v2129_v4  ;;  %3243 = vmatpush3.bf16.msra.mxu0 %v3563_v14 }
 0xe72   : > { %v2160_v19 = vpack.c.bf16 %v2155_v54, %v2154_v5  ;;  %v2142_v35 = vmul.f32 %v3127_v10, %v2128_v45  ;;  %3244 = vmatprep.subr.bf16.mxu0 %v3564_v22  ;;  %v3577_v10 = vld [vmem:[%s3853_s15] sm:$0xff]  }
 0xe73   : > { %3138 = vmatmul.mubr.msk.bf16.gmra.mxu1 %vm718_vm1, %v2159_v2  ;;  %v2157_v51 = vadd.f32 %v3128_v38, %v2143_v29 }
 0xe74   : > { %2287 = vmatprep.mubr.bf16.mxu1 %v3710_v23  ;;  %v2156_v13 = vadd.f32 %v3128_v38, %v2142_v35 }
 0xe75   : > { %3245 = vmatpush3.bf16.msra.mxu0 %v3565_v55 }
 0xe76   : > { %v2161_v56 = vpack.c.bf16 %v2157_v51, %v2156_v13 }
 0xe7b   : > { %3139 = vmatmul.mubr.msk.bf16.gmra.mxu1 %vm718_vm1, %v2160_v19 }
 0xe7c   : > { %2297 = vmatprep.mubr.bf16.mxu1 %v3710_v23  ;;  %v3566_v23 = vld [vmem:[%s3853_s15 + $0x68] sm:$0xff]  }
 0xe7d   : > { %3246 = vmatprep.subr.bf16.mxu0 %v3566_v23 }
 0xe7e   : > { %3247 = vmatpush3.bf16.msra.mxu0 %v3567_v15 }
 0xe7f   : > { %3248 = vmatprep.subr.bf16.mxu0 %v3568_v16 }
 0xe82   : > { %3249 = vmatpush3.bf16.msra.mxu0 %v3569_v17 }
 0xe83   : > { %3140 = vmatmul.mubr.msk.bf16.gmra.mxu1 %vm718_vm1, %v2161_v56  ;;  %3250 = vmatprep.subr.bf16.mxu0 %v3570_v18 }
 0xe86   : > { %3251 = vmatpush3.bf16.msra.mxu0 %v3571_v42 }
 0xe87   : > { %3252 = vmatprep.subr.bf16.mxu0 %v3572_v7 }
 0xe8a   : > { %3253 = vmatpush3.bf16.msra.mxu0 %v3573_v11 }
 0xe8b   : > { %3254 = vmatprep.subr.bf16.mxu0 %v3574_v20 }
 0xe8e   : > { %3255 = vmatpush3.bf16.msra.mxu0 %v3575_v52 }
 0xe8f   : > { %3256 = vmatprep.subr.bf16.mxu0 %v3576_v6 }
 0xe92   : > { %3257 = vmatpush3.bf16.msra.mxu0 %v3577_v10 }
 0xf2b   : > { %v2269_v32 = vpop.f32.mrf.mxu1 }
 0xf2c   : > { %v4442_v62 = vadd.f32 %v2269_v32, %v4435_v27 }
 0xf2d   : > { %v2271_v34 = vpop.f32.mrf.mxu1 }
 0xf2e   : > { %v3141_v38 = vmul.f32 -1.702, %v4442_v62  ;;  %v4446_v40 = vadd.f32 %v2271_v34, %v4439_v28 }
 0xf2f   : > { %v2273_v41 = vpop.f32.mrf.mxu1 }
 0xf30   : > { %v2340_v30 = vmul.f32 1.442695, %v3141_v38  ;;  %v3142_v37 = vmul.f32 -1.702, %v4446_v40  ;;  %v4450_v9 = vadd.f32 %v2273_v41, %v4435_v27 }
 0xf31   : > { %v2275_v43 = vpop.f32.mrf.mxu1 }
 0xf32   : > { %3594 = vpow2.f32 %v2340_v30  ;;  %v2342_v46 = vmul.f32 1.442695, %v3142_v37  ;;  %v3143_v24 = vmul.f32 -1.702, %v4450_v9  ;;  %v4454_v48 = vadd.f32 %v2275_v43, %v4439_v28 }
 0xf33   : > { %v2279_v49 = vpop.f32.mrf.mxu1 }
 0xf34   : > { %3596 = vpow2.f32 %v2342_v46  ;;  %v2344_v50 = vmul.f32 1.442695, %v3143_v24  ;;  %v3144_v31 = vmul.f32 -1.702, %v4454_v48  ;;  %v4458_v57 = vadd.f32 %v2279_v49, %v4435_v27 }
 0xf35   : > { %v2281_v63 = vpop.f32.mrf.mxu1 }
 0xf36   : > { %3598 = vpow2.f32 %v2344_v50  ;;  %v2346_v26 = vmul.f32 1.442695, %v3144_v31  ;;  %v3145_v60 = vmul.f32 -1.702, %v4458_v57  ;;  %v4462_v61 = vadd.f32 %v2281_v63, %v4439_v28 }
 0xf37   : > { %v2283_v0 = vpop.f32.mrf.mxu1 }
 0xf38   : > { %3600 = vpow2.f32 %v2346_v26  ;;  %v2348_v2 = vmul.f32 1.442695, %v3145_v60  ;;  %v3146_v25 = vmul.f32 -1.702, %v4462_v61  ;;  %v4466_v12 = vadd.f32 %v2283_v0, %v4435_v27 }
 0xf39   : > { %v2285_v36 = vpop.f32.mrf.mxu1 }
 0xf3a   : > { %3602 = vpow2.f32 %v2348_v2  ;;  %v2350_v44 = vmul.f32 1.442695, %v3146_v25  ;;  %v3147_v54 = vmul.f32 -1.702, %v4466_v12  ;;  %v4470_v4 = vadd.f32 %v2285_v36, %v4439_v28 }
 0xf3b   : > { %v2289_v5 = vpop.f32.mrf.mxu1 }
 0xf3c   : > { %3604 = vpow2.f32 %v2350_v44  ;;  %v2352_v45 = vmul.f32 1.442695, %v3147_v54  ;;  %v3148_v19 = vmul.f32 -1.702, %v4470_v4  ;;  %v4474_v29 = vadd.f32 %v2289_v5, %v4435_v27 }
 0xf3d   : > { %v2291_v35 = vpop.f32.mrf.mxu1 }
 0xf3e   : > { %3606 = vpow2.f32 %v2352_v45  ;;  %v2354_v51 = vmul.f32 1.442695, %v3148_v19  ;;  %v3149_v13 = vmul.f32 -1.702, %v4474_v29  ;;  %v4478_v56 = vadd.f32 %v2291_v35, %v4439_v28 }
 0xf3f   : > { %v3595_v39 = vpop.eup %3594  ;;  %v2293_v14 = vpop.f32.mrf.mxu1 }
 0xf40   : > { %v2372_v22 = vadd.f32 1.0, %v3595_v39  ;;  %3608 = vpow2.f32 %v2354_v51  ;;  %v2356_v55 = vmul.f32 1.442695, %v3149_v13  ;;  %v3150_v23 = vmul.f32 -1.702, %v4478_v56 }
 0xf41   : > { %v3597_v15 = vpop.eup %3596  ;;  %v4482_v16 = vadd.f32 %v2293_v14, %v4435_v27  ;;  %v2295_v17 = vpop.f32.mrf.mxu1 }
 0xf42   : > { %3610 = vrcp.f32 %v2372_v22  ;;  %v2373_v18 = vadd.f32 1.0, %v3597_v15  ;;  %v2358_v42 = vmul.f32 1.442695, %v3150_v23  ;;  %v4485_v7 = vadd.f32 %v2295_v17, %v4439_v28 }
 0xf43   : > { %v3599_v11 = vpop.eup %3598  ;;  %3612 = vpow2.f32 %v2356_v55  ;;  %v3151_v20 = vmul.f32 -1.702, %v4482_v16  ;;  %v2299_v52 = vpop.f32.mrf.mxu1 }
 0xf44   : > { %3614 = vrcp.f32 %v2373_v18  ;;  %v2374_v6 = vadd.f32 1.0, %v3599_v11  ;;  %v3152_v10 = vmul.f32 -1.702, %v4485_v7  ;;  %v4490_v21 = vadd.f32 %v2299_v52, %v4435_v27 }
 0xf45   : > { %v3601_v32 = vpop.eup %3600  ;;  %3616 = vpow2.f32 %v2358_v42  ;;  %v2360_v34 = vmul.f32 1.442695, %v3151_v20  ;;  %v2301_v38 = vpop.f32.mrf.mxu1 }
 0xf46   : > { %3618 = vrcp.f32 %v2374_v6  ;;  %v2375_v41 = vadd.f32 1.0, %v3601_v32  ;;  %v2362_v30 = vmul.f32 1.442695, %v3152_v10  ;;  %v3153_v37 = vmul.f32 -1.702, %v4490_v21 }
 0xf47   : > { %v3603_v43 = vpop.eup %3602  ;;  %3620 = vpow2.f32 %v2360_v34  ;;  %v4494_v46 = vadd.f32 %v2301_v38, %v4439_v28  ;;  %v2303_v24 = vpop.f32.mrf.mxu1 }
 0xf48   : > { %3622 = vrcp.f32 %v2375_v41  ;;  %v2376_v49 = vadd.f32 1.0, %v3603_v43  ;;  %v2364_v50 = vmul.f32 1.442695, %v3153_v37  ;;  %v4497_v31 = vadd.f32 %v2303_v24, %v4435_v27 }
 0xf49   : > { %v3605_v63 = vpop.eup %3604  ;;  %3624 = vpow2.f32 %v2362_v30  ;;  %v3154_v26 = vmul.f32 -1.702, %v4494_v46  ;;  %v2305_v60 = vpop.f32.mrf.mxu1 }
 0xf4a   : > { %3626 = vrcp.f32 %v2376_v49  ;;  %v2377_v0 = vadd.f32 1.0, %v3605_v63  ;;  %v3155_v2 = vmul.f32 -1.702, %v4497_v31  ;;  %v4502_v25 = vadd.f32 %v2305_v60, %v4439_v28 }
 0xf4b   : > { %v3607_v36 = vpop.eup %3606  ;;  %3628 = vpow2.f32 %v2364_v50  ;;  %v2366_v44 = vmul.f32 1.442695, %v3154_v26 }
 0xf4c   : > { %3630 = vrcp.f32 %v2377_v0  ;;  %v2378_v54 = vadd.f32 1.0, %v3607_v36  ;;  %v2368_v5 = vmul.f32 1.442695, %v3155_v2  ;;  %v3156_v27 = vmul.f32 -1.702, %v4502_v25 }
 0xf4d   : > { %v3609_v45 = vpop.eup %3608  ;;  %3632 = vpow2.f32 %v2366_v44 }
 0xf4e   : > { %3634 = vrcp.f32 %v2378_v54  ;;  %v2379_v19 = vadd.f32 1.0, %v3609_v45  ;;  %v2370_v35 = vmul.f32 1.442695, %v3156_v27 }
 0xf4f   : > { %v3611_v51 = vpop.eup %3610  ;;  %3636 = vpow2.f32 %v2368_v5 }
 0xf50   : > { %v3613_v13 = vpop.eup %3612  ;;  %3638 = vrcp.f32 %v2379_v19  ;;  %v2420_v6 = vmul.f32 %v3611_v51, %v4442_v62 }
 0xf51   : > { %v3615_v39 = vpop.eup %3614  ;;  %3640 = vpow2.f32 %v2370_v35  ;;  %v2380_v23 = vadd.f32 1.0, %v3613_v13 }
 0xf52   : > { %v3617_v28 = vpop.eup %3616  ;;  %v2421_v11 = vmul.f32 %v3615_v39, %v4446_v40 }
 0xf53   : > { %v3619_v14 = vpop.eup %3618  ;;  %v2381_v22 = vadd.f32 1.0, %v3617_v28 }
 0xf54   : > { %v3621_v55 = vpop.eup %3620  ;;  %v2422_v17 = vmul.f32 %v3619_v14, %v4450_v9 }
 0xf55   : > { %v3623_v15 = vpop.eup %3622  ;;  %v2382_v18 = vadd.f32 1.0, %v3621_v55  ;;  %3642 = vrcp.f32 %v2381_v22  ;;  %v3157_v22 = vld [vmem:[%s2476_s18] ss:$0 sm:$0xff]  ;;  %s4715_s18 = sld [smem:[#allocation12_spill]] (!%p3174_p7) }
 0xf56   : > { %v3625_v42 = vpop.eup %3624  ;;  %v2423_v20 = vmul.f32 %v3623_v15, %v4454_v48  ;;  %v2436_v41 = vpack.c.bf16 %v2422_v17, %v2420_v6 }
 0xf57   : > { %v3627_v52 = vpop.eup %3626  ;;  %3644 = vrcp.f32 %v2382_v18  ;;  %v2383_v10 = vadd.f32 1.0, %v3625_v42 }
 0xf58   : > { %v3629_v32 = vpop.eup %3628  ;;  %3646 = vrcp.f32 %v2380_v23  ;;  %v2437_v34 = vpack.c.bf16 %v2423_v20, %v2421_v11  ;;  %v2424_v26 = vmul.f32 %v3627_v52, %v4458_v57 }
 0xf59   : > { %v3631_v38 = vpop.eup %3630  ;;  %3648 = vrcp.f32 %v2383_v10  ;;  %v2384_v40 = vadd.f32 1.0, %v3629_v32 }
 0xf5a   : > { %v3633_v30 = vpop.eup %3632  ;;  %2612 = vmatprep.mubr.bf16.mxu0 %v2437_v34  ;;  %v2425_v50 = vmul.f32 %v3631_v38, %v4462_v61 }
 0xf5b   : > { %v3635_v9 = vpop.eup %3634  ;;  %v2385_v37 = vadd.f32 1.0, %v3633_v30  ;;  %2613 = vmatmul.mubr.bf16.vlgmr.msra.gmra.mxu0 %v2436_v41 }
 0xf5c   : > { %v3637_v43 = vpop.eup %3636  ;;  %v2426_v48 = vmul.f32 %v3635_v9, %v4466_v12 }
 0xf5d   : > { %v3639_v24 = vpop.eup %3638  ;;  %v2386_v49 = vadd.f32 1.0, %v3637_v43  ;;  %3650 = vrcp.f32 %v2385_v37 }
 0xf5e   : > { %v3641_v62 = vpop.eup %3640  ;;  %v2427_v63 = vmul.f32 %v3639_v24, %v4470_v4  ;;  %v2438_v2 = vpack.c.bf16 %v2426_v48, %v2424_v26 }
 0xf5f   : > { %3652 = vrcp.f32 %v2386_v49  ;;  %v2387_v60 = vadd.f32 1.0, %v3641_v62 }
 0xf60   : > { %3654 = vrcp.f32 %v2384_v40  ;;  %v2439_v0 = vpack.c.bf16 %v2427_v63, %v2425_v50 }
 0xf61   : > { %3656 = vrcp.f32 %v2387_v60 }
 0xf62   : > { %2620 = vmatprep.mubr.bf16.mxu0 %v2439_v0  ;;  %v3643_v36 = vpop.eup %3642 }
 0xf63   : > { %2621 = vmatmul.mubr.bf16.gmra.mxu0 %v2438_v2  ;;  %v2429_v61 = vmul.f32 %v3643_v36, %v4478_v56 }
 0xf64   : > { %v3645_v44 = vpop.eup %3644 }
 0xf65   : > { %v3647_v12 = vpop.eup %3646  ;;  %v2430_v5 = vmul.f32 %v3645_v44, %v4482_v16 }
 0xf66   : > { %v3649_v54 = vpop.eup %3648  ;;  %v2428_v57 = vmul.f32 %v3647_v12, %v4474_v29 }
 0xf67   : > { %v2431_v4 = vmul.f32 %v3649_v54, %v4485_v7 }
 0xf68   : > { %v2440_v45 = vpack.c.bf16 %v2430_v5, %v2428_v57 }
 0xf69   : > { %v2441_v27 = vpack.c.bf16 %v2431_v4, %v2429_v61 }
 0xf6a   : > { %v3651_v19 = vpop.eup %3650 }
 0xf6b   : > { %2628 = vmatprep.mubr.bf16.mxu0 %v2441_v27  ;;  %v2433_v28 = vmul.f32 %v3651_v19, %v4494_v46 }
 0xf6c   : > { %v3653_v35 = vpop.eup %3652  ;;  %2629 = vmatmul.mubr.bf16.gmra.mxu0 %v2440_v45 }
 0xf6d   : > { %v3655_v51 = vpop.eup %3654  ;;  %v2434_v39 = vmul.f32 %v3653_v35, %v4497_v31 }
 0xf6e   : > { %v3657_v13 = vpop.eup %3656  ;;  %v2432_v56 = vmul.f32 %v3655_v51, %v4490_v21 }
 0xf6f   : > { %v2435_v16 = vmul.f32 %v3657_v13, %v4502_v25 }
 0xf70   : > { %v2442_v14 = vpack.c.bf16 %v2434_v39, %v2432_v56 }
 0xf71   : > { %v2443_v7 = vpack.c.bf16 %v2435_v16, %v2433_v28 }
 0xf73   : > { %2636 = vmatprep.mubr.bf16.mxu0 %v2443_v7 }
 0xf74   : > { %2637 = vmatmul.mubr.bf16.gmra.mxu0 %v2442_v14 }
0x101b   : > { %v3258_v29 = vpop.f32.mrf.mxu0 }
0x101d   : > { %v3259_v55 = vpop.f32.mrf.mxu0 }
0x101e   : > { %v3260_v23 = vadd.f32 %v3259_v55, %v3258_v29 }
0x101f   : > { %v3261_v15 = vpop.f32.mrf.mxu0 }
0x1020   : > { %v2615_v31 = vadd.f32 %v3260_v23, %v3157_v22 }
0x1021   : > { %v3262_v17 = vpop.f32.mrf.mxu0 }
0x1022   : > { %v4526_v46 = vadd.f32 %v2615_v31, %v4297_v33  ;;  %v3263_v25 = vadd.f32 %v3262_v17, %v3261_v15 }
0x1023   : > { %v3264_v21 = vpop.f32.mrf.mxu0 }
0x1024   : > { %2653 = vst.msk [vmem:[#allocation2] sm:$0xff] %vm718_vm1, %v4526_v46  ;;  %v2618_v18 = vadd.f32 %v3263_v25, %v3157_v22 }
0x1025   : > { %v3265_v42 = vpop.f32.mrf.mxu0 }
0x1026   : > { %v4531_v11 = vadd.f32 %v2618_v18, %v4307_v47  ;;  %v3266_v20 = vadd.f32 %v3265_v42, %v3264_v21 }
0x1027   : > { %v3267_v52 = vpop.f32.mrf.mxu0 }
0x1028   : > { %2654 = vst.msk [vmem:[#allocation2 + $0x8] sm:$0xff] %vm718_vm1, %v4531_v11  ;;  %v2623_v6 = vadd.f32 %v3266_v20, %v3157_v22 }
0x1029   : > { %v3268_v10 = vpop.f32.mrf.mxu0 }
0x102a   : > { %v4536_v33 = vadd.f32 %v2623_v6, %v4294_v53  ;;  %v3269_v32 = vadd.f32 %v3268_v10, %v3267_v52 }
0x102c   : > { %2655 = vst.msk [vmem:[#allocation2 + $0x10] sm:$0xff] %vm718_vm1, %v4536_v33  ;;  %v2626_v34 = vadd.f32 %v3269_v32, %v3157_v22  ;;  %v3270_v38 = vpop.f32.mrf.mxu0 }
0x102e   : > { %v4541_v41 = vadd.f32 %v2626_v34, %v4302_v8  ;;  %v3271_v47 = vpop.f32.mrf.mxu0 }
0x102f   : > { %v3272_v30 = vadd.f32 %v3271_v47, %v3270_v38 }
0x1030   : > { %2656 = vst.msk [vmem:[#allocation2 + $0x18] sm:$0xff] %vm718_vm1, %v4541_v41  ;;  %v3273_v9 = vpop.f32.mrf.mxu0 }
0x1031   : > { %v2631_v37 = vadd.f32 %v3272_v30, %v3157_v22 }
0x1032   : > { %v3274_v43 = vpop.f32.mrf.mxu0 }
0x1033   : > { %v2649_v53 = vadd.f32 %v2631_v37, %v4317_v59  ;;  %v3275_v40 = vadd.f32 %v3274_v43, %v3273_v9 }
0x1034   : > { %v3276_v24 = vpop.f32.mrf.mxu0 }
0x1035   : > { %2657 = vst.msk [vmem:[#allocation2 + $0x20] sm:$0xff] %vm718_vm1, %v2649_v53  ;;  %v2634_v48 = vadd.f32 %v3275_v40, %v3157_v22 }
0x1036   : > { %v3277_v49 = vpop.f32.mrf.mxu0 }
0x1037   : > { %v2650_v62 = vadd.f32 %v2634_v48, %v4322_v1  ;;  %v3278_v8 = vadd.f32 %v3277_v49, %v3276_v24 }
0x1038   : > { %v3279_v50 = vpop.f32.mrf.mxu0 }
0x1039   : > { %2658 = vst.msk [vmem:[#allocation2 + $0x28] sm:$0xff] %vm718_vm1, %v2650_v62  ;;  %v2639_v63 = vadd.f32 %v3278_v8, %v3157_v22 }
0x103a   : > { %v3280_v26 = vpop.f32.mrf.mxu0 }
0x103b   : > { %v2651_v60 = vadd.f32 %v2639_v63, %v4314_v58  ;;  %v3281_v0 = vadd.f32 %v3280_v26, %v3279_v50 }
0x103d   : > { %2659 = vst.msk [vmem:[#allocation2 + $0x30] sm:$0xff] %vm718_vm1, %v2651_v60  ;;  %v2642_v59 = vadd.f32 %v3281_v0, %v3157_v22  ;;  %2664 = sbr.rel (%p3174_p7) target bundleno = 4690 (0x1252), region = 107 }
0x103f   : > { %v2652_v2 = vadd.f32 %v2642_v59, %v4327_v3 }
0x1041   : > { %2660 = vst.msk [vmem:[#allocation2 + $0x38] sm:$0xff] %vm718_vm1, %v2652_v2 }
0x1042   : > { %v2667_v1 = vsel %vm718_vm1, %v4526_v46, 0.0  ;;  %v2679_v36 = vsel %vm718_vm1, %v2649_v53, 0.0  ;;  %v2670_v58 = vsel %vm718_vm1, %v4531_v11, 0.0  ;;  %v2682_v44 = vsel %vm718_vm1, %v2650_v62, 0.0  ;;  %v3658_v37 = vld [vmem:[%s4692_s16 + $0x18] sm:$0xff]   ;;  %v3659_v43 = vld [vmem:[%s4692_s16 + $0x10] sm:$0xff]  }
0x1043   : > { %2668 = vadd.xlane.f32.xlu0 %v2667_v1  ;;  %2680 = vadd.xlane.f32.xlu1 %v2679_v36  ;;  %v2673_v3 = vsel %vm718_vm1, %v4536_v33, 0.0  ;;  %v2676_v12 = vsel %vm718_vm1, %v4541_v41, 0.0  ;;  %v2685_v54 = vsel %vm718_vm1, %v2651_v60, 0.0  ;;  %v2688_v5 = vsel %vm718_vm1, %v2652_v2, 0.0  ;;  %v3661_v40 = vld [vmem:[%s4692_s16] sm:$0xff]  }
0x1044   : > { %3370 = vmatprep.subr.bf16.mxu0 %v3658_v37  ;;  %3394 = vmatprep.subr.bf16.mxu1 %v3658_v37 }
0x1045   : > { %3371 = vmatpush3.bf16.msra.mxu0 %v3658_v37  ;;  %3398 = vmatpush3.bf16.msra.mxu1 %v3658_v37 }
0x1046   : > { %3372 = vmatprep.subr.bf16.mxu0 %v3659_v43  ;;  %3395 = vmatprep.subr.bf16.mxu1 %v3659_v43 }
0x1047   : > { %2671 = vadd.xlane.f32.xlu0 %v2670_v58  ;;  %2683 = vadd.xlane.f32.xlu1 %v2682_v44 }
0x1049   : > { %3373 = vmatpush3.bf16.msra.mxu0 %v3659_v43  ;;  %3399 = vmatpush3.bf16.msra.mxu1 %v3659_v43 }
0x104b   : > { %2674 = vadd.xlane.f32.xlu0 %v2673_v3  ;;  %2677 = vadd.xlane.f32.xlu1 %v2676_v12 }
0x104f   : > { %2686 = vadd.xlane.f32.xlu0 %v2685_v54  ;;  %2689 = vadd.xlane.f32.xlu1 %v2688_v5 }
0x10cc   : > { %v2669_v61 = vpop.xlane.xlu0 %2668  ;;  %v2681_v4 = vpop.xlane.xlu1 %2680 }
0x10cd   : > { %v2691_v57 = vmul.f32 0.015625, %v2669_v61  ;;  %v2695_v27 = vmul.f32 0.015625, %v2681_v4 }
0x10cf   : > { %v4567_v45 = vsub.f32 %v4526_v46, %v2691_v57  ;;  %v4569_v19 = vsub.f32 %v2649_v53, %v2695_v27  ;;  %v3660_v53 = vld [vmem:[%s4692_s16 + $0x8] sm:$0xff]  }
0x10d0   : > { %v2672_v35 = vpop.xlane.xlu0 %2671  ;;  %v2684_v51 = vpop.xlane.xlu1 %2683  ;;  %3374 = vmatprep.subr.bf16.mxu0 %v3660_v53  ;;  %3396 = vmatprep.subr.bf16.mxu1 %v3660_v53 }
0x10d1   : > { %v2692_v13 = vmul.f32 0.015625, %v2672_v35  ;;  %v2696_v39 = vmul.f32 0.015625, %v2684_v51  ;;  %v2707_v28 = vmul.f32 %v4567_v45, %v4567_v45  ;;  %v2711_v16 = vmul.f32 %v4569_v19, %v4569_v19  ;;  %3375 = vmatpush3.bf16.msra.mxu0 %v3660_v53  ;;  %3400 = vmatpush3.bf16.msra.mxu1 %v3660_v53 }
0x10d2   : > { %3376 = vmatprep.subr.bf16.mxu0 %v3661_v40  ;;  %3397 = vmatprep.subr.bf16.mxu1 %v3661_v40 }
0x10d3   : > { %v4576_v56 = vsub.f32 %v4531_v11, %v2692_v13  ;;  %v4578_v7 = vsub.f32 %v2650_v62, %v2696_v39  ;;  %v2715_v14 = vsel %vm718_vm1, %v2707_v28, 0.0  ;;  %v2727_v55 = vsel %vm718_vm1, %v2711_v16, 0.0  ;;  %v3175_v13 = vld [vmem:[%s4690_s14] ss:$0 sm:$0xff] }
0x10d4   : > { %2716 = vadd.xlane.f32.xlu0 %v2715_v14  ;;  %v2675_v29 = vpop.xlane.xlu0 %2674  ;;  %v2678_v22 = vpop.xlane.xlu1 %2677 }
0x10d5   : > { %v2693_v23 = vmul.f32 0.015625, %v2675_v29  ;;  %v2694_v15 = vmul.f32 0.015625, %v2678_v22  ;;  %v2708_v31 = vmul.f32 %v4576_v56, %v4576_v56  ;;  %v2712_v17 = vmul.f32 %v4578_v7, %v4578_v7  ;;  %3377 = vmatpush3.bf16.msra.mxu0 %v3661_v40  ;;  %3401 = vmatpush3.bf16.msra.mxu1 %v3661_v40  ;;  %v3176_v29 = vld [vmem:[%s4714_s17] ss:$0 sm:$0xff] }
0x10d7   : > { %v4587_v46 = vsub.f32 %v4536_v33, %v2693_v23  ;;  %v4590_v25 = vsub.f32 %v4541_v41, %v2694_v15  ;;  %v2718_v21 = vsel %vm718_vm1, %v2708_v31, 0.0  ;;  %v2730_v11 = vsel %vm718_vm1, %v2712_v17, 0.0 }
0x10d8   : > { %2728 = vadd.xlane.f32.xlu0 %v2727_v55  ;;  %2719 = vadd.xlane.f32.xlu1 %v2718_v21  ;;  %v2687_v18 = vpop.xlane.xlu0 %2686  ;;  %v2690_v42 = vpop.xlane.xlu1 %2689 }
0x10d9   : > { %v2697_v20 = vmul.f32 0.015625, %v2687_v18  ;;  %v2698_v52 = vmul.f32 0.015625, %v2690_v42  ;;  %v2709_v6 = vmul.f32 %v4587_v46, %v4587_v46  ;;  %v2710_v10 = vmul.f32 %v4590_v25, %v4590_v25 }
0x10db   : > { %v4598_v33 = vsub.f32 %v2651_v60, %v2697_v20  ;;  %v4600_v32 = vsub.f32 %v2652_v2, %v2698_v52  ;;  %v2721_v34 = vsel %vm718_vm1, %v2709_v6, 0.0  ;;  %v2724_v38 = vsel %vm718_vm1, %v2710_v10, 0.0 }
0x10dc   : > { %2731 = vadd.xlane.f32.xlu1 %v2730_v11  ;;  %2722 = vadd.xlane.f32.xlu0 %v2721_v34 }
0x10dd   : > { %v2713_v41 = vmul.f32 %v4598_v33, %v4598_v33  ;;  %v2714_v47 = vmul.f32 %v4600_v32, %v4600_v32 }
0x10df   : > { %v2733_v30 = vsel %vm718_vm1, %v2713_v41, 0.0  ;;  %v2736_v9 = vsel %vm718_vm1, %v2714_v47, 0.0 }
0x10e0   : > { %2725 = vadd.xlane.f32.xlu1 %v2724_v38  ;;  %2734 = vadd.xlane.f32.xlu0 %v2733_v30 }
0x10e4   : > { %2737 = vadd.xlane.f32.xlu1 %v2736_v9 }
0x115d   : > { %v2717_v24 = vpop.xlane.xlu0 %2716 }
0x115e   : > { %v2739_v48 = vmul.f32 0.015625, %v2717_v24 }
0x1160   : > { %v2747_v49 = vadd.f32 1e-05, %v2739_v48 }
0x1161   : > { %v2720_v62 = vpop.xlane.xlu1 %2719  ;;  %v2729_v8 = vpop.xlane.xlu0 %2728 }
0x1162   : > { %3662 = vrsqrt.f32 %v2747_v49  ;;  %v2740_v50 = vmul.f32 0.015625, %v2720_v62  ;;  %v2743_v63 = vmul.f32 0.015625, %v2729_v8 }
0x1164   : > { %v2748_v26 = vadd.f32 1e-05, %v2740_v50  ;;  %v2751_v60 = vadd.f32 1e-05, %v2743_v63 }
0x1165   : > { %v2732_v0 = vpop.xlane.xlu1 %2731  ;;  %v2723_v59 = vpop.xlane.xlu0 %2722 }
0x1166   : > { %3664 = vrsqrt.f32 %v2748_v26  ;;  %v2744_v2 = vmul.f32 0.015625, %v2732_v0  ;;  %v2741_v1 = vmul.f32 0.015625, %v2723_v59 }
0x1167   : > { %3666 = vrsqrt.f32 %v2751_v60 }
0x1168   : > { %v2752_v36 = vadd.f32 1e-05, %v2744_v2  ;;  %v2749_v58 = vadd.f32 1e-05, %v2741_v1 }
0x1169   : > { %v2726_v44 = vpop.xlane.xlu1 %2725  ;;  %v2735_v3 = vpop.xlane.xlu0 %2734 }
0x116a   : > { %3668 = vrsqrt.f32 %v2752_v36  ;;  %v2742_v12 = vmul.f32 0.015625, %v2726_v44  ;;  %v2745_v54 = vmul.f32 0.015625, %v2735_v3 }
0x116b   : > { %3670 = vrsqrt.f32 %v2749_v58 }
0x116c   : > { %v2750_v5 = vadd.f32 1e-05, %v2742_v12  ;;  %v2753_v61 = vadd.f32 1e-05, %v2745_v54 }
0x116d   : > { %v2738_v4 = vpop.xlane.xlu1 %2737 }
0x116e   : > { %3672 = vrsqrt.f32 %v2750_v5  ;;  %v2746_v57 = vmul.f32 0.015625, %v2738_v4 }
0x116f   : > { %v3663_v27 = vpop.eup %3662  ;;  %3674 = vrsqrt.f32 %v2753_v61 }
0x1170   : > { %v2754_v35 = vadd.f32 1e-05, %v2746_v57  ;;  %v2763_v51 = vmul.f32 %v3663_v27, %v4567_v45 }
0x1172   : > { %3676 = vrsqrt.f32 %v2754_v35  ;;  %v2777_v14 = vmul.f32 %v3175_v13, %v2763_v51 }
0x1173   : > { %v3665_v39 = vpop.eup %3664 }
0x1174   : > { %v3667_v28 = vpop.eup %3666  ;;  %v2764_v16 = vmul.f32 %v3665_v39, %v4576_v56  ;;  %v2791_v45 = vadd.f32 %v3176_v29, %v2777_v14 }
0x1175   : > { %v2767_v22 = vmul.f32 %v3667_v28, %v4569_v19 }
0x1176   : > { %v2778_v55 = vmul.f32 %v3175_v13, %v2764_v16 }
0x1177   : > { %v3669_v23 = vpop.eup %3668  ;;  %v2781_v21 = vmul.f32 %v3175_v13, %v2767_v22 }
0x1178   : > { %v3671_v15 = vpop.eup %3670  ;;  %v2792_v31 = vadd.f32 %v3176_v29, %v2778_v55  ;;  %v2768_v17 = vmul.f32 %v3669_v23, %v4578_v7 }
0x1179   : > { %v2765_v18 = vmul.f32 %v3671_v15, %v4587_v46  ;;  %v2795_v52 = vadd.f32 %v3176_v29, %v2781_v21 }
0x117a   : > { %v2799_v42 = vpack.c.bf16 %v2792_v31, %v2791_v45  ;;  %v2782_v11 = vmul.f32 %v3175_v13, %v2768_v17 }
0x117b   : > { %v3673_v56 = vpop.eup %3672  ;;  %v2779_v10 = vmul.f32 %v3175_v13, %v2765_v18 }
0x117c   : > { %v3675_v20 = vpop.eup %3674  ;;  %3378 = vmatprep.mubr.msk.bf16.mxu0 %vm718_vm1, %v2799_v42  ;;  %v2796_v6 = vadd.f32 %v3176_v29, %v2782_v11  ;;  %v2766_v19 = vmul.f32 %v3673_v56, %v4590_v25 }
0x117d   : > { %v2769_v34 = vmul.f32 %v3675_v20, %v4598_v33  ;;  %v2793_v7 = vadd.f32 %v3176_v29, %v2779_v10  ;;  %v3177_v33 = vld [vmem:[%s4715_s18] ss:$0 sm:$0xff] }
0x117e   : > { %v2801_v38 = vpack.c.bf16 %v2796_v6, %v2795_v52  ;;  %v2780_v41 = vmul.f32 %v3175_v13, %v2766_v19 }
0x117f   : > { %v3677_v47 = vpop.eup %3676  ;;  %v2783_v9 = vmul.f32 %v3175_v13, %v2769_v34 }
0x1180   : > { %3382 = vmatprep.mubr.msk.bf16.mxu1 %vm718_vm1, %v2801_v38  ;;  %v2794_v46 = vadd.f32 %v3176_v29, %v2780_v41  ;;  %v2770_v30 = vmul.f32 %v3677_v47, %v4600_v32 }
0x1181   : > { %v2797_v53 = vadd.f32 %v3176_v29, %v2783_v9 }
0x1182   : > { %v2800_v37 = vpack.c.bf16 %v2794_v46, %v2793_v7  ;;  %v2784_v43 = vmul.f32 %v3175_v13, %v2770_v30 }
0x1184   : > { %3379 = vmatmul.mubr.msk.bf16.vlgmr.msra.gmra.mxu0 %vm718_vm1, %v2800_v37  ;;  %v2798_v40 = vadd.f32 %v3176_v29, %v2784_v43 }
0x1186   : > { %v2802_v25 = vpack.c.bf16 %v2798_v40, %v2797_v53 }
0x1188   : > { %3383 = vmatmul.mubr.msk.bf16.vlgmr.msra.gmra.mxu1 %vm718_vm1, %v2802_v25 }
0x1244   : > { %v3380_v24 = vpop.f32.mrf.mxu0 }
0x1245   : > { %v2897_v48 = vadd.f32 %v3380_v24, %v3177_v33 }
0x1246   : > { %v2888_v49 = vpop.f32.mrf.mxu0 }
0x1247   : > { %2921 = vst [vmem:[%s4716_s29 + $0x10] sm:$0xff] %v2897_v48  ;;  %v2889_v32 = vadd.f32 %v3177_v33, %v2888_v49 }
0x1248   : > { %v3381_v62 = vpop.f32.mrf.mxu0  ;;  %v3384_v8 = vpop.f32.mrf.mxu1 }
0x1249   : > { %2919 = vst [vmem:[%s4717_s0] sm:$0xff] %v2889_v32  ;;  %v2900_v50 = vadd.f32 %v3381_v62, %v3177_v33  ;;  %v2913_v63 = vadd.f32 %v3384_v8, %v3177_v33 }
0x124a   : > { %v2891_v26 = vpop.f32.mrf.mxu0  ;;  %v2904_v60 = vpop.f32.mrf.mxu1 }
0x124b   : > { %2922 = vst [vmem:[%s4717_s0 + $0x18] sm:$0xff] %v2900_v50  ;;  %2925 = vst [vmem:[%s4717_s0 + $0x30] sm:$0xff] %v2913_v63  ;;  %v2892_v0 = vadd.f32 %v3177_v33, %v2891_v26  ;;  %v2905_v59 = vadd.f32 %v3177_v33, %v2904_v60 }
0x124c   : > { %v3385_v2 = vpop.f32.mrf.mxu1 }
0x124d   : > { %2920 = vst [vmem:[%s4717_s0 + $0x8] sm:$0xff] %v2892_v0  ;;  %2923 = vst [vmem:[%s4717_s0 + $0x20] sm:$0xff] %v2905_v59  ;;  %v2916_v1 = vadd.f32 %v3385_v2, %v3177_v33 }
0x124e   : > { %v2907_v36 = vpop.f32.mrf.mxu1 }
0x124f   : > { %2926 = vst [vmem:[%s4717_s0 + $0x38] sm:$0xff] %v2916_v1  ;;  %v2908_v58 = vadd.f32 %v3177_v33, %v2907_v36 }
0x1251   : > { %2924 = vst [vmem:[%s4717_s0 + $0x28] sm:$0xff] %v2908_v58 }
0x1252 PF: > { %s4718_s29 = sld [smem:[#allocation6_spill]] }
0x1253   : > { %s4719_s27 = sld [smem:[#allocation5_spill]] }
0x1254   : > { %s4720_s28 = sld [smem:[#allocation7_spill]] }
0x1258   : > { %s28_s29 = sadd.s32 1, %s4718_s29  }
0x1259   : > { %p25_p8 = scmp.ge.s32.totalorder %s28_s29, 4  }
0x125b   :  { %27 = sbr.rel (!%p25_p8) target bundleno = 7 (0x7), region = 170 }

</bundles_post_ra>
